<compile_context>
chip_gen: v7x
topology: tpu7x:2x2x1
jax: 0.10.0
libtpu: 0.0.40
codegen_flags: <defaults>
</compile_context>

<pallas_src>
import numpy as np
import jax
import jax.numpy as jnp
from jax import lax
from jax.experimental import pallas as pl
from jax.experimental.pallas import tpu as pltpu

# --------------------------- configuration (small shapes) ---------------------------
VOCAB = 50
IN_DIM = 16
MEM_DIM = 16             # reference hardcodes .view(2, 100); here mem_dim = 16
HID = 2 * MEM_DIM        # 32
MAX_PARA = 2
MAX_SENT = 4
MAX_WORD = 8             # T
ATT_HEAD = 2             # -> "else" branch of the reference: two attention heads

N_SENT_PAD = MAX_PARA * MAX_SENT            # fixed sentence-slot count (8)
N_SEQ = 1 + N_SENT_PAD                      # headline + sentence slots (9)
N_SEQ_PAD = ((N_SEQ + 7) // 8) * 8          # rounded to a sublane multiple (16)
HEAD_ROW = N_SENT_PAD                       # headline at row 8 (sublane aligned)
INV_SQRT_D = float(1.0 / np.sqrt(HID))
NEG_BIG = -1e30


# ------------------------------------ kernel ----------------------------------------
def doc_lstm_kernel(nvalid_ref, bsim_ref, x_ref, wih_ref, b_ref, whhf_ref, whhb_ref,
                    wsim_ref, wqkv_ref, bqkv_ref, wcat_ref, bcat_ref,
                    wfeat_ref, bfeat_ref, head_ref, high_ref, low_ref):
    """Fully fused DocLSTM forward.

    x_ref    : (MAX_WORD * N_SEQ_PAD, IN_DIM) time-major rows (t * N_SEQ_PAD + n);
               columns 0..NS-1 are sentences, column HEAD_ROW is the headline.
    wih_ref  : (IN_DIM, 8*MEM_DIM) fused input projection [fwd i,f,g,o | bwd i,f,g,o]
    whh*_ref : (MEM_DIM, 4*MEM_DIM) fused recurrent projection per direction
    wqkv_ref : (HID, ATT_HEAD*3*HID) per-head [Q|K|V] stacks
    Outputs  : head_ref (1,HID) Bi_Head_h, high_ref / low_ref (1,HID) features.
    """
    M = MEM_DIM
    NS = N_SENT_PAD
    NSP = N_SEQ_PAD

    # ---------------- bidirectional LSTM (fused gates, interleaved directions) ------
    x = x_ref[...]                                                           # (T*NSP, IN_DIM)
    # ALL input projections (4 gates x 2 directions) in one 128-lane matmul.
    gx_all = jnp.dot(x, wih_ref[...], preferred_element_type=jnp.float32) + b_ref[...]
    gx_f = gx_all[:, 0:4 * M]
    gx_b = gx_all[:, 4 * M:8 * M]
    whh_f = whhf_ref[...]
    whh_b = whhb_ref[...]

    def cell(g, c):
        i_g = jax.nn.sigmoid(g[:, 0 * M:1 * M])
        f_g = jax.nn.sigmoid(g[:, 1 * M:2 * M])
        g_g = jnp.tanh(g[:, 2 * M:3 * M])
        o_g = jax.nn.sigmoid(g[:, 3 * M:4 * M])
        c_new = f_g * c + i_g * g_g
        return o_g * jnp.tanh(c_new), c_new

    hf = jnp.zeros((NSP, M), jnp.float32)
    cf = jnp.zeros((NSP, M), jnp.float32)
    hb = jnp.zeros((NSP, M), jnp.float32)
    cb = jnp.zeros((NSP, M), jnp.float32)
    # Statically unrolled recurrence; forward step t and backward step T-1-t are
    # data-independent and issued back-to-back so their latency chains overlap.
    for t in range(MAX_WORD):
        bf = t * NSP
        bb = (MAX_WORD - 1 - t) * NSP
        gf = gx_f[bf:bf + NSP, :] + jnp.dot(hf, whh_f, preferred_element_type=jnp.float32)
        gb = gx_b[bb:bb + NSP, :] + jnp.dot(hb, whh_b, preferred_element_type=jnp.float32)
        hf, cf = cell(gf, cf)
        hb, cb = cell(gb, cb)

    h_bi = jnp.concatenate([hf, hb], axis=1)                                 # (NSP, HID)
    sent = h_bi[0:NS, :]                                                     # sentence hiddens
    head = h_bi[HEAD_ROW:HEAD_ROW + 1, :]                                    # Bi_Head_h
    head_ref[...] = head

    # ---------------- similarity + softmax + high/low selection (computed ONCE) -----
    n_valid = nvalid_ref[0]
    u = jnp.dot(head, wsim_ref[...], preferred_element_type=jnp.float32)     # (1, HID)
    logits = lax.dot_general(u, sent, (((1,), (1,)), ((), ())),
                             preferred_element_type=jnp.float32)             # (1, NS)
    sims = jax.nn.sigmoid(logits + bsim_ref[0])

    col = lax.broadcasted_iota(jnp.int32, (1, NS), 1)
    colf = col.astype(jnp.float32)
    valid = col < n_valid
    validf = valid.astype(jnp.float32)

    sims_m = jnp.where(valid, sims, NEG_BIG)
    mx = jnp.max(sims_m, axis=1, keepdims=True)
    e = jnp.where(valid, jnp.exp(sims - mx), 0.0)
    prob = e / jnp.sum(e, axis=1, keepdims=True)                             # (1, NS)

    highf = jnp.where(jnp.logical_and(sims >= 0.5, valid), 1.0, 0.0)
    lowf = validf - highf
    n_high = jnp.sum(highf)
    n_low = jnp.sum(lowf)
    bigf = jnp.float32(NS)
    amax = jnp.min(jnp.where(jnp.logical_and(sims_m >= mx, valid), colf, bigf))
    sims_lo = jnp.where(valid, sims, -NEG_BIG)
    mn = jnp.min(sims_lo, axis=1, keepdims=True)
    amin = jnp.min(jnp.where(jnp.logical_and(sims_lo <= mn, valid), colf, bigf))
    onehot_max = jnp.where(jnp.abs(colf - amax) < 0.5, 1.0, 0.0)
    onehot_min = jnp.where(jnp.abs(colf - amin) < 0.5, 1.0, 0.0)
    high_sel = jnp.where(n_high > 0.5, highf, onehot_max)
    low_sel = jnp.where(n_low > 0.5, lowf, onehot_min)

    # shared constants / hoisted weight loads for both branches
    r_i = lax.broadcasted_iota(jnp.int32, (NS, NS), 0)
    c_j = lax.broadcasted_iota(jnp.int32, (NS, NS), 1)
    lt = (r_i < c_j).astype(jnp.float32)
    r_if = r_i.astype(jnp.float32)
    row_ids = lax.broadcasted_iota(jnp.int32, (NS, 1), 0)
    wqkv = wqkv_ref[...]
    bqkv = bqkv_ref[...]
    wcat = wcat_ref[...]
    bcat = bcat_ref[...]
    bfeat = bfeat_ref[...]

    def branch(sel, is_high):
        n_sel = (jnp.sum(sel) + 0.5).astype(jnp.int32)
        # compact the selected (prob-scaled) sentence rows to the front:
        # permutation matrix P[d, i] = prob[i] if (i selected and rank(i) == d) else 0
        rank = jnp.dot(sel, lt, preferred_element_type=jnp.float32)          # (1, NS)
        perm = jnp.where(jnp.abs(r_if - rank) < 0.5, sel * prob, 0.0)        # (NS, NS)
        x_sel = jnp.dot(perm, sent, preferred_element_type=jnp.float32)      # (NS, HID)
        row_ok = r_i < n_sel
        col_ok = c_j < n_sel

        # fused Q/K/V for both heads: one (NS, HID) @ (HID, 6*HID) matmul
        qkv = jnp.dot(x_sel, wqkv, preferred_element_type=jnp.float32) + bqkv
        mh_acc = None
        for h in range(ATT_HEAD):
            off = h * 3 * HID
            q = qkv[:, off:off + HID]
            k = qkv[:, off + HID:off + 2 * HID]
            v = qkv[:, off + 2 * HID:off + 3 * HID]
            sim = lax.dot_general(q, k, (((1,), (1,)), ((), ())),
                                  preferred_element_type=jnp.float32)        # (NS, NS)
            simn = (sim if is_high else (1.0 - sim)) * INV_SQRT_D
            simn = jnp.where(row_ok, simn, NEG_BIG)
            smx = jnp.max(simn, axis=0, keepdims=True)                       # softmax dim 0
            es = jnp.where(row_ok, jnp.exp(simn - smx), 0.0)
            w = es / jnp.sum(es, axis=0, keepdims=True)
            w = jnp.where(col_ok, w, 0.0)                                    # drop pad columns
            out_h = jnp.dot(w, v, preferred_element_type=jnp.float32)        # (NS, HID)
            # head-concat + concnate_head_output folded into per-head contributions
            contrib = jnp.dot(out_h, wcat[h * HID:(h + 1) * HID, :],
                              preferred_element_type=jnp.float32)
            mh_acc = contrib if mh_acc is None else mh_acc + contrib
        mh = mh_acc + bcat                                                   # (NS, HID)
        mh = jnp.where(row_ids < n_sel, mh, 0.0)                             # zero pad rows

        # multihead_to_feature_map on the first MAX_SENT rows: independent per-row
        # (1,HID)@(HID,HID) matmuls, tree-summed (no serial accumulation chain).
        parts = [jnp.dot(mh[s:s + 1, :], wfeat_ref[s], preferred_element_type=jnp.float32)
                 for s in range(MAX_SENT)]
        return (parts[0] + parts[1]) + (parts[2] + parts[3]) + bfeat

    high_ref[...] = branch(high_sel, True)
    low_ref[...] = branch(low_sel, False)


# --------------------------------- kernel wrapper ------------------------------------
def _full(shape):
    zeros = (0,) * len(shape)
    return pl.BlockSpec(shape, lambda *_: zeros)


def run_doc_lstm(x_flat, n_valid, p):
    smem = pl.BlockSpec(memory_space=pltpu.MemorySpace.SMEM)
    return pl.pallas_call(
        doc_lstm_kernel,
        out_shape=(jax.ShapeDtypeStruct((1, HID), jnp.float32),
                   jax.ShapeDtypeStruct((1, HID), jnp.float32),
                   jax.ShapeDtypeStruct((1, HID), jnp.float32)),
        grid=(1,),
        in_specs=[
            smem, smem,
            _full((MAX_WORD * N_SEQ_PAD, IN_DIM)),
            _full((IN_DIM, 8 * MEM_DIM)), _full((1, 8 * MEM_DIM)),
            _full((MEM_DIM, 4 * MEM_DIM)), _full((MEM_DIM, 4 * MEM_DIM)),
            _full((HID, HID)),
            _full((HID, ATT_HEAD * 3 * HID)), _full((1, ATT_HEAD * 3 * HID)),
            _full((ATT_HEAD * HID, HID)), _full((1, HID)),
            _full((MAX_SENT, HID, HID)), _full((1, HID)),
        ],
        out_specs=[_full((1, HID)), _full((1, HID)), _full((1, HID))],
    )(n_valid, p['b_sim'], x_flat, p['wih_all'], p['b_all'], p['whh_f'], p['whh_b'],
      p['w_sim_mat'], p['w_qkv'], p['b_qkv'], p['w_cat_t'], p['b_cat'],
      p['w_feat_r'], p['b_feat'])


# ------------------------------------ parameters ------------------------------------
def init_params(key):
    ks = jax.random.split(key, 14)

    def rn(k, shape, scale=0.1):
        return jax.random.normal(k, shape, jnp.float32) * scale

    M = MEM_DIM
    p = {}
    emb = rn(ks[0], (VOCAB, IN_DIM), 0.5)
    p['emb'] = emb.at[0].set(0.0)                         # padding_idx = PAD = 0
    p['word_pad'] = rn(ks[1], (1, IN_DIM), 0.5)           # torch.randn(1, in_dim)
    # BiLSTM fused weights: input projection columns [fwd i,f,g,o | bwd i,f,g,o]
    p['wih_all'] = rn(ks[2], (IN_DIM, 8 * M))
    p['b_all'] = rn(ks[3], (1, 8 * M))                    # bias_ih + bias_hh combined
    p['whh_f'] = rn(ks[4], (M, 4 * M))
    p['whh_b'] = rn(ks[5], (M, 4 * M))
    # sim_head_sent: Linear(HID*HID, 1); weight reshaped to (HID, HID) so that
    # Linear(flatten(outer(h, v))) == h @ W_mat @ v + b
    p['w_sim_mat'] = rn(ks[6], (HID, HID))
    p['b_sim'] = rn(ks[7], (1,))
    # attention heads: fused [Q|K|V] per head stacked along lanes, pre-transposed
    p['w_qkv'] = rn(ks[8], (HID, ATT_HEAD * 3 * HID))
    p['b_qkv'] = rn(ks[9], (1, ATT_HEAD * 3 * HID))
    p['w_cat_t'] = rn(ks[10], (ATT_HEAD * HID, HID))      # concnate_head_output (transposed)
    p['b_cat'] = rn(ks[11], (1, HID))
    # multihead_to_feature_map: (MAX_SENT*HID, HID) reshaped to (MAX_SENT, HID, HID)
    p['w_feat_r'] = rn(ks[12], (MAX_SENT, HID, HID))
    p['b_feat'] = rn(ks[13], (1, HID))
    return p


# ------------------------------------ forward ---------------------------------------
def embed_and_pad(ids, emb, word_pad):
    vecs = emb[jnp.asarray(ids, dtype=jnp.int32)]         # (L, IN_DIM)
    if len(ids) < MAX_WORD:
        pad = jnp.tile(word_pad, (MAX_WORD - len(ids), 1))
        vecs = jnp.concatenate([vecs, pad], axis=0)
    return vecs[:MAX_WORD]


@jax.jit
def device_forward(x_flat, n_valid, params):
    head, high, low = run_doc_lstm(x_flat, n_valid, params)
    # returns (Bi_Head_h, low_sent_feature, high_sent_feature)
    return head[0], low[0], high[0]


def doc_lstm_forward(body, params):
    # headline + body sentences -> padded word-embedding sequences (host-side glue)
    # TODO(synk): variable-length document traversal / embedding gather stays in JAX.
    head_seq = embed_and_pad(body['headline']['rsent'], params['emb'], params['word_pad'])
    sent_seqs = []
    count = 0
    for p_id in body['body_list']:
        count += 1
        if count > MAX_PARA:
            break
        for sent in body['body_list'][p_id]:
            sent_seqs.append(embed_and_pad(sent, params['emb'], params['word_pad']))
    sent_seqs = sent_seqs[:N_SENT_PAD]
    n_valid = len(sent_seqs)                               # real sentence count
    dummy = jnp.tile(params['word_pad'], (MAX_WORD, 1))
    while len(sent_seqs) < N_SENT_PAD:                     # fixed static batch -> one compile
        sent_seqs.append(dummy)
    seqs = sent_seqs + [head_seq]                          # headline at sublane-aligned row 8
    while len(seqs) < N_SEQ_PAD:
        seqs.append(dummy)
    x = jnp.stack(seqs, axis=1)                            # (T, N_SEQ_PAD, IN_DIM)
    x_flat = x.reshape(MAX_WORD * N_SEQ_PAD, IN_DIM)       # time-major rows
    return device_forward(x_flat, jnp.array([n_valid], jnp.int32), params)


# -------------------------------------- main ----------------------------------------
if __name__ == "__main__":
    key = jax.random.PRNGKey(0)
    pkey, dkey = jax.random.split(key)
    params = init_params(pkey)

    # deterministic synthetic document: 1 headline + 2 paragraphs x 2 sentences
    dk = jax.random.split(dkey, 5)

    def words(k, n):
        return [int(w) for w in np.asarray(jax.random.randint(k, (n,), 1, VOCAB))]

    body = {
        'headline': {'rsent': words(dk[0], 6)},
        'body_list': {
            'p1': [words(dk[1], 5), words(dk[2], 8)],
            'p2': [words(dk[3], 7), words(dk[4], 3)],
        },
    }

    bi_head_h, low_feat, high_feat = doc_lstm_forward(body, params)
    jax.block_until_ready((bi_head_h, low_feat, high_feat))

    assert bi_head_h.shape == (HID,)
    assert low_feat.shape == (HID,)
    assert high_feat.shape == (HID,)
    assert bool(jnp.all(jnp.isfinite(bi_head_h)))
    assert bool(jnp.all(jnp.isfinite(low_feat)))
    assert bool(jnp.all(jnp.isfinite(high_feat)))
    print("KERNEL_OK")
</pallas_src>

<mosaic_0001>
module attributes {stable_mosaic.version = 11 : i64} {
  func.func @doc_lstm_kernel(%arg0: i32, %arg1: memref<1xi32, #tpu.memory_space<smem>>, %arg2: memref<1xf32, #tpu.memory_space<smem>>, %arg3: memref<128x16xf32, #tpu.memory_space<vmem>>, %arg4: memref<16x128xf32, #tpu.memory_space<vmem>>, %arg5: memref<1x128xf32, #tpu.memory_space<vmem>>, %arg6: memref<16x64xf32, #tpu.memory_space<vmem>>, %arg7: memref<16x64xf32, #tpu.memory_space<vmem>>, %arg8: memref<32x32xf32, #tpu.memory_space<vmem>>, %arg9: memref<32x192xf32, #tpu.memory_space<vmem>>, %arg10: memref<1x192xf32, #tpu.memory_space<vmem>>, %arg11: memref<64x32xf32, #tpu.memory_space<vmem>>, %arg12: memref<1x32xf32, #tpu.memory_space<vmem>>, %arg13: memref<4x32x32xf32, #tpu.memory_space<vmem>>, %arg14: memref<1x32xf32, #tpu.memory_space<vmem>>, %arg15: memref<1x32xf32, #tpu.memory_space<vmem>>, %arg16: memref<1x32xf32, #tpu.memory_space<vmem>>, %arg17: memref<1x32xf32, #tpu.memory_space<vmem>>) attributes {dimension_semantics = [#tpu.dimension_semantics<arbitrary>], iteration_bounds = array<i64: 1>, scalar_prefetch = 0 : i64, scratch_operands = 0 : i64, tpu.core_type = #tpu.core_type<tc>, window_params = [{transform_indices = @transform_0, window_bounds = array<i64: 1>}, {transform_indices = @transform_1, window_bounds = array<i64: 1>}, {pipeline_mode = #tpu.pipeline_mode<synchronous>, transform_indices = @transform_2, window_bounds = array<i64: 128, 16>}, {pipeline_mode = #tpu.pipeline_mode<synchronous>, transform_indices = @transform_3, window_bounds = array<i64: 16, 128>}, {pipeline_mode = #tpu.pipeline_mode<synchronous>, transform_indices = @transform_4, window_bounds = array<i64: 1, 128>}, {pipeline_mode = #tpu.pipeline_mode<synchronous>, transform_indices = @transform_5, window_bounds = array<i64: 16, 64>}, {pipeline_mode = #tpu.pipeline_mode<synchronous>, transform_indices = @transform_6, window_bounds = array<i64: 16, 64>}, {pipeline_mode = #tpu.pipeline_mode<synchronous>, transform_indices = @transform_7, window_bounds = array<i64: 32, 32>}, {pipeline_mode = #tpu.pipeline_mode<synchronous>, transform_indices = @transform_8, window_bounds = array<i64: 32, 192>}, {pipeline_mode = #tpu.pipeline_mode<synchronous>, transform_indices = @transform_9, window_bounds = array<i64: 1, 192>}, {pipeline_mode = #tpu.pipeline_mode<synchronous>, transform_indices = @transform_10, window_bounds = array<i64: 64, 32>}, {pipeline_mode = #tpu.pipeline_mode<synchronous>, transform_indices = @transform_11, window_bounds = array<i64: 1, 32>}, {pipeline_mode = #tpu.pipeline_mode<synchronous>, transform_indices = @transform_12, window_bounds = array<i64: 4, 32, 32>}, {pipeline_mode = #tpu.pipeline_mode<synchronous>, transform_indices = @transform_13, window_bounds = array<i64: 1, 32>}, {pipeline_mode = #tpu.pipeline_mode<synchronous>, transform_indices = @transform_14, window_bounds = array<i64: 1, 32>}, {pipeline_mode = #tpu.pipeline_mode<synchronous>, transform_indices = @transform_15, window_bounds = array<i64: 1, 32>}, {pipeline_mode = #tpu.pipeline_mode<synchronous>, transform_indices = @transform_16, window_bounds = array<i64: 1, 32>}]} {
    %c0 = arith.constant 0 : index
    %c0_0 = arith.constant 0 : index
    %0 = vector.load %arg3[%c0, %c0_0] : memref<128x16xf32, #tpu.memory_space<vmem>>, vector<128x16xf32>
    %c0_1 = arith.constant 0 : index
    %c0_2 = arith.constant 0 : index
    %1 = vector.load %arg4[%c0_1, %c0_2] : memref<16x128xf32, #tpu.memory_space<vmem>>, vector<16x128xf32>
    %cst = arith.constant dense<0.000000e+00> : vector<128x128xf32>
    %2 = tpu.matmul %0, %1, %cst {dimension_numbers = #tpu.dot_dimension_numbers<[1], [0], [0], [1], [0, 0, 1, 1], [], []>} : vector<128x16xf32>, vector<16x128xf32>, vector<128x128xf32> -> vector<128x128xf32>
    %c0_3 = arith.constant 0 : index
    %c0_4 = arith.constant 0 : index
    %3 = vector.load %arg5[%c0_3, %c0_4] : memref<1x128xf32, #tpu.memory_space<vmem>>, vector<1x128xf32>
    %4 = vector.broadcast %3 : vector<1x128xf32> to vector<128x128xf32>
    %5 = arith.addf %2, %4 : vector<128x128xf32>
    %6 = vector.extract_strided_slice %5 {offsets = [0, 0], sizes = [128, 64], strides = [1, 1]} : vector<128x128xf32> to vector<128x64xf32>
    %7 = vector.extract_strided_slice %5 {offsets = [0, 64], sizes = [128, 64], strides = [1, 1]} : vector<128x128xf32> to vector<128x64xf32>
    %c0_5 = arith.constant 0 : index
    %c0_6 = arith.constant 0 : index
    %8 = vector.load %arg6[%c0_5, %c0_6] : memref<16x64xf32, #tpu.memory_space<vmem>>, vector<16x64xf32>
    %c0_7 = arith.constant 0 : index
    %c0_8 = arith.constant 0 : index
    %9 = vector.load %arg7[%c0_7, %c0_8] : memref<16x64xf32, #tpu.memory_space<vmem>>, vector<16x64xf32>
    %cst_9 = arith.constant 0.000000e+00 : f32
    %10 = vector.broadcast %cst_9 : f32 to vector<16x16xf32>
    %cst_10 = arith.constant 0.000000e+00 : f32
    %11 = vector.broadcast %cst_10 : f32 to vector<16x16xf32>
    %cst_11 = arith.constant 0.000000e+00 : f32
    %12 = vector.broadcast %cst_11 : f32 to vector<16x16xf32>
    %cst_12 = arith.constant 0.000000e+00 : f32
    %13 = vector.broadcast %cst_12 : f32 to vector<16x16xf32>
    %14 = vector.extract_strided_slice %6 {offsets = [0, 0], sizes = [16, 64], strides = [1, 1]} : vector<128x64xf32> to vector<16x64xf32>
    %cst_13 = arith.constant dense<0.000000e+00> : vector<16x64xf32>
    %15 = tpu.matmul %10, %8, %cst_13 {dimension_numbers = #tpu.dot_dimension_numbers<[1], [0], [0], [1], [0, 0, 1, 1], [], []>} : vector<16x16xf32>, vector<16x64xf32>, vector<16x64xf32> -> vector<16x64xf32>
    %16 = arith.addf %14, %15 : vector<16x64xf32>
    %17 = vector.extract_strided_slice %7 {offsets = [112, 0], sizes = [16, 64], strides = [1, 1]} : vector<128x64xf32> to vector<16x64xf32>
    %cst_14 = arith.constant dense<0.000000e+00> : vector<16x64xf32>
    %18 = tpu.matmul %12, %9, %cst_14 {dimension_numbers = #tpu.dot_dimension_numbers<[1], [0], [0], [1], [0, 0, 1, 1], [], []>} : vector<16x16xf32>, vector<16x64xf32>, vector<16x64xf32> -> vector<16x64xf32>
    %19 = arith.addf %17, %18 : vector<16x64xf32>
    %20 = vector.extract_strided_slice %16 {offsets = [0, 0], sizes = [16, 16], strides = [1, 1]} : vector<16x64xf32> to vector<16x16xf32>
    %21 = arith.negf %20 : vector<16x16xf32>
    %22 = math.exp %21 : vector<16x16xf32>
    %cst_15 = arith.constant 1.000000e+00 : f32
    %23 = vector.broadcast %cst_15 : f32 to vector<16x16xf32>
    %24 = arith.addf %23, %22 : vector<16x16xf32>
    %25 = arith.divf %23, %24 : vector<16x16xf32>
    %26 = vector.extract_strided_slice %16 {offsets = [0, 16], sizes = [16, 16], strides = [1, 1]} : vector<16x64xf32> to vector<16x16xf32>
    %27 = arith.negf %26 : vector<16x16xf32>
    %28 = math.exp %27 : vector<16x16xf32>
    %cst_16 = arith.constant 1.000000e+00 : f32
    %29 = vector.broadcast %cst_16 : f32 to vector<16x16xf32>
    %30 = arith.addf %29, %28 : vector<16x16xf32>
    %31 = arith.divf %29, %30 : vector<16x16xf32>
    %32 = vector.extract_strided_slice %16 {offsets = [0, 32], sizes = [16, 16], strides = [1, 1]} : vector<16x64xf32> to vector<16x16xf32>
    %33 = math.tanh %32 : vector<16x16xf32>
    %34 = vector.extract_strided_slice %16 {offsets = [0, 48], sizes = [16, 16], strides = [1, 1]} : vector<16x64xf32> to vector<16x16xf32>
    %35 = arith.negf %34 : vector<16x16xf32>
    %36 = math.exp %35 : vector<16x16xf32>
    %cst_17 = arith.constant 1.000000e+00 : f32
    %37 = vector.broadcast %cst_17 : f32 to vector<16x16xf32>
    %38 = arith.addf %37, %36 : vector<16x16xf32>
    %39 = arith.divf %37, %38 : vector<16x16xf32>
    %40 = arith.mulf %31, %11 : vector<16x16xf32>
    %41 = arith.mulf %25, %33 : vector<16x16xf32>
    %42 = arith.addf %40, %41 : vector<16x16xf32>
    %43 = math.tanh %42 : vector<16x16xf32>
    %44 = arith.mulf %39, %43 : vector<16x16xf32>
    %45 = vector.extract_strided_slice %19 {offsets = [0, 0], sizes = [16, 16], strides = [1, 1]} : vector<16x64xf32> to vector<16x16xf32>
    %46 = arith.negf %45 : vector<16x16xf32>
    %47 = math.exp %46 : vector<16x16xf32>
    %cst_18 = arith.constant 1.000000e+00 : f32
    %48 = vector.broadcast %cst_18 : f32 to vector<16x16xf32>
    %49 = arith.addf %48, %47 : vector<16x16xf32>
    %50 = arith.divf %48, %49 : vector<16x16xf32>
    %51 = vector.extract_strided_slice %19 {offsets = [0, 16], sizes = [16, 16], strides = [1, 1]} : vector<16x64xf32> to vector<16x16xf32>
    %52 = arith.negf %51 : vector<16x16xf32>
    %53 = math.exp %52 : vector<16x16xf32>
    %cst_19 = arith.constant 1.000000e+00 : f32
    %54 = vector.broadcast %cst_19 : f32 to vector<16x16xf32>
    %55 = arith.addf %54, %53 : vector<16x16xf32>
    %56 = arith.divf %54, %55 : vector<16x16xf32>
    %57 = vector.extract_strided_slice %19 {offsets = [0, 32], sizes = [16, 16], strides = [1, 1]} : vector<16x64xf32> to vector<16x16xf32>
    %58 = math.tanh %57 : vector<16x16xf32>
    %59 = vector.extract_strided_slice %19 {offsets = [0, 48], sizes = [16, 16], strides = [1, 1]} : vector<16x64xf32> to vector<16x16xf32>
    %60 = arith.negf %59 : vector<16x16xf32>
    %61 = math.exp %60 : vector<16x16xf32>
    %cst_20 = arith.constant 1.000000e+00 : f32
    %62 = vector.broadcast %cst_20 : f32 to vector<16x16xf32>
    %63 = arith.addf %62, %61 : vector<16x16xf32>
    %64 = arith.divf %62, %63 : vector<16x16xf32>
    %65 = arith.mulf %56, %13 : vector<16x16xf32>
    %66 = arith.mulf %50, %58 : vector<16x16xf32>
    %67 = arith.addf %65, %66 : vector<16x16xf32>
    %68 = math.tanh %67 : vector<16x16xf32>
    %69 = arith.mulf %64, %68 : vector<16x16xf32>
    %70 = vector.extract_strided_slice %6 {offsets = [16, 0], sizes = [16, 64], strides = [1, 1]} : vector<128x64xf32> to vector<16x64xf32>
    %cst_21 = arith.constant dense<0.000000e+00> : vector<16x64xf32>
    %71 = tpu.matmul %44, %8, %cst_21 {dimension_numbers = #tpu.dot_dimension_numbers<[1], [0], [0], [1], [0, 0, 1, 1], [], []>} : vector<16x16xf32>, vector<16x64xf32>, vector<16x64xf32> -> vector<16x64xf32>
    %72 = arith.addf %70, %71 : vector<16x64xf32>
    %73 = vector.extract_strided_slice %7 {offsets = [96, 0], sizes = [16, 64], strides = [1, 1]} : vector<128x64xf32> to vector<16x64xf32>
    %cst_22 = arith.constant dense<0.000000e+00> : vector<16x64xf32>
    %74 = tpu.matmul %69, %9, %cst_22 {dimension_numbers = #tpu.dot_dimension_numbers<[1], [0], [0], [1], [0, 0, 1, 1], [], []>} : vector<16x16xf32>, vector<16x64xf32>, vector<16x64xf32> -> vector<16x64xf32>
    %75 = arith.addf %73, %74 : vector<16x64xf32>
    %76 = vector.extract_strided_slice %72 {offsets = [0, 0], sizes = [16, 16], strides = [1, 1]} : vector<16x64xf32> to vector<16x16xf32>
    %77 = arith.negf %76 : vector<16x16xf32>
    %78 = math.exp %77 : vector<16x16xf32>
    %cst_23 = arith.constant 1.000000e+00 : f32
    %79 = vector.broadcast %cst_23 : f32 to vector<16x16xf32>
    %80 = arith.addf %79, %78 : vector<16x16xf32>
    %81 = arith.divf %79, %80 : vector<16x16xf32>
    %82 = vector.extract_strided_slice %72 {offsets = [0, 16], sizes = [16, 16], strides = [1, 1]} : vector<16x64xf32> to vector<16x16xf32>
    %83 = arith.negf %82 : vector<16x16xf32>
    %84 = math.exp %83 : vector<16x16xf32>
    %cst_24 = arith.constant 1.000000e+00 : f32
    %85 = vector.broadcast %cst_24 : f32 to vector<16x16xf32>
    %86 = arith.addf %85, %84 : vector<16x16xf32>
    %87 = arith.divf %85, %86 : vector<16x16xf32>
    %88 = vector.extract_strided_slice %72 {offsets = [0, 32], sizes = [16, 16], strides = [1, 1]} : vector<16x64xf32> to vector<16x16xf32>
    %89 = math.tanh %88 : vector<16x16xf32>
    %90 = vector.extract_strided_slice %72 {offsets = [0, 48], sizes = [16, 16], strides = [1, 1]} : vector<16x64xf32> to vector<16x16xf32>
    %91 = arith.negf %90 : vector<16x16xf32>
    %92 = math.exp %91 : vector<16x16xf32>
    %cst_25 = arith.constant 1.000000e+00 : f32
    %93 = vector.broadcast %cst_25 : f32 to vector<16x16xf32>
    %94 = arith.addf %93, %92 : vector<16x16xf32>
    %95 = arith.divf %93, %94 : vector<16x16xf32>
    %96 = arith.mulf %87, %42 : vector<16x16xf32>
    %97 = arith.mulf %81, %89 : vector<16x16xf32>
    %98 = arith.addf %96, %97 : vector<16x16xf32>
    %99 = math.tanh %98 : vector<16x16xf32>
    %100 = arith.mulf %95, %99 : vector<16x16xf32>
    %101 = vector.extract_strided_slice %75 {offsets = [0, 0], sizes = [16, 16], strides = [1, 1]} : vector<16x64xf32> to vector<16x16xf32>
    %102 = arith.negf %101 : vector<16x16xf32>
    %103 = math.exp %102 : vector<16x16xf32>
    %cst_26 = arith.constant 1.000000e+00 : f32
    %104 = vector.broadcast %cst_26 : f32 to vector<16x16xf32>
    %105 = arith.addf %104, %103 : vector<16x16xf32>
    %106 = arith.divf %104, %105 : vector<16x16xf32>
    %107 = vector.extract_strided_slice %75 {offsets = [0, 16], sizes = [16, 16], strides = [1, 1]} : vector<16x64xf32> to vector<16x16xf32>
    %108 = arith.negf %107 : vector<16x16xf32>
    %109 = math.exp %108 : vector<16x16xf32>
    %cst_27 = arith.constant 1.000000e+00 : f32
    %110 = vector.broadcast %cst_27 : f32 to vector<16x16xf32>
    %111 = arith.addf %110, %109 : vector<16x16xf32>
    %112 = arith.divf %110, %111 : vector<16x16xf32>
    %113 = vector.extract_strided_slice %75 {offsets = [0, 32], sizes = [16, 16], strides = [1, 1]} : vector<16x64xf32> to vector<16x16xf32>
    %114 = math.tanh %113 : vector<16x16xf32>
    %115 = vector.extract_strided_slice %75 {offsets = [0, 48], sizes = [16, 16], strides = [1, 1]} : vector<16x64xf32> to vector<16x16xf32>
    %116 = arith.negf %115 : vector<16x16xf32>
    %117 = math.exp %116 : vector<16x16xf32>
    %cst_28 = arith.constant 1.000000e+00 : f32
    %118 = vector.broadcast %cst_28 : f32 to vector<16x16xf32>
    %119 = arith.addf %118, %117 : vector<16x16xf32>
    %120 = arith.divf %118, %119 : vector<16x16xf32>
    %121 = arith.mulf %112, %67 : vector<16x16xf32>
    %122 = arith.mulf %106, %114 : vector<16x16xf32>
    %123 = arith.addf %121, %122 : vector<16x16xf32>
    %124 = math.tanh %123 : vector<16x16xf32>
    %125 = arith.mulf %120, %124 : vector<16x16xf32>
    %126 = vector.extract_strided_slice %6 {offsets = [32, 0], sizes = [16, 64], strides = [1, 1]} : vector<128x64xf32> to vector<16x64xf32>
    %cst_29 = arith.constant dense<0.000000e+00> : vector<16x64xf32>
    %127 = tpu.matmul %100, %8, %cst_29 {dimension_numbers = #tpu.dot_dimension_numbers<[1], [0], [0], [1], [0, 0, 1, 1], [], []>} : vector<16x16xf32>, vector<16x64xf32>, vector<16x64xf32> -> vector<16x64xf32>
    %128 = arith.addf %126, %127 : vector<16x64xf32>
    %129 = vector.extract_strided_slice %7 {offsets = [80, 0], sizes = [16, 64], strides = [1, 1]} : vector<128x64xf32> to vector<16x64xf32>
    %cst_30 = arith.constant dense<0.000000e+00> : vector<16x64xf32>
    %130 = tpu.matmul %125, %9, %cst_30 {dimension_numbers = #tpu.dot_dimension_numbers<[1], [0], [0], [1], [0, 0, 1, 1], [], []>} : vector<16x16xf32>, vector<16x64xf32>, vector<16x64xf32> -> vector<16x64xf32>
    %131 = arith.addf %129, %130 : vector<16x64xf32>
    %132 = vector.extract_strided_slice %128 {offsets = [0, 0], sizes = [16, 16], strides = [1, 1]} : vector<16x64xf32> to vector<16x16xf32>
    %133 = arith.negf %132 : vector<16x16xf32>
    %134 = math.exp %133 : vector<16x16xf32>
    %cst_31 = arith.constant 1.000000e+00 : f32
    %135 = vector.broadcast %cst_31 : f32 to vector<16x16xf32>
    %136 = arith.addf %135, %134 : vector<16x16xf32>
    %137 = arith.divf %135, %136 : vector<16x16xf32>
    %138 = vector.extract_strided_slice %128 {offsets = [0, 16], sizes = [16, 16], strides = [1, 1]} : vector<16x64xf32> to vector<16x16xf32>
    %139 = arith.negf %138 : vector<16x16xf32>
    %140 = math.exp %139 : vector<16x16xf32>
    %cst_32 = arith.constant 1.000000e+00 : f32
    %141 = vector.broadcast %cst_32 : f32 to vector<16x16xf32>
    %142 = arith.addf %141, %140 : vector<16x16xf32>
    %143 = arith.divf %141, %142 : vector<16x16xf32>
    %144 = vector.extract_strided_slice %128 {offsets = [0, 32], sizes = [16, 16], strides = [1, 1]} : vector<16x64xf32> to vector<16x16xf32>
    %145 = math.tanh %144 : vector<16x16xf32>
    %146 = vector.extract_strided_slice %128 {offsets = [0, 48], sizes = [16, 16], strides = [1, 1]} : vector<16x64xf32> to vector<16x16xf32>
    %147 = arith.negf %146 : vector<16x16xf32>
    %148 = math.exp %147 : vector<16x16xf32>
    %cst_33 = arith.constant 1.000000e+00 : f32
    %149 = vector.broadcast %cst_33 : f32 to vector<16x16xf32>
    %150 = arith.addf %149, %148 : vector<16x16xf32>
    %151 = arith.divf %149, %150 : vector<16x16xf32>
    %152 = arith.mulf %143, %98 : vector<16x16xf32>
    %153 = arith.mulf %137, %145 : vector<16x16xf32>
    %154 = arith.addf %152, %153 : vector<16x16xf32>
    %155 = math.tanh %154 : vector<16x16xf32>
    %156 = arith.mulf %151, %155 : vector<16x16xf32>
    %157 = vector.extract_strided_slice %131 {offsets = [0, 0], sizes = [16, 16], strides = [1, 1]} : vector<16x64xf32> to vector<16x16xf32>
    %158 = arith.negf %157 : vector<16x16xf32>
    %159 = math.exp %158 : vector<16x16xf32>
    %cst_34 = arith.constant 1.000000e+00 : f32
    %160 = vector.broadcast %cst_34 : f32 to vector<16x16xf32>
    %161 = arith.addf %160, %159 : vector<16x16xf32>
    %162 = arith.divf %160, %161 : vector<16x16xf32>
    %163 = vector.extract_strided_slice %131 {offsets = [0, 16], sizes = [16, 16], strides = [1, 1]} : vector<16x64xf32> to vector<16x16xf32>
    %164 = arith.negf %163 : vector<16x16xf32>
    %165 = math.exp %164 : vector<16x16xf32>
    %cst_35 = arith.constant 1.000000e+00 : f32
    %166 = vector.broadcast %cst_35 : f32 to vector<16x16xf32>
    %167 = arith.addf %166, %165 : vector<16x16xf32>
    %168 = arith.divf %166, %167 : vector<16x16xf32>
    %169 = vector.extract_strided_slice %131 {offsets = [0, 32], sizes = [16, 16], strides = [1, 1]} : vector<16x64xf32> to vector<16x16xf32>
    %170 = math.tanh %169 : vector<16x16xf32>
    %171 = vector.extract_strided_slice %131 {offsets = [0, 48], sizes = [16, 16], strides = [1, 1]} : vector<16x64xf32> to vector<16x16xf32>
    %172 = arith.negf %171 : vector<16x16xf32>
    %173 = math.exp %172 : vector<16x16xf32>
    %cst_36 = arith.constant 1.000000e+00 : f32
    %174 = vector.broadcast %cst_36 : f32 to vector<16x16xf32>
    %175 = arith.addf %174, %173 : vector<16x16xf32>
    %176 = arith.divf %174, %175 : vector<16x16xf32>
    %177 = arith.mulf %168, %123 : vector<16x16xf32>
    %178 = arith.mulf %162, %170 : vector<16x16xf32>
    %179 = arith.addf %177, %178 : vector<16x16xf32>
    %180 = math.tanh %179 : vector<16x16xf32>
    %181 = arith.mulf %176, %180 : vector<16x16xf32>
    %182 = vector.extract_strided_slice %6 {offsets = [48, 0], sizes = [16, 64], strides = [1, 1]} : vector<128x64xf32> to vector<16x64xf32>
    %cst_37 = arith.constant dense<0.000000e+00> : vector<16x64xf32>
    %183 = tpu.matmul %156, %8, %cst_37 {dimension_numbers = #tpu.dot_dimension_numbers<[1], [0], [0], [1], [0, 0, 1, 1], [], []>} : vector<16x16xf32>, vector<16x64xf32>, vector<16x64xf32> -> vector<16x64xf32>
    %184 = arith.addf %182, %183 : vector<16x64xf32>
    %185 = vector.extract_strided_slice %7 {offsets = [64, 0], sizes = [16, 64], strides = [1, 1]} : vector<128x64xf32> to vector<16x64xf32>
    %cst_38 = arith.constant dense<0.000000e+00> : vector<16x64xf32>
    %186 = tpu.matmul %181, %9, %cst_38 {dimension_numbers = #tpu.dot_dimension_numbers<[1], [0], [0], [1], [0, 0, 1, 1], [], []>} : vector<16x16xf32>, vector<16x64xf32>, vector<16x64xf32> -> vector<16x64xf32>
    %187 = arith.addf %185, %186 : vector<16x64xf32>
    %188 = vector.extract_strided_slice %184 {offsets = [0, 0], sizes = [16, 16], strides = [1, 1]} : vector<16x64xf32> to vector<16x16xf32>
    %189 = arith.negf %188 : vector<16x16xf32>
    %190 = math.exp %189 : vector<16x16xf32>
    %cst_39 = arith.constant 1.000000e+00 : f32
    %191 = vector.broadcast %cst_39 : f32 to vector<16x16xf32>
    %192 = arith.addf %191, %190 : vector<16x16xf32>
    %193 = arith.divf %191, %192 : vector<16x16xf32>
    %194 = vector.extract_strided_slice %184 {offsets = [0, 16], sizes = [16, 16], strides = [1, 1]} : vector<16x64xf32> to vector<16x16xf32>
    %195 = arith.negf %194 : vector<16x16xf32>
    %196 = math.exp %195 : vector<16x16xf32>
    %cst_40 = arith.constant 1.000000e+00 : f32
    %197 = vector.broadcast %cst_40 : f32 to vector<16x16xf32>
    %198 = arith.addf %197, %196 : vector<16x16xf32>
    %199 = arith.divf %197, %198 : vector<16x16xf32>
    %200 = vector.extract_strided_slice %184 {offsets = [0, 32], sizes = [16, 16], strides = [1, 1]} : vector<16x64xf32> to vector<16x16xf32>
    %201 = math.tanh %200 : vector<16x16xf32>
    %202 = vector.extract_strided_slice %184 {offsets = [0, 48], sizes = [16, 16], strides = [1, 1]} : vector<16x64xf32> to vector<16x16xf32>
    %203 = arith.negf %202 : vector<16x16xf32>
    %204 = math.exp %203 : vector<16x16xf32>
    %cst_41 = arith.constant 1.000000e+00 : f32
    %205 = vector.broadcast %cst_41 : f32 to vector<16x16xf32>
    %206 = arith.addf %205, %204 : vector<16x16xf32>
    %207 = arith.divf %205, %206 : vector<16x16xf32>
    %208 = arith.mulf %199, %154 : vector<16x16xf32>
    %209 = arith.mulf %193, %201 : vector<16x16xf32>
    %210 = arith.addf %208, %209 : vector<16x16xf32>
    %211 = math.tanh %210 : vector<16x16xf32>
    %212 = arith.mulf %207, %211 : vector<16x16xf32>
    %213 = vector.extract_strided_slice %187 {offsets = [0, 0], sizes = [16, 16], strides = [1, 1]} : vector<16x64xf32> to vector<16x16xf32>
    %214 = arith.negf %213 : vector<16x16xf32>
    %215 = math.exp %214 : vector<16x16xf32>
    %cst_42 = arith.constant 1.000000e+00 : f32
    %216 = vector.broadcast %cst_42 : f32 to vector<16x16xf32>
    %217 = arith.addf %216, %215 : vector<16x16xf32>
    %218 = arith.divf %216, %217 : vector<16x16xf32>
    %219 = vector.extract_strided_slice %187 {offsets = [0, 16], sizes = [16, 16], strides = [1, 1]} : vector<16x64xf32> to vector<16x16xf32>
    %220 = arith.negf %219 : vector<16x16xf32>
    %221 = math.exp %220 : vector<16x16xf32>
    %cst_43 = arith.constant 1.000000e+00 : f32
    %222 = vector.broadcast %cst_43 : f32 to vector<16x16xf32>
    %223 = arith.addf %222, %221 : vector<16x16xf32>
    %224 = arith.divf %222, %223 : vector<16x16xf32>
    %225 = vector.extract_strided_slice %187 {offsets = [0, 32], sizes = [16, 16], strides = [1, 1]} : vector<16x64xf32> to vector<16x16xf32>
    %226 = math.tanh %225 : vector<16x16xf32>
    %227 = vector.extract_strided_slice %187 {offsets = [0, 48], sizes = [16, 16], strides = [1, 1]} : vector<16x64xf32> to vector<16x16xf32>
    %228 = arith.negf %227 : vector<16x16xf32>
    %229 = math.exp %228 : vector<16x16xf32>
    %cst_44 = arith.constant 1.000000e+00 : f32
    %230 = vector.broadcast %cst_44 : f32 to vector<16x16xf32>
    %231 = arith.addf %230, %229 : vector<16x16xf32>
    %232 = arith.divf %230, %231 : vector<16x16xf32>
    %233 = arith.mulf %224, %179 : vector<16x16xf32>
    %234 = arith.mulf %218, %226 : vector<16x16xf32>
    %235 = arith.addf %233, %234 : vector<16x16xf32>
    %236 = math.tanh %235 : vector<16x16xf32>
    %237 = arith.mulf %232, %236 : vector<16x16xf32>
    %238 = vector.extract_strided_slice %6 {offsets = [64, 0], sizes = [16, 64], strides = [1, 1]} : vector<128x64xf32> to vector<16x64xf32>
    %cst_45 = arith.constant dense<0.000000e+00> : vector<16x64xf32>
    %239 = tpu.matmul %212, %8, %cst_45 {dimension_numbers = #tpu.dot_dimension_numbers<[1], [0], [0], [1], [0, 0, 1, 1], [], []>} : vector<16x16xf32>, vector<16x64xf32>, vector<16x64xf32> -> vector<16x64xf32>
    %240 = arith.addf %238, %239 : vector<16x64xf32>
    %241 = vector.extract_strided_slice %7 {offsets = [48, 0], sizes = [16, 64], strides = [1, 1]} : vector<128x64xf32> to vector<16x64xf32>
    %cst_46 = arith.constant dense<0.000000e+00> : vector<16x64xf32>
    %242 = tpu.matmul %237, %9, %cst_46 {dimension_numbers = #tpu.dot_dimension_numbers<[1], [0], [0], [1], [0, 0, 1, 1], [], []>} : vector<16x16xf32>, vector<16x64xf32>, vector<16x64xf32> -> vector<16x64xf32>
    %243 = arith.addf %241, %242 : vector<16x64xf32>
    %244 = vector.extract_strided_slice %240 {offsets = [0, 0], sizes = [16, 16], strides = [1, 1]} : vector<16x64xf32> to vector<16x16xf32>
    %245 = arith.negf %244 : vector<16x16xf32>
    %246 = math.exp %245 : vector<16x16xf32>
    %cst_47 = arith.constant 1.000000e+00 : f32
    %247 = vector.broadcast %cst_47 : f32 to vector<16x16xf32>
    %248 = arith.addf %247, %246 : vector<16x16xf32>
    %249 = arith.divf %247, %248 : vector<16x16xf32>
    %250 = vector.extract_strided_slice %240 {offsets = [0, 16], sizes = [16, 16], strides = [1, 1]} : vector<16x64xf32> to vector<16x16xf32>
    %251 = arith.negf %250 : vector<16x16xf32>
    %252 = math.exp %251 : vector<16x16xf32>
    %cst_48 = arith.constant 1.000000e+00 : f32
    %253 = vector.broadcast %cst_48 : f32 to vector<16x16xf32>
    %254 = arith.addf %253, %252 : vector<16x16xf32>
    %255 = arith.divf %253, %254 : vector<16x16xf32>
    %256 = vector.extract_strided_slice %240 {offsets = [0, 32], sizes = [16, 16], strides = [1, 1]} : vector<16x64xf32> to vector<16x16xf32>
    %257 = math.tanh %256 : vector<16x16xf32>
    %258 = vector.extract_strided_slice %240 {offsets = [0, 48], sizes = [16, 16], strides = [1, 1]} : vector<16x64xf32> to vector<16x16xf32>
    %259 = arith.negf %258 : vector<16x16xf32>
    %260 = math.exp %259 : vector<16x16xf32>
    %cst_49 = arith.constant 1.000000e+00 : f32
    %261 = vector.broadcast %cst_49 : f32 to vector<16x16xf32>
    %262 = arith.addf %261, %260 : vector<16x16xf32>
    %263 = arith.divf %261, %262 : vector<16x16xf32>
    %264 = arith.mulf %255, %210 : vector<16x16xf32>
    %265 = arith.mulf %249, %257 : vector<16x16xf32>
    %266 = arith.addf %264, %265 : vector<16x16xf32>
    %267 = math.tanh %266 : vector<16x16xf32>
    %268 = arith.mulf %263, %267 : vector<16x16xf32>
    %269 = vector.extract_strided_slice %243 {offsets = [0, 0], sizes = [16, 16], strides = [1, 1]} : vector<16x64xf32> to vector<16x16xf32>
    %270 = arith.negf %269 : vector<16x16xf32>
    %271 = math.exp %270 : vector<16x16xf32>
    %cst_50 = arith.constant 1.000000e+00 : f32
    %272 = vector.broadcast %cst_50 : f32 to vector<16x16xf32>
    %273 = arith.addf %272, %271 : vector<16x16xf32>
    %274 = arith.divf %272, %273 : vector<16x16xf32>
    %275 = vector.extract_strided_slice %243 {offsets = [0, 16], sizes = [16, 16], strides = [1, 1]} : vector<16x64xf32> to vector<16x16xf32>
    %276 = arith.negf %275 : vector<16x16xf32>
    %277 = math.exp %276 : vector<16x16xf32>
    %cst_51 = arith.constant 1.000000e+00 : f32
    %278 = vector.broadcast %cst_51 : f32 to vector<16x16xf32>
    %279 = arith.addf %278, %277 : vector<16x16xf32>
    %280 = arith.divf %278, %279 : vector<16x16xf32>
    %281 = vector.extract_strided_slice %243 {offsets = [0, 32], sizes = [16, 16], strides = [1, 1]} : vector<16x64xf32> to vector<16x16xf32>
    %282 = math.tanh %281 : vector<16x16xf32>
    %283 = vector.extract_strided_slice %243 {offsets = [0, 48], sizes = [16, 16], strides = [1, 1]} : vector<16x64xf32> to vector<16x16xf32>
    %284 = arith.negf %283 : vector<16x16xf32>
    %285 = math.exp %284 : vector<16x16xf32>
    %cst_52 = arith.constant 1.000000e+00 : f32
    %286 = vector.broadcast %cst_52 : f32 to vector<16x16xf32>
    %287 = arith.addf %286, %285 : vector<16x16xf32>
    %288 = arith.divf %286, %287 : vector<16x16xf32>
    %289 = arith.mulf %280, %235 : vector<16x16xf32>
    %290 = arith.mulf %274, %282 : vector<16x16xf32>
    %291 = arith.addf %289, %290 : vector<16x16xf32>
    %292 = math.tanh %291 : vector<16x16xf32>
    %293 = arith.mulf %288, %292 : vector<16x16xf32>
    %294 = vector.extract_strided_slice %6 {offsets = [80, 0], sizes = [16, 64], strides = [1, 1]} : vector<128x64xf32> to vector<16x64xf32>
    %cst_53 = arith.constant dense<0.000000e+00> : vector<16x64xf32>
    %295 = tpu.matmul %268, %8, %cst_53 {dimension_numbers = #tpu.dot_dimension_numbers<[1], [0], [0], [1], [0, 0, 1, 1], [], []>} : vector<16x16xf32>, vector<16x64xf32>, vector<16x64xf32> -> vector<16x64xf32>
    %296 = arith.addf %294, %295 : vector<16x64xf32>
    %297 = vector.extract_strided_slice %7 {offsets = [32, 0], sizes = [16, 64], strides = [1, 1]} : vector<128x64xf32> to vector<16x64xf32>
    %cst_54 = arith.constant dense<0.000000e+00> : vector<16x64xf32>
    %298 = tpu.matmul %293, %9, %cst_54 {dimension_numbers = #tpu.dot_dimension_numbers<[1], [0], [0], [1], [0, 0, 1, 1], [], []>} : vector<16x16xf32>, vector<16x64xf32>, vector<16x64xf32> -> vector<16x64xf32>
    %299 = arith.addf %297, %298 : vector<16x64xf32>
    %300 = vector.extract_strided_slice %296 {offsets = [0, 0], sizes = [16, 16], strides = [1, 1]} : vector<16x64xf32> to vector<16x16xf32>
    %301 = arith.negf %300 : vector<16x16xf32>
    %302 = math.exp %301 : vector<16x16xf32>
    %cst_55 = arith.constant 1.000000e+00 : f32
    %303 = vector.broadcast %cst_55 : f32 to vector<16x16xf32>
    %304 = arith.addf %303, %302 : vector<16x16xf32>
    %305 = arith.divf %303, %304 : vector<16x16xf32>
    %306 = vector.extract_strided_slice %296 {offsets = [0, 16], sizes = [16, 16], strides = [1, 1]} : vector<16x64xf32> to vector<16x16xf32>
    %307 = arith.negf %306 : vector<16x16xf32>
    %308 = math.exp %307 : vector<16x16xf32>
    %cst_56 = arith.constant 1.000000e+00 : f32
    %309 = vector.broadcast %cst_56 : f32 to vector<16x16xf32>
    %310 = arith.addf %309, %308 : vector<16x16xf32>
    %311 = arith.divf %309, %310 : vector<16x16xf32>
    %312 = vector.extract_strided_slice %296 {offsets = [0, 32], sizes = [16, 16], strides = [1, 1]} : vector<16x64xf32> to vector<16x16xf32>
    %313 = math.tanh %312 : vector<16x16xf32>
    %314 = vector.extract_strided_slice %296 {offsets = [0, 48], sizes = [16, 16], strides = [1, 1]} : vector<16x64xf32> to vector<16x16xf32>
    %315 = arith.negf %314 : vector<16x16xf32>
    %316 = math.exp %315 : vector<16x16xf32>
    %cst_57 = arith.constant 1.000000e+00 : f32
    %317 = vector.broadcast %cst_57 : f32 to vector<16x16xf32>
    %318 = arith.addf %317, %316 : vector<16x16xf32>
    %319 = arith.divf %317, %318 : vector<16x16xf32>
    %320 = arith.mulf %311, %266 : vector<16x16xf32>
    %321 = arith.mulf %305, %313 : vector<16x16xf32>
    %322 = arith.addf %320, %321 : vector<16x16xf32>
    %323 = math.tanh %322 : vector<16x16xf32>
    %324 = arith.mulf %319, %323 : vector<16x16xf32>
    %325 = vector.extract_strided_slice %299 {offsets = [0, 0], sizes = [16, 16], strides = [1, 1]} : vector<16x64xf32> to vector<16x16xf32>
    %326 = arith.negf %325 : vector<16x16xf32>
    %327 = math.exp %326 : vector<16x16xf32>
    %cst_58 = arith.constant 1.000000e+00 : f32
    %328 = vector.broadcast %cst_58 : f32 to vector<16x16xf32>
    %329 = arith.addf %328, %327 : vector<16x16xf32>
    %330 = arith.divf %328, %329 : vector<16x16xf32>
    %331 = vector.extract_strided_slice %299 {offsets = [0, 16], sizes = [16, 16], strides = [1, 1]} : vector<16x64xf32> to vector<16x16xf32>
    %332 = arith.negf %331 : vector<16x16xf32>
    %333 = math.exp %332 : vector<16x16xf32>
    %cst_59 = arith.constant 1.000000e+00 : f32
    %334 = vector.broadcast %cst_59 : f32 to vector<16x16xf32>
    %335 = arith.addf %334, %333 : vector<16x16xf32>
    %336 = arith.divf %334, %335 : vector<16x16xf32>
    %337 = vector.extract_strided_slice %299 {offsets = [0, 32], sizes = [16, 16], strides = [1, 1]} : vector<16x64xf32> to vector<16x16xf32>
    %338 = math.tanh %337 : vector<16x16xf32>
    %339 = vector.extract_strided_slice %299 {offsets = [0, 48], sizes = [16, 16], strides = [1, 1]} : vector<16x64xf32> to vector<16x16xf32>
    %340 = arith.negf %339 : vector<16x16xf32>
    %341 = math.exp %340 : vector<16x16xf32>
    %cst_60 = arith.constant 1.000000e+00 : f32
    %342 = vector.broadcast %cst_60 : f32 to vector<16x16xf32>
    %343 = arith.addf %342, %341 : vector<16x16xf32>
    %344 = arith.divf %342, %343 : vector<16x16xf32>
    %345 = arith.mulf %336, %291 : vector<16x16xf32>
    %346 = arith.mulf %330, %338 : vector<16x16xf32>
    %347 = arith.addf %345, %346 : vector<16x16xf32>
    %348 = math.tanh %347 : vector<16x16xf32>
    %349 = arith.mulf %344, %348 : vector<16x16xf32>
    %350 = vector.extract_strided_slice %6 {offsets = [96, 0], sizes = [16, 64], strides = [1, 1]} : vector<128x64xf32> to vector<16x64xf32>
    %cst_61 = arith.constant dense<0.000000e+00> : vector<16x64xf32>
    %351 = tpu.matmul %324, %8, %cst_61 {dimension_numbers = #tpu.dot_dimension_numbers<[1], [0], [0], [1], [0, 0, 1, 1], [], []>} : vector<16x16xf32>, vector<16x64xf32>, vector<16x64xf32> -> vector<16x64xf32>
    %352 = arith.addf %350, %351 : vector<16x64xf32>
    %353 = vector.extract_strided_slice %7 {offsets = [16, 0], sizes = [16, 64], strides = [1, 1]} : vector<128x64xf32> to vector<16x64xf32>
    %cst_62 = arith.constant dense<0.000000e+00> : vector<16x64xf32>
    %354 = tpu.matmul %349, %9, %cst_62 {dimension_numbers = #tpu.dot_dimension_numbers<[1], [0], [0], [1], [0, 0, 1, 1], [], []>} : vector<16x16xf32>, vector<16x64xf32>, vector<16x64xf32> -> vector<16x64xf32>
    %355 = arith.addf %353, %354 : vector<16x64xf32>
    %356 = vector.extract_strided_slice %352 {offsets = [0, 0], sizes = [16, 16], strides = [1, 1]} : vector<16x64xf32> to vector<16x16xf32>
    %357 = arith.negf %356 : vector<16x16xf32>
    %358 = math.exp %357 : vector<16x16xf32>
    %cst_63 = arith.constant 1.000000e+00 : f32
    %359 = vector.broadcast %cst_63 : f32 to vector<16x16xf32>
    %360 = arith.addf %359, %358 : vector<16x16xf32>
    %361 = arith.divf %359, %360 : vector<16x16xf32>
    %362 = vector.extract_strided_slice %352 {offsets = [0, 16], sizes = [16, 16], strides = [1, 1]} : vector<16x64xf32> to vector<16x16xf32>
    %363 = arith.negf %362 : vector<16x16xf32>
    %364 = math.exp %363 : vector<16x16xf32>
    %cst_64 = arith.constant 1.000000e+00 : f32
    %365 = vector.broadcast %cst_64 : f32 to vector<16x16xf32>
    %366 = arith.addf %365, %364 : vector<16x16xf32>
    %367 = arith.divf %365, %366 : vector<16x16xf32>
    %368 = vector.extract_strided_slice %352 {offsets = [0, 32], sizes = [16, 16], strides = [1, 1]} : vector<16x64xf32> to vector<16x16xf32>
    %369 = math.tanh %368 : vector<16x16xf32>
    %370 = vector.extract_strided_slice %352 {offsets = [0, 48], sizes = [16, 16], strides = [1, 1]} : vector<16x64xf32> to vector<16x16xf32>
    %371 = arith.negf %370 : vector<16x16xf32>
    %372 = math.exp %371 : vector<16x16xf32>
    %cst_65 = arith.constant 1.000000e+00 : f32
    %373 = vector.broadcast %cst_65 : f32 to vector<16x16xf32>
    %374 = arith.addf %373, %372 : vector<16x16xf32>
    %375 = arith.divf %373, %374 : vector<16x16xf32>
    %376 = arith.mulf %367, %322 : vector<16x16xf32>
    %377 = arith.mulf %361, %369 : vector<16x16xf32>
    %378 = arith.addf %376, %377 : vector<16x16xf32>
    %379 = math.tanh %378 : vector<16x16xf32>
    %380 = arith.mulf %375, %379 : vector<16x16xf32>
    %381 = vector.extract_strided_slice %355 {offsets = [0, 0], sizes = [16, 16], strides = [1, 1]} : vector<16x64xf32> to vector<16x16xf32>
    %382 = arith.negf %381 : vector<16x16xf32>
    %383 = math.exp %382 : vector<16x16xf32>
    %cst_66 = arith.constant 1.000000e+00 : f32
    %384 = vector.broadcast %cst_66 : f32 to vector<16x16xf32>
    %385 = arith.addf %384, %383 : vector<16x16xf32>
    %386 = arith.divf %384, %385 : vector<16x16xf32>
    %387 = vector.extract_strided_slice %355 {offsets = [0, 16], sizes = [16, 16], strides = [1, 1]} : vector<16x64xf32> to vector<16x16xf32>
    %388 = arith.negf %387 : vector<16x16xf32>
    %389 = math.exp %388 : vector<16x16xf32>
    %cst_67 = arith.constant 1.000000e+00 : f32
    %390 = vector.broadcast %cst_67 : f32 to vector<16x16xf32>
    %391 = arith.addf %390, %389 : vector<16x16xf32>
    %392 = arith.divf %390, %391 : vector<16x16xf32>
    %393 = vector.extract_strided_slice %355 {offsets = [0, 32], sizes = [16, 16], strides = [1, 1]} : vector<16x64xf32> to vector<16x16xf32>
    %394 = math.tanh %393 : vector<16x16xf32>
    %395 = vector.extract_strided_slice %355 {offsets = [0, 48], sizes = [16, 16], strides = [1, 1]} : vector<16x64xf32> to vector<16x16xf32>
    %396 = arith.negf %395 : vector<16x16xf32>
    %397 = math.exp %396 : vector<16x16xf32>
    %cst_68 = arith.constant 1.000000e+00 : f32
    %398 = vector.broadcast %cst_68 : f32 to vector<16x16xf32>
    %399 = arith.addf %398, %397 : vector<16x16xf32>
    %400 = arith.divf %398, %399 : vector<16x16xf32>
    %401 = arith.mulf %392, %347 : vector<16x16xf32>
    %402 = arith.mulf %386, %394 : vector<16x16xf32>
    %403 = arith.addf %401, %402 : vector<16x16xf32>
    %404 = math.tanh %403 : vector<16x16xf32>
    %405 = arith.mulf %400, %404 : vector<16x16xf32>
    %406 = vector.extract_strided_slice %6 {offsets = [112, 0], sizes = [16, 64], strides = [1, 1]} : vector<128x64xf32> to vector<16x64xf32>
    %cst_69 = arith.constant dense<0.000000e+00> : vector<16x64xf32>
    %407 = tpu.matmul %380, %8, %cst_69 {dimension_numbers = #tpu.dot_dimension_numbers<[1], [0], [0], [1], [0, 0, 1, 1], [], []>} : vector<16x16xf32>, vector<16x64xf32>, vector<16x64xf32> -> vector<16x64xf32>
    %408 = arith.addf %406, %407 : vector<16x64xf32>
    %409 = vector.extract_strided_slice %7 {offsets = [0, 0], sizes = [16, 64], strides = [1, 1]} : vector<128x64xf32> to vector<16x64xf32>
    %cst_70 = arith.constant dense<0.000000e+00> : vector<16x64xf32>
    %410 = tpu.matmul %405, %9, %cst_70 {dimension_numbers = #tpu.dot_dimension_numbers<[1], [0], [0], [1], [0, 0, 1, 1], [], []>} : vector<16x16xf32>, vector<16x64xf32>, vector<16x64xf32> -> vector<16x64xf32>
    %411 = arith.addf %409, %410 : vector<16x64xf32>
    %412 = vector.extract_strided_slice %408 {offsets = [0, 0], sizes = [16, 16], strides = [1, 1]} : vector<16x64xf32> to vector<16x16xf32>
    %413 = arith.negf %412 : vector<16x16xf32>
    %414 = math.exp %413 : vector<16x16xf32>
    %cst_71 = arith.constant 1.000000e+00 : f32
    %415 = vector.broadcast %cst_71 : f32 to vector<16x16xf32>
    %416 = arith.addf %415, %414 : vector<16x16xf32>
    %417 = arith.divf %415, %416 : vector<16x16xf32>
    %418 = vector.extract_strided_slice %408 {offsets = [0, 16], sizes = [16, 16], strides = [1, 1]} : vector<16x64xf32> to vector<16x16xf32>
    %419 = arith.negf %418 : vector<16x16xf32>
    %420 = math.exp %419 : vector<16x16xf32>
    %cst_72 = arith.constant 1.000000e+00 : f32
    %421 = vector.broadcast %cst_72 : f32 to vector<16x16xf32>
    %422 = arith.addf %421, %420 : vector<16x16xf32>
    %423 = arith.divf %421, %422 : vector<16x16xf32>
    %424 = vector.extract_strided_slice %408 {offsets = [0, 32], sizes = [16, 16], strides = [1, 1]} : vector<16x64xf32> to vector<16x16xf32>
    %425 = math.tanh %424 : vector<16x16xf32>
    %426 = vector.extract_strided_slice %408 {offsets = [0, 48], sizes = [16, 16], strides = [1, 1]} : vector<16x64xf32> to vector<16x16xf32>
    %427 = arith.negf %426 : vector<16x16xf32>
    %428 = math.exp %427 : vector<16x16xf32>
    %cst_73 = arith.constant 1.000000e+00 : f32
    %429 = vector.broadcast %cst_73 : f32 to vector<16x16xf32>
    %430 = arith.addf %429, %428 : vector<16x16xf32>
    %431 = arith.divf %429, %430 : vector<16x16xf32>
    %432 = arith.mulf %423, %378 : vector<16x16xf32>
    %433 = arith.mulf %417, %425 : vector<16x16xf32>
    %434 = arith.addf %432, %433 : vector<16x16xf32>
    %435 = math.tanh %434 : vector<16x16xf32>
    %436 = arith.mulf %431, %435 : vector<16x16xf32>
    %437 = vector.extract_strided_slice %411 {offsets = [0, 0], sizes = [16, 16], strides = [1, 1]} : vector<16x64xf32> to vector<16x16xf32>
    %438 = arith.negf %437 : vector<16x16xf32>
    %439 = math.exp %438 : vector<16x16xf32>
    %cst_74 = arith.constant 1.000000e+00 : f32
    %440 = vector.broadcast %cst_74 : f32 to vector<16x16xf32>
    %441 = arith.addf %440, %439 : vector<16x16xf32>
    %442 = arith.divf %440, %441 : vector<16x16xf32>
    %443 = vector.extract_strided_slice %411 {offsets = [0, 16], sizes = [16, 16], strides = [1, 1]} : vector<16x64xf32> to vector<16x16xf32>
    %444 = arith.negf %443 : vector<16x16xf32>
    %445 = math.exp %444 : vector<16x16xf32>
    %cst_75 = arith.constant 1.000000e+00 : f32
    %446 = vector.broadcast %cst_75 : f32 to vector<16x16xf32>
    %447 = arith.addf %446, %445 : vector<16x16xf32>
    %448 = arith.divf %446, %447 : vector<16x16xf32>
    %449 = vector.extract_strided_slice %411 {offsets = [0, 32], sizes = [16, 16], strides = [1, 1]} : vector<16x64xf32> to vector<16x16xf32>
    %450 = math.tanh %449 : vector<16x16xf32>
    %451 = vector.extract_strided_slice %411 {offsets = [0, 48], sizes = [16, 16], strides = [1, 1]} : vector<16x64xf32> to vector<16x16xf32>
    %452 = arith.negf %451 : vector<16x16xf32>
    %453 = math.exp %452 : vector<16x16xf32>
    %cst_76 = arith.constant 1.000000e+00 : f32
    %454 = vector.broadcast %cst_76 : f32 to vector<16x16xf32>
    %455 = arith.addf %454, %453 : vector<16x16xf32>
    %456 = arith.divf %454, %455 : vector<16x16xf32>
    %457 = arith.mulf %448, %403 : vector<16x16xf32>
    %458 = arith.mulf %442, %450 : vector<16x16xf32>
    %459 = arith.addf %457, %458 : vector<16x16xf32>
    %460 = math.tanh %459 : vector<16x16xf32>
    %461 = arith.mulf %456, %460 : vector<16x16xf32>
    %462 = tpu.concatenate %436, %461 in 1 : vector<16x16xf32>, vector<16x16xf32> -> vector<16x32xf32>
    %463 = vector.extract_strided_slice %462 {offsets = [0, 0], sizes = [8, 32], strides = [1, 1]} : vector<16x32xf32> to vector<8x32xf32>
    %464 = vector.extract_strided_slice %462 {offsets = [8, 0], sizes = [1, 32], strides = [1, 1]} : vector<16x32xf32> to vector<1x32xf32>
    %c0_77 = arith.constant 0 : index
    %c0_78 = arith.constant 0 : index
    %465 = vector.load %arg15[%c0_77, %c0_78] : memref<1x32xf32, #tpu.memory_space<vmem>>, vector<1x32xf32>
    tpu.vector_store %arg15[%c0_77, %c0_78], %464 {strides = array<i32>} : memref<1x32xf32, #tpu.memory_space<vmem>>, vector<1x32xf32>,
    %c0_79 = arith.constant 0 : index
    %466 = memref.load %arg1[%c0_79] : memref<1xi32, #tpu.memory_space<smem>>
    %c0_80 = arith.constant 0 : index
    %c0_81 = arith.constant 0 : index
    %467 = vector.load %arg8[%c0_80, %c0_81] : memref<32x32xf32, #tpu.memory_space<vmem>>, vector<32x32xf32>
    %cst_82 = arith.constant dense<0.000000e+00> : vector<1x32xf32>
    %468 = tpu.matmul %464, %467, %cst_82 {dimension_numbers = #tpu.dot_dimension_numbers<[1], [0], [0], [1], [0, 0, 1, 1], [], []>} : vector<1x32xf32>, vector<32x32xf32>, vector<1x32xf32> -> vector<1x32xf32>
    %cst_83 = arith.constant dense<0.000000e+00> : vector<1x8xf32>
    %469 = tpu.matmul %468, %463, %cst_83 {dimension_numbers = #tpu.dot_dimension_numbers<[1], [1], [0], [0], [0, 0, 1, 0], [], []>} : vector<1x32xf32>, vector<8x32xf32>, vector<1x8xf32> -> vector<1x8xf32>
    %c0_84 = arith.constant 0 : index
    %470 = memref.load %arg2[%c0_84] : memref<1xf32, #tpu.memory_space<smem>>
    %471 = vector.broadcast %470 : f32 to vector<1x8xf32>
    %472 = arith.addf %469, %471 : vector<1x8xf32>
    %473 = arith.negf %472 : vector<1x8xf32>
    %474 = math.exp %473 : vector<1x8xf32>
    %cst_85 = arith.constant 1.000000e+00 : f32
    %475 = vector.broadcast %cst_85 : f32 to vector<1x8xf32>
    %476 = arith.addf %475, %474 : vector<1x8xf32>
    %477 = arith.divf %475, %476 : vector<1x8xf32>
    %478 = tpu.iota {dimensions = array<i32: 1>} : vector<1x8xi32>
    %479 = arith.sitofp %478 : vector<1x8xi32> to vector<1x8xf32>
    %480 = vector.broadcast %466 : i32 to vector<1x8xi32>
    %481 = arith.cmpi slt, %478, %480 : vector<1x8xi32>
    %482 = arith.extui %481 : vector<1x8xi1> to vector<1x8xi32>
    %483 = arith.sitofp %482 : vector<1x8xi32> to vector<1x8xf32>
    %cst_86 = arith.constant -1.000000e+30 : f32
    %484 = vector.broadcast %cst_86 : f32 to vector<1x8xf32>
    %485 = arith.select %481, %477, %484 : vector<1x8xi1>, vector<1x8xf32>
    %cst_87 = arith.constant dense<0xFF800000> : vector<1xf32>
    %486 = vector.multi_reduction <maximumf>, %485, %cst_87 [1] : vector<1x8xf32> to vector<1xf32>
    %487 = vector.shape_cast %486 : vector<1xf32> to vector<1x1xf32>
    %488 = vector.broadcast %487 : vector<1x1xf32> to vector<1x8xf32>
    %489 = arith.subf %477, %488 : vector<1x8xf32>
    %490 = math.exp %489 : vector<1x8xf32>
    %cst_88 = arith.constant 0.000000e+00 : f32
    %491 = vector.broadcast %cst_88 : f32 to vector<1x8xf32>
    %492 = arith.select %481, %490, %491 : vector<1x8xi1>, vector<1x8xf32>
    %cst_89 = arith.constant dense<0.000000e+00> : vector<1xf32>
    %493 = vector.multi_reduction <add>, %492, %cst_89 [1] : vector<1x8xf32> to vector<1xf32>
    %494 = vector.shape_cast %493 : vector<1xf32> to vector<1x1xf32>
    %495 = vector.broadcast %494 : vector<1x1xf32> to vector<1x8xf32>
    %496 = arith.divf %492, %495 : vector<1x8xf32>
    %cst_90 = arith.constant 5.000000e-01 : f32
    %497 = vector.broadcast %cst_90 : f32 to vector<1x8xf32>
    %498 = arith.cmpf oge, %477, %497 : vector<1x8xf32>
    %499 = arith.andi %498, %481 : vector<1x8xi1>
    %cst_91 = arith.constant 1.000000e+00 : f32
    %cst_92 = arith.constant 0.000000e+00 : f32
    %500 = vector.broadcast %cst_91 : f32 to vector<1x8xf32>
    %501 = vector.broadcast %cst_92 : f32 to vector<1x8xf32>
    %502 = arith.select %499, %500, %501 : vector<1x8xi1>, vector<1x8xf32>
    %503 = arith.subf %483, %502 : vector<1x8xf32>
    %504 = vector.shape_cast %502 : vector<1x8xf32> to vector<1x1x8xf32>
    %cst_93 = arith.constant dense<0.000000e+00> : vector<1xf32>
    %505 = vector.multi_reduction <add>, %504, %cst_93 [1, 2] : vector<1x1x8xf32> to vector<1xf32>
    %506 = vector.shape_cast %505 : vector<1xf32> to vector<1x1x1xf32>
    %507 = vector.extract %506[0, 0, 0] : f32 from vector<1x1x1xf32>
    %508 = vector.shape_cast %503 : vector<1x8xf32> to vector<1x1x8xf32>
    %cst_94 = arith.constant dense<0.000000e+00> : vector<1xf32>
    %509 = vector.multi_reduction <add>, %508, %cst_94 [1, 2] : vector<1x1x8xf32> to vector<1xf32>
    %510 = vector.shape_cast %509 : vector<1xf32> to vector<1x1x1xf32>
    %511 = vector.extract %510[0, 0, 0] : f32 from vector<1x1x1xf32>
    %512 = vector.broadcast %487 : vector<1x1xf32> to vector<1x8xf32>
    %513 = arith.cmpf oge, %485, %512 : vector<1x8xf32>
    %514 = arith.andi %513, %481 : vector<1x8xi1>
    %cst_95 = arith.constant 8.000000e+00 : f32
    %515 = vector.broadcast %cst_95 : f32 to vector<1x8xf32>
    %516 = arith.select %514, %479, %515 : vector<1x8xi1>, vector<1x8xf32>
    %517 = vector.shape_cast %516 : vector<1x8xf32> to vector<1x1x8xf32>
    %cst_96 = arith.constant dense<0x7F800000> : vector<1xf32>
    %518 = vector.multi_reduction <minimumf>, %517, %cst_96 [1, 2] : vector<1x1x8xf32> to vector<1xf32>
    %519 = vector.shape_cast %518 : vector<1xf32> to vector<1x1x1xf32>
    %520 = vector.extract %519[0, 0, 0] : f32 from vector<1x1x1xf32>
    %cst_97 = arith.constant 1.000000e+30 : f32
    %521 = vector.broadcast %cst_97 : f32 to vector<1x8xf32>
    %522 = arith.select %481, %477, %521 : vector<1x8xi1>, vector<1x8xf32>
    %cst_98 = arith.constant dense<0x7F800000> : vector<1xf32>
    %523 = vector.multi_reduction <minimumf>, %522, %cst_98 [1] : vector<1x8xf32> to vector<1xf32>
    %524 = vector.shape_cast %523 : vector<1xf32> to vector<1x1xf32>
    %525 = vector.broadcast %524 : vector<1x1xf32> to vector<1x8xf32>
    %526 = arith.cmpf ole, %522, %525 : vector<1x8xf32>
    %527 = arith.andi %526, %481 : vector<1x8xi1>
    %cst_99 = arith.constant 8.000000e+00 : f32
    %528 = vector.broadcast %cst_99 : f32 to vector<1x8xf32>
    %529 = arith.select %527, %479, %528 : vector<1x8xi1>, vector<1x8xf32>
    %530 = vector.shape_cast %529 : vector<1x8xf32> to vector<1x1x8xf32>
    %cst_100 = arith.constant dense<0x7F800000> : vector<1xf32>
    %531 = vector.multi_reduction <minimumf>, %530, %cst_100 [1, 2] : vector<1x1x8xf32> to vector<1xf32>
    %532 = vector.shape_cast %531 : vector<1xf32> to vector<1x1x1xf32>
    %533 = vector.extract %532[0, 0, 0] : f32 from vector<1x1x1xf32>
    %534 = vector.broadcast %520 : f32 to vector<1x8xf32>
    %535 = arith.subf %479, %534 : vector<1x8xf32>
    %536 = math.absf %535 : vector<1x8xf32>
    %cst_101 = arith.constant 5.000000e-01 : f32
    %537 = vector.broadcast %cst_101 : f32 to vector<1x8xf32>
    %538 = arith.cmpf olt, %536, %537 : vector<1x8xf32>
    %cst_102 = arith.constant 1.000000e+00 : f32
    %cst_103 = arith.constant 0.000000e+00 : f32
    %539 = vector.broadcast %cst_102 : f32 to vector<1x8xf32>
    %540 = vector.broadcast %cst_103 : f32 to vector<1x8xf32>
    %541 = arith.select %538, %539, %540 : vector<1x8xi1>, vector<1x8xf32>
    %542 = vector.broadcast %533 : f32 to vector<1x8xf32>
    %543 = arith.subf %479, %542 : vector<1x8xf32>
    %544 = math.absf %543 : vector<1x8xf32>
    %cst_104 = arith.constant 5.000000e-01 : f32
    %545 = vector.broadcast %cst_104 : f32 to vector<1x8xf32>
    %546 = arith.cmpf olt, %544, %545 : vector<1x8xf32>
    %cst_105 = arith.constant 1.000000e+00 : f32
    %cst_106 = arith.constant 0.000000e+00 : f32
    %547 = vector.broadcast %cst_105 : f32 to vector<1x8xf32>
    %548 = vector.broadcast %cst_106 : f32 to vector<1x8xf32>
    %549 = arith.select %546, %547, %548 : vector<1x8xi1>, vector<1x8xf32>
    %cst_107 = arith.constant 5.000000e-01 : f32
    %550 = arith.cmpf ogt, %507, %cst_107 : f32
    %551 = arith.select %550, %502, %541 : vector<1x8xf32>
    %cst_108 = arith.constant 5.000000e-01 : f32
    %552 = arith.cmpf ogt, %511, %cst_108 : f32
    %553 = arith.select %552, %503, %549 : vector<1x8xf32>
    %554 = tpu.iota {dimensions = array<i32: 0>} : vector<8x8xi32>
    %555 = tpu.iota {dimensions = array<i32: 1>} : vector<8x8xi32>
    %556 = arith.cmpi slt, %554, %555 : vector<8x8xi32>
    %557 = arith.extui %556 : vector<8x8xi1> to vector<8x8xi32>
    %558 = arith.sitofp %557 : vector<8x8xi32> to vector<8x8xf32>
    %559 = arith.sitofp %554 : vector<8x8xi32> to vector<8x8xf32>
    %560 = tpu.iota {dimensions = array<i32: 0>} : vector<8x1xi32>
    %c0_109 = arith.constant 0 : index
    %c0_110 = arith.constant 0 : index
    %561 = vector.load %arg9[%c0_109, %c0_110] : memref<32x192xf32, #tpu.memory_space<vmem>>, vector<32x192xf32>
    %c0_111 = arith.constant 0 : index
    %c0_112 = arith.constant 0 : index
    %562 = vector.load %arg10[%c0_111, %c0_112] : memref<1x192xf32, #tpu.memory_space<vmem>>, vector<1x192xf32>
    %c0_113 = arith.constant 0 : index
    %c0_114 = arith.constant 0 : index
    %563 = vector.load %arg11[%c0_113, %c0_114] : memref<64x32xf32, #tpu.memory_space<vmem>>, vector<64x32xf32>
    %c0_115 = arith.constant 0 : index
    %c0_116 = arith.constant 0 : index
    %564 = vector.load %arg12[%c0_115, %c0_116] : memref<1x32xf32, #tpu.memory_space<vmem>>, vector<1x32xf32>
    %c0_117 = arith.constant 0 : index
    %c0_118 = arith.constant 0 : index
    %565 = vector.load %arg14[%c0_117, %c0_118] : memref<1x32xf32, #tpu.memory_space<vmem>>, vector<1x32xf32>
    %566 = vector.shape_cast %551 : vector<1x8xf32> to vector<1x1x8xf32>
    %cst_119 = arith.constant dense<0.000000e+00> : vector<1xf32>
    %567 = vector.multi_reduction <add>, %566, %cst_119 [1, 2] : vector<1x1x8xf32> to vector<1xf32>
    %568 = vector.shape_cast %567 : vector<1xf32> to vector<1x1x1xf32>
    %569 = vector.extract %568[0, 0, 0] : f32 from vector<1x1x1xf32>
    %cst_120 = arith.constant 5.000000e-01 : f32
    %570 = arith.addf %569, %cst_120 : f32
    %571 = arith.fptosi %570 : f32 to i32
    %cst_121 = arith.constant dense<0.000000e+00> : vector<1x8xf32>
    %572 = tpu.matmul %551, %558, %cst_121 {dimension_numbers = #tpu.dot_dimension_numbers<[1], [0], [0], [1], [0, 0, 1, 1], [], []>} : vector<1x8xf32>, vector<8x8xf32>, vector<1x8xf32> -> vector<1x8xf32>
    %573 = vector.broadcast %572 : vector<1x8xf32> to vector<8x8xf32>
    %574 = arith.subf %559, %573 : vector<8x8xf32>
    %575 = math.absf %574 : vector<8x8xf32>
    %cst_122 = arith.constant 5.000000e-01 : f32
    %576 = vector.broadcast %cst_122 : f32 to vector<8x8xf32>
    %577 = arith.cmpf olt, %575, %576 : vector<8x8xf32>
    %578 = arith.mulf %551, %496 : vector<1x8xf32>
    %cst_123 = arith.constant 0.000000e+00 : f32
    %579 = vector.shape_cast %578 : vector<1x8xf32> to vector<1x8xf32>
    %580 = vector.broadcast %579 : vector<1x8xf32> to vector<8x8xf32>
    %581 = vector.broadcast %cst_123 : f32 to vector<8x8xf32>
    %582 = arith.select %577, %580, %581 : vector<8x8xi1>, vector<8x8xf32>
    %cst_124 = arith.constant dense<0.000000e+00> : vector<8x32xf32>
    %583 = tpu.matmul %582, %463, %cst_124 {dimension_numbers = #tpu.dot_dimension_numbers<[1], [0], [0], [1], [0, 0, 1, 1], [], []>} : vector<8x8xf32>, vector<8x32xf32>, vector<8x32xf32> -> vector<8x32xf32>
    %584 = vector.broadcast %571 : i32 to vector<8x8xi32>
    %585 = arith.cmpi slt, %554, %584 : vector<8x8xi32>
    %586 = vector.broadcast %571 : i32 to vector<8x8xi32>
    %587 = arith.cmpi slt, %555, %586 : vector<8x8xi32>
    %cst_125 = arith.constant dense<0.000000e+00> : vector<8x192xf32>
    %588 = tpu.matmul %583, %561, %cst_125 {dimension_numbers = #tpu.dot_dimension_numbers<[1], [0], [0], [1], [0, 0, 1, 1], [], []>} : vector<8x32xf32>, vector<32x192xf32>, vector<8x192xf32> -> vector<8x192xf32>
    %589 = vector.broadcast %562 : vector<1x192xf32> to vector<8x192xf32>
    %590 = arith.addf %588, %589 : vector<8x192xf32>
    %591 = vector.extract_strided_slice %590 {offsets = [0, 0], sizes = [8, 32], strides = [1, 1]} : vector<8x192xf32> to vector<8x32xf32>
    %592 = vector.extract_strided_slice %590 {offsets = [0, 32], sizes = [8, 32], strides = [1, 1]} : vector<8x192xf32> to vector<8x32xf32>
    %593 = vector.extract_strided_slice %590 {offsets = [0, 64], sizes = [8, 32], strides = [1, 1]} : vector<8x192xf32> to vector<8x32xf32>
    %cst_126 = arith.constant dense<0.000000e+00> : vector<8x8xf32>
    %594 = tpu.matmul %591, %592, %cst_126 {dimension_numbers = #tpu.dot_dimension_numbers<[1], [1], [0], [0], [0, 0, 1, 0], [], []>} : vector<8x32xf32>, vector<8x32xf32>, vector<8x8xf32> -> vector<8x8xf32>
    %cst_127 = arith.constant 0.176776692 : f32
    %595 = vector.broadcast %cst_127 : f32 to vector<8x8xf32>
    %596 = arith.mulf %594, %595 : vector<8x8xf32>
    %cst_128 = arith.constant -1.000000e+30 : f32
    %597 = vector.broadcast %cst_128 : f32 to vector<8x8xf32>
    %598 = arith.select %585, %596, %597 : vector<8x8xi1>, vector<8x8xf32>
    %cst_129 = arith.constant dense<0xFF800000> : vector<8xf32>
    %599 = vector.multi_reduction <maximumf>, %598, %cst_129 [0] : vector<8x8xf32> to vector<8xf32>
    %600 = vector.shape_cast %599 : vector<8xf32> to vector<1x8xf32>
    %601 = vector.broadcast %600 : vector<1x8xf32> to vector<8x8xf32>
    %602 = arith.subf %598, %601 : vector<8x8xf32>
    %603 = math.exp %602 : vector<8x8xf32>
    %cst_130 = arith.constant 0.000000e+00 : f32
    %604 = vector.broadcast %cst_130 : f32 to vector<8x8xf32>
    %605 = arith.select %585, %603, %604 : vector<8x8xi1>, vector<8x8xf32>
    %cst_131 = arith.constant dense<0.000000e+00> : vector<8xf32>
    %606 = vector.multi_reduction <add>, %605, %cst_131 [0] : vector<8x8xf32> to vector<8xf32>
    %607 = vector.shape_cast %606 : vector<8xf32> to vector<1x8xf32>
    %608 = vector.broadcast %607 : vector<1x8xf32> to vector<8x8xf32>
    %609 = arith.divf %605, %608 : vector<8x8xf32>
    %cst_132 = arith.constant 0.000000e+00 : f32
    %610 = vector.broadcast %cst_132 : f32 to vector<8x8xf32>
    %611 = arith.select %587, %609, %610 : vector<8x8xi1>, vector<8x8xf32>
    %cst_133 = arith.constant dense<0.000000e+00> : vector<8x32xf32>
    %612 = tpu.matmul %611, %593, %cst_133 {dimension_numbers = #tpu.dot_dimension_numbers<[1], [0], [0], [1], [0, 0, 1, 1], [], []>} : vector<8x8xf32>, vector<8x32xf32>, vector<8x32xf32> -> vector<8x32xf32>
    %613 = vector.extract_strided_slice %563 {offsets = [0, 0], sizes = [32, 32], strides = [1, 1]} : vector<64x32xf32> to vector<32x32xf32>
    %cst_134 = arith.constant dense<0.000000e+00> : vector<8x32xf32>
    %614 = tpu.matmul %612, %613, %cst_134 {dimension_numbers = #tpu.dot_dimension_numbers<[1], [0], [0], [1], [0, 0, 1, 1], [], []>} : vector<8x32xf32>, vector<32x32xf32>, vector<8x32xf32> -> vector<8x32xf32>
    %615 = vector.extract_strided_slice %590 {offsets = [0, 96], sizes = [8, 32], strides = [1, 1]} : vector<8x192xf32> to vector<8x32xf32>
    %616 = vector.extract_strided_slice %590 {offsets = [0, 128], sizes = [8, 32], strides = [1, 1]} : vector<8x192xf32> to vector<8x32xf32>
    %617 = vector.extract_strided_slice %590 {offsets = [0, 160], sizes = [8, 32], strides = [1, 1]} : vector<8x192xf32> to vector<8x32xf32>
    %cst_135 = arith.constant dense<0.000000e+00> : vector<8x8xf32>
    %618 = tpu.matmul %615, %616, %cst_135 {dimension_numbers = #tpu.dot_dimension_numbers<[1], [1], [0], [0], [0, 0, 1, 0], [], []>} : vector<8x32xf32>, vector<8x32xf32>, vector<8x8xf32> -> vector<8x8xf32>
    %cst_136 = arith.constant 0.176776692 : f32
    %619 = vector.broadcast %cst_136 : f32 to vector<8x8xf32>
    %620 = arith.mulf %618, %619 : vector<8x8xf32>
    %cst_137 = arith.constant -1.000000e+30 : f32
    %621 = vector.broadcast %cst_137 : f32 to vector<8x8xf32>
    %622 = arith.select %585, %620, %621 : vector<8x8xi1>, vector<8x8xf32>
    %cst_138 = arith.constant dense<0xFF800000> : vector<8xf32>
    %623 = vector.multi_reduction <maximumf>, %622, %cst_138 [0] : vector<8x8xf32> to vector<8xf32>
    %624 = vector.shape_cast %623 : vector<8xf32> to vector<1x8xf32>
    %625 = vector.broadcast %624 : vector<1x8xf32> to vector<8x8xf32>
    %626 = arith.subf %622, %625 : vector<8x8xf32>
    %627 = math.exp %626 : vector<8x8xf32>
    %cst_139 = arith.constant 0.000000e+00 : f32
    %628 = vector.broadcast %cst_139 : f32 to vector<8x8xf32>
    %629 = arith.select %585, %627, %628 : vector<8x8xi1>, vector<8x8xf32>
    %cst_140 = arith.constant dense<0.000000e+00> : vector<8xf32>
    %630 = vector.multi_reduction <add>, %629, %cst_140 [0] : vector<8x8xf32> to vector<8xf32>
    %631 = vector.shape_cast %630 : vector<8xf32> to vector<1x8xf32>
    %632 = vector.broadcast %631 : vector<1x8xf32> to vector<8x8xf32>
    %633 = arith.divf %629, %632 : vector<8x8xf32>
    %cst_141 = arith.constant 0.000000e+00 : f32
    %634 = vector.broadcast %cst_141 : f32 to vector<8x8xf32>
    %635 = arith.select %587, %633, %634 : vector<8x8xi1>, vector<8x8xf32>
    %cst_142 = arith.constant dense<0.000000e+00> : vector<8x32xf32>
    %636 = tpu.matmul %635, %617, %cst_142 {dimension_numbers = #tpu.dot_dimension_numbers<[1], [0], [0], [1], [0, 0, 1, 1], [], []>} : vector<8x8xf32>, vector<8x32xf32>, vector<8x32xf32> -> vector<8x32xf32>
    %637 = vector.extract_strided_slice %563 {offsets = [32, 0], sizes = [32, 32], strides = [1, 1]} : vector<64x32xf32> to vector<32x32xf32>
    %cst_143 = arith.constant dense<0.000000e+00> : vector<8x32xf32>
    %638 = tpu.matmul %636, %637, %cst_143 {dimension_numbers = #tpu.dot_dimension_numbers<[1], [0], [0], [1], [0, 0, 1, 1], [], []>} : vector<8x32xf32>, vector<32x32xf32>, vector<8x32xf32> -> vector<8x32xf32>
    %639 = arith.addf %614, %638 : vector<8x32xf32>
    %640 = vector.broadcast %564 : vector<1x32xf32> to vector<8x32xf32>
    %641 = arith.addf %639, %640 : vector<8x32xf32>
    %642 = vector.broadcast %571 : i32 to vector<8x1xi32>
    %643 = arith.cmpi slt, %560, %642 : vector<8x1xi32>
    %cst_144 = arith.constant 0.000000e+00 : f32
    %644 = vector.shape_cast %643 : vector<8x1xi1> to vector<8x1xi1>
    %645 = vector.broadcast %644 : vector<8x1xi1> to vector<8x32xi1>
    %646 = vector.broadcast %cst_144 : f32 to vector<8x32xf32>
    %647 = arith.select %645, %641, %646 : vector<8x32xi1>, vector<8x32xf32>
    %648 = vector.extract_strided_slice %647 {offsets = [0, 0], sizes = [1, 32], strides = [1, 1]} : vector<8x32xf32> to vector<1x32xf32>
    %c0_145 = arith.constant 0 : index
    %c0_146 = arith.constant 0 : index
    %c0_147 = arith.constant 0 : index
    %649 = vector.load %arg13[%c0_145, %c0_146, %c0_147] : memref<4x32x32xf32, #tpu.memory_space<vmem>>, vector<1x32x32xf32>
    %650 = vector.shape_cast %649 : vector<1x32x32xf32> to vector<32x32xf32>
    %cst_148 = arith.constant dense<0.000000e+00> : vector<1x32xf32>
    %651 = tpu.matmul %648, %650, %cst_148 {dimension_numbers = #tpu.dot_dimension_numbers<[1], [0], [0], [1], [0, 0, 1, 1], [], []>} : vector<1x32xf32>, vector<32x32xf32>, vector<1x32xf32> -> vector<1x32xf32>
    %652 = vector.extract_strided_slice %647 {offsets = [1, 0], sizes = [1, 32], strides = [1, 1]} : vector<8x32xf32> to vector<1x32xf32>
    %c1 = arith.constant 1 : index
    %c0_149 = arith.constant 0 : index
    %c0_150 = arith.constant 0 : index
    %653 = vector.load %arg13[%c1, %c0_149, %c0_150] : memref<4x32x32xf32, #tpu.memory_space<vmem>>, vector<1x32x32xf32>
    %654 = vector.shape_cast %653 : vector<1x32x32xf32> to vector<32x32xf32>
    %cst_151 = arith.constant dense<0.000000e+00> : vector<1x32xf32>
    %655 = tpu.matmul %652, %654, %cst_151 {dimension_numbers = #tpu.dot_dimension_numbers<[1], [0], [0], [1], [0, 0, 1, 1], [], []>} : vector<1x32xf32>, vector<32x32xf32>, vector<1x32xf32> -> vector<1x32xf32>
    %656 = vector.extract_strided_slice %647 {offsets = [2, 0], sizes = [1, 32], strides = [1, 1]} : vector<8x32xf32> to vector<1x32xf32>
    %c2 = arith.constant 2 : index
    %c0_152 = arith.constant 0 : index
    %c0_153 = arith.constant 0 : index
    %657 = vector.load %arg13[%c2, %c0_152, %c0_153] : memref<4x32x32xf32, #tpu.memory_space<vmem>>, vector<1x32x32xf32>
    %658 = vector.shape_cast %657 : vector<1x32x32xf32> to vector<32x32xf32>
    %cst_154 = arith.constant dense<0.000000e+00> : vector<1x32xf32>
    %659 = tpu.matmul %656, %658, %cst_154 {dimension_numbers = #tpu.dot_dimension_numbers<[1], [0], [0], [1], [0, 0, 1, 1], [], []>} : vector<1x32xf32>, vector<32x32xf32>, vector<1x32xf32> -> vector<1x32xf32>
    %660 = vector.extract_strided_slice %647 {offsets = [3, 0], sizes = [1, 32], strides = [1, 1]} : vector<8x32xf32> to vector<1x32xf32>
    %c3 = arith.constant 3 : index
    %c0_155 = arith.constant 0 : index
    %c0_156 = arith.constant 0 : index
    %661 = vector.load %arg13[%c3, %c0_155, %c0_156] : memref<4x32x32xf32, #tpu.memory_space<vmem>>, vector<1x32x32xf32>
    %662 = vector.shape_cast %661 : vector<1x32x32xf32> to vector<32x32xf32>
    %cst_157 = arith.constant dense<0.000000e+00> : vector<1x32xf32>
    %663 = tpu.matmul %660, %662, %cst_157 {dimension_numbers = #tpu.dot_dimension_numbers<[1], [0], [0], [1], [0, 0, 1, 1], [], []>} : vector<1x32xf32>, vector<32x32xf32>, vector<1x32xf32> -> vector<1x32xf32>
    %664 = arith.addf %651, %655 : vector<1x32xf32>
    %665 = arith.addf %659, %663 : vector<1x32xf32>
    %666 = arith.addf %664, %665 : vector<1x32xf32>
    %667 = arith.addf %666, %565 : vector<1x32xf32>
    %c0_158 = arith.constant 0 : index
    %c0_159 = arith.constant 0 : index
    %668 = vector.load %arg16[%c0_158, %c0_159] : memref<1x32xf32, #tpu.memory_space<vmem>>, vector<1x32xf32>
    tpu.vector_store %arg16[%c0_158, %c0_159], %667 {strides = array<i32>} : memref<1x32xf32, #tpu.memory_space<vmem>>, vector<1x32xf32>,
    %669 = vector.shape_cast %553 : vector<1x8xf32> to vector<1x1x8xf32>
    %cst_160 = arith.constant dense<0.000000e+00> : vector<1xf32>
    %670 = vector.multi_reduction <add>, %669, %cst_160 [1, 2] : vector<1x1x8xf32> to vector<1xf32>
    %671 = vector.shape_cast %670 : vector<1xf32> to vector<1x1x1xf32>
    %672 = vector.extract %671[0, 0, 0] : f32 from vector<1x1x1xf32>
    %cst_161 = arith.constant 5.000000e-01 : f32
    %673 = arith.addf %672, %cst_161 : f32
    %674 = arith.fptosi %673 : f32 to i32
    %cst_162 = arith.constant dense<0.000000e+00> : vector<1x8xf32>
    %675 = tpu.matmul %553, %558, %cst_162 {dimension_numbers = #tpu.dot_dimension_numbers<[1], [0], [0], [1], [0, 0, 1, 1], [], []>} : vector<1x8xf32>, vector<8x8xf32>, vector<1x8xf32> -> vector<1x8xf32>
    %676 = vector.broadcast %675 : vector<1x8xf32> to vector<8x8xf32>
    %677 = arith.subf %559, %676 : vector<8x8xf32>
    %678 = math.absf %677 : vector<8x8xf32>
    %cst_163 = arith.constant 5.000000e-01 : f32
    %679 = vector.broadcast %cst_163 : f32 to vector<8x8xf32>
    %680 = arith.cmpf olt, %678, %679 : vector<8x8xf32>
    %681 = arith.mulf %553, %496 : vector<1x8xf32>
    %cst_164 = arith.constant 0.000000e+00 : f32
    %682 = vector.shape_cast %681 : vector<1x8xf32> to vector<1x8xf32>
    %683 = vector.broadcast %682 : vector<1x8xf32> to vector<8x8xf32>
    %684 = vector.broadcast %cst_164 : f32 to vector<8x8xf32>
    %685 = arith.select %680, %683, %684 : vector<8x8xi1>, vector<8x8xf32>
    %cst_165 = arith.constant dense<0.000000e+00> : vector<8x32xf32>
    %686 = tpu.matmul %685, %463, %cst_165 {dimension_numbers = #tpu.dot_dimension_numbers<[1], [0], [0], [1], [0, 0, 1, 1], [], []>} : vector<8x8xf32>, vector<8x32xf32>, vector<8x32xf32> -> vector<8x32xf32>
    %687 = vector.broadcast %674 : i32 to vector<8x8xi32>
    %688 = arith.cmpi slt, %554, %687 : vector<8x8xi32>
    %689 = vector.broadcast %674 : i32 to vector<8x8xi32>
    %690 = arith.cmpi slt, %555, %689 : vector<8x8xi32>
    %cst_166 = arith.constant dense<0.000000e+00> : vector<8x192xf32>
    %691 = tpu.matmul %686, %561, %cst_166 {dimension_numbers = #tpu.dot_dimension_numbers<[1], [0], [0], [1], [0, 0, 1, 1], [], []>} : vector<8x32xf32>, vector<32x192xf32>, vector<8x192xf32> -> vector<8x192xf32>
    %692 = vector.broadcast %562 : vector<1x192xf32> to vector<8x192xf32>
    %693 = arith.addf %691, %692 : vector<8x192xf32>
    %694 = vector.extract_strided_slice %693 {offsets = [0, 0], sizes = [8, 32], strides = [1, 1]} : vector<8x192xf32> to vector<8x32xf32>
    %695 = vector.extract_strided_slice %693 {offsets = [0, 32], sizes = [8, 32], strides = [1, 1]} : vector<8x192xf32> to vector<8x32xf32>
    %696 = vector.extract_strided_slice %693 {offsets = [0, 64], sizes = [8, 32], strides = [1, 1]} : vector<8x192xf32> to vector<8x32xf32>
    %cst_167 = arith.constant dense<0.000000e+00> : vector<8x8xf32>
    %697 = tpu.matmul %694, %695, %cst_167 {dimension_numbers = #tpu.dot_dimension_numbers<[1], [1], [0], [0], [0, 0, 1, 0], [], []>} : vector<8x32xf32>, vector<8x32xf32>, vector<8x8xf32> -> vector<8x8xf32>
    %cst_168 = arith.constant 1.000000e+00 : f32
    %698 = vector.broadcast %cst_168 : f32 to vector<8x8xf32>
    %699 = arith.subf %698, %697 : vector<8x8xf32>
    %cst_169 = arith.constant 0.176776692 : f32
    %700 = vector.broadcast %cst_169 : f32 to vector<8x8xf32>
    %701 = arith.mulf %699, %700 : vector<8x8xf32>
    %cst_170 = arith.constant -1.000000e+30 : f32
    %702 = vector.broadcast %cst_170 : f32 to vector<8x8xf32>
    %703 = arith.select %688, %701, %702 : vector<8x8xi1>, vector<8x8xf32>
    %cst_171 = arith.constant dense<0xFF800000> : vector<8xf32>
    %704 = vector.multi_reduction <maximumf>, %703, %cst_171 [0] : vector<8x8xf32> to vector<8xf32>
    %705 = vector.shape_cast %704 : vector<8xf32> to vector<1x8xf32>
    %706 = vector.broadcast %705 : vector<1x8xf32> to vector<8x8xf32>
    %707 = arith.subf %703, %706 : vector<8x8xf32>
    %708 = math.exp %707 : vector<8x8xf32>
    %cst_172 = arith.constant 0.000000e+00 : f32
    %709 = vector.broadcast %cst_172 : f32 to vector<8x8xf32>
    %710 = arith.select %688, %708, %709 : vector<8x8xi1>, vector<8x8xf32>
    %cst_173 = arith.constant dense<0.000000e+00> : vector<8xf32>
    %711 = vector.multi_reduction <add>, %710, %cst_173 [0] : vector<8x8xf32> to vector<8xf32>
    %712 = vector.shape_cast %711 : vector<8xf32> to vector<1x8xf32>
    %713 = vector.broadcast %712 : vector<1x8xf32> to vector<8x8xf32>
    %714 = arith.divf %710, %713 : vector<8x8xf32>
    %cst_174 = arith.constant 0.000000e+00 : f32
    %715 = vector.broadcast %cst_174 : f32 to vector<8x8xf32>
    %716 = arith.select %690, %714, %715 : vector<8x8xi1>, vector<8x8xf32>
    %cst_175 = arith.constant dense<0.000000e+00> : vector<8x32xf32>
    %717 = tpu.matmul %716, %696, %cst_175 {dimension_numbers = #tpu.dot_dimension_numbers<[1], [0], [0], [1], [0, 0, 1, 1], [], []>} : vector<8x8xf32>, vector<8x32xf32>, vector<8x32xf32> -> vector<8x32xf32>
    %718 = vector.extract_strided_slice %563 {offsets = [0, 0], sizes = [32, 32], strides = [1, 1]} : vector<64x32xf32> to vector<32x32xf32>
    %cst_176 = arith.constant dense<0.000000e+00> : vector<8x32xf32>
    %719 = tpu.matmul %717, %718, %cst_176 {dimension_numbers = #tpu.dot_dimension_numbers<[1], [0], [0], [1], [0, 0, 1, 1], [], []>} : vector<8x32xf32>, vector<32x32xf32>, vector<8x32xf32> -> vector<8x32xf32>
    %720 = vector.extract_strided_slice %693 {offsets = [0, 96], sizes = [8, 32], strides = [1, 1]} : vector<8x192xf32> to vector<8x32xf32>
    %721 = vector.extract_strided_slice %693 {offsets = [0, 128], sizes = [8, 32], strides = [1, 1]} : vector<8x192xf32> to vector<8x32xf32>
    %722 = vector.extract_strided_slice %693 {offsets = [0, 160], sizes = [8, 32], strides = [1, 1]} : vector<8x192xf32> to vector<8x32xf32>
    %cst_177 = arith.constant dense<0.000000e+00> : vector<8x8xf32>
    %723 = tpu.matmul %720, %721, %cst_177 {dimension_numbers = #tpu.dot_dimension_numbers<[1], [1], [0], [0], [0, 0, 1, 0], [], []>} : vector<8x32xf32>, vector<8x32xf32>, vector<8x8xf32> -> vector<8x8xf32>
    %cst_178 = arith.constant 1.000000e+00 : f32
    %724 = vector.broadcast %cst_178 : f32 to vector<8x8xf32>
    %725 = arith.subf %724, %723 : vector<8x8xf32>
    %cst_179 = arith.constant 0.176776692 : f32
    %726 = vector.broadcast %cst_179 : f32 to vector<8x8xf32>
    %727 = arith.mulf %725, %726 : vector<8x8xf32>
    %cst_180 = arith.constant -1.000000e+30 : f32
    %728 = vector.broadcast %cst_180 : f32 to vector<8x8xf32>
    %729 = arith.select %688, %727, %728 : vector<8x8xi1>, vector<8x8xf32>
    %cst_181 = arith.constant dense<0xFF800000> : vector<8xf32>
    %730 = vector.multi_reduction <maximumf>, %729, %cst_181 [0] : vector<8x8xf32> to vector<8xf32>
    %731 = vector.shape_cast %730 : vector<8xf32> to vector<1x8xf32>
    %732 = vector.broadcast %731 : vector<1x8xf32> to vector<8x8xf32>
    %733 = arith.subf %729, %732 : vector<8x8xf32>
    %734 = math.exp %733 : vector<8x8xf32>
    %cst_182 = arith.constant 0.000000e+00 : f32
    %735 = vector.broadcast %cst_182 : f32 to vector<8x8xf32>
    %736 = arith.select %688, %734, %735 : vector<8x8xi1>, vector<8x8xf32>
    %cst_183 = arith.constant dense<0.000000e+00> : vector<8xf32>
    %737 = vector.multi_reduction <add>, %736, %cst_183 [0] : vector<8x8xf32> to vector<8xf32>
    %738 = vector.shape_cast %737 : vector<8xf32> to vector<1x8xf32>
    %739 = vector.broadcast %738 : vector<1x8xf32> to vector<8x8xf32>
    %740 = arith.divf %736, %739 : vector<8x8xf32>
    %cst_184 = arith.constant 0.000000e+00 : f32
    %741 = vector.broadcast %cst_184 : f32 to vector<8x8xf32>
    %742 = arith.select %690, %740, %741 : vector<8x8xi1>, vector<8x8xf32>
    %cst_185 = arith.constant dense<0.000000e+00> : vector<8x32xf32>
    %743 = tpu.matmul %742, %722, %cst_185 {dimension_numbers = #tpu.dot_dimension_numbers<[1], [0], [0], [1], [0, 0, 1, 1], [], []>} : vector<8x8xf32>, vector<8x32xf32>, vector<8x32xf32> -> vector<8x32xf32>
    %744 = vector.extract_strided_slice %563 {offsets = [32, 0], sizes = [32, 32], strides = [1, 1]} : vector<64x32xf32> to vector<32x32xf32>
    %cst_186 = arith.constant dense<0.000000e+00> : vector<8x32xf32>
    %745 = tpu.matmul %743, %744, %cst_186 {dimension_numbers = #tpu.dot_dimension_numbers<[1], [0], [0], [1], [0, 0, 1, 1], [], []>} : vector<8x32xf32>, vector<32x32xf32>, vector<8x32xf32> -> vector<8x32xf32>
    %746 = arith.addf %719, %745 : vector<8x32xf32>
    %747 = vector.broadcast %564 : vector<1x32xf32> to vector<8x32xf32>
    %748 = arith.addf %746, %747 : vector<8x32xf32>
    %749 = vector.broadcast %674 : i32 to vector<8x1xi32>
    %750 = arith.cmpi slt, %560, %749 : vector<8x1xi32>
    %cst_187 = arith.constant 0.000000e+00 : f32
    %751 = vector.shape_cast %750 : vector<8x1xi1> to vector<8x1xi1>
    %752 = vector.broadcast %751 : vector<8x1xi1> to vector<8x32xi1>
    %753 = vector.broadcast %cst_187 : f32 to vector<8x32xf32>
    %754 = arith.select %752, %748, %753 : vector<8x32xi1>, vector<8x32xf32>
    %755 = vector.extract_strided_slice %754 {offsets = [0, 0], sizes = [1, 32], strides = [1, 1]} : vector<8x32xf32> to vector<1x32xf32>
    %c0_188 = arith.constant 0 : index
    %c0_189 = arith.constant 0 : index
    %c0_190 = arith.constant 0 : index
    %756 = vector.load %arg13[%c0_188, %c0_189, %c0_190] : memref<4x32x32xf32, #tpu.memory_space<vmem>>, vector<1x32x32xf32>
    %757 = vector.shape_cast %756 : vector<1x32x32xf32> to vector<32x32xf32>
    %cst_191 = arith.constant dense<0.000000e+00> : vector<1x32xf32>
    %758 = tpu.matmul %755, %757, %cst_191 {dimension_numbers = #tpu.dot_dimension_numbers<[1], [0], [0], [1], [0, 0, 1, 1], [], []>} : vector<1x32xf32>, vector<32x32xf32>, vector<1x32xf32> -> vector<1x32xf32>
    %759 = vector.extract_strided_slice %754 {offsets = [1, 0], sizes = [1, 32], strides = [1, 1]} : vector<8x32xf32> to vector<1x32xf32>
    %c1_192 = arith.constant 1 : index
    %c0_193 = arith.constant 0 : index
    %c0_194 = arith.constant 0 : index
    %760 = vector.load %arg13[%c1_192, %c0_193, %c0_194] : memref<4x32x32xf32, #tpu.memory_space<vmem>>, vector<1x32x32xf32>
    %761 = vector.shape_cast %760 : vector<1x32x32xf32> to vector<32x32xf32>
    %cst_195 = arith.constant dense<0.000000e+00> : vector<1x32xf32>
    %762 = tpu.matmul %759, %761, %cst_195 {dimension_numbers = #tpu.dot_dimension_numbers<[1], [0], [0], [1], [0, 0, 1, 1], [], []>} : vector<1x32xf32>, vector<32x32xf32>, vector<1x32xf32> -> vector<1x32xf32>
    %763 = vector.extract_strided_slice %754 {offsets = [2, 0], sizes = [1, 32], strides = [1, 1]} : vector<8x32xf32> to vector<1x32xf32>
    %c2_196 = arith.constant 2 : index
    %c0_197 = arith.constant 0 : index
    %c0_198 = arith.constant 0 : index
    %764 = vector.load %arg13[%c2_196, %c0_197, %c0_198] : memref<4x32x32xf32, #tpu.memory_space<vmem>>, vector<1x32x32xf32>
    %765 = vector.shape_cast %764 : vector<1x32x32xf32> to vector<32x32xf32>
    %cst_199 = arith.constant dense<0.000000e+00> : vector<1x32xf32>
    %766 = tpu.matmul %763, %765, %cst_199 {dimension_numbers = #tpu.dot_dimension_numbers<[1], [0], [0], [1], [0, 0, 1, 1], [], []>} : vector<1x32xf32>, vector<32x32xf32>, vector<1x32xf32> -> vector<1x32xf32>
    %767 = vector.extract_strided_slice %754 {offsets = [3, 0], sizes = [1, 32], strides = [1, 1]} : vector<8x32xf32> to vector<1x32xf32>
    %c3_200 = arith.constant 3 : index
    %c0_201 = arith.constant 0 : index
    %c0_202 = arith.constant 0 : index
    %768 = vector.load %arg13[%c3_200, %c0_201, %c0_202] : memref<4x32x32xf32, #tpu.memory_space<vmem>>, vector<1x32x32xf32>
    %769 = vector.shape_cast %768 : vector<1x32x32xf32> to vector<32x32xf32>
    %cst_203 = arith.constant dense<0.000000e+00> : vector<1x32xf32>
    %770 = tpu.matmul %767, %769, %cst_203 {dimension_numbers = #tpu.dot_dimension_numbers<[1], [0], [0], [1], [0, 0, 1, 1], [], []>} : vector<1x32xf32>, vector<32x32xf32>, vector<1x32xf32> -> vector<1x32xf32>
    %771 = arith.addf %758, %762 : vector<1x32xf32>
    %772 = arith.addf %766, %770 : vector<1x32xf32>
    %773 = arith.addf %771, %772 : vector<1x32xf32>
    %774 = arith.addf %773, %565 : vector<1x32xf32>
    %c0_204 = arith.constant 0 : index
    %c0_205 = arith.constant 0 : index
    %775 = vector.load %arg17[%c0_204, %c0_205] : memref<1x32xf32, #tpu.memory_space<vmem>>, vector<1x32xf32>
    tpu.vector_store %arg17[%c0_204, %c0_205], %774 {strides = array<i32>} : memref<1x32xf32, #tpu.memory_space<vmem>>, vector<1x32xf32>,
    return
  }
  func.func @transform_0(%arg0: i32) -> i32 {
    %c0_i32 = arith.constant 0 : i32
    %c0_i32_0 = arith.constant 0 : i32
    return %c0_i32 : i32
  }
  func.func @transform_1(%arg0: i32) -> i32 {
    %c0_i32 = arith.constant 0 : i32
    %c0_i32_0 = arith.constant 0 : i32
    return %c0_i32 : i32
  }
  func.func @transform_2(%arg0: i32) -> (i32, i32) {
    %c0_i32 = arith.constant 0 : i32
    %c0_i32_0 = arith.constant 0 : i32
    %c0_i32_1 = arith.constant 0 : i32
    return %c0_i32, %c0_i32_0 : i32, i32
  }
  func.func @transform_3(%arg0: i32) -> (i32, i32) {
    %c0_i32 = arith.constant 0 : i32
    %c0_i32_0 = arith.constant 0 : i32
    %c0_i32_1 = arith.constant 0 : i32
    return %c0_i32, %c0_i32_0 : i32, i32
  }
  func.func @transform_4(%arg0: i32) -> (i32, i32) {
    %c0_i32 = arith.constant 0 : i32
    %c0_i32_0 = arith.constant 0 : i32
    %c0_i32_1 = arith.constant 0 : i32
    return %c0_i32, %c0_i32_0 : i32, i32
  }
  func.func @transform_5(%arg0: i32) -> (i32, i32) {
    %c0_i32 = arith.constant 0 : i32
    %c0_i32_0 = arith.constant 0 : i32
    %c0_i32_1 = arith.constant 0 : i32
    return %c0_i32, %c0_i32_0 : i32, i32
  }
  func.func @transform_6(%arg0: i32) -> (i32, i32) {
    %c0_i32 = arith.constant 0 : i32
    %c0_i32_0 = arith.constant 0 : i32
    %c0_i32_1 = arith.constant 0 : i32
    return %c0_i32, %c0_i32_0 : i32, i32
  }
  func.func @transform_7(%arg0: i32) -> (i32, i32) {
    %c0_i32 = arith.constant 0 : i32
    %c0_i32_0 = arith.constant 0 : i32
    %c0_i32_1 = arith.constant 0 : i32
    return %c0_i32, %c0_i32_0 : i32, i32
  }
  func.func @transform_8(%arg0: i32) -> (i32, i32) {
    %c0_i32 = arith.constant 0 : i32
    %c0_i32_0 = arith.constant 0 : i32
    %c0_i32_1 = arith.constant 0 : i32
    return %c0_i32, %c0_i32_0 : i32, i32
  }
  func.func @transform_9(%arg0: i32) -> (i32, i32) {
    %c0_i32 = arith.constant 0 : i32
    %c0_i32_0 = arith.constant 0 : i32
    %c0_i32_1 = arith.constant 0 : i32
    return %c0_i32, %c0_i32_0 : i32, i32
  }
  func.func @transform_10(%arg0: i32) -> (i32, i32) {
    %c0_i32 = arith.constant 0 : i32
    %c0_i32_0 = arith.constant 0 : i32
    %c0_i32_1 = arith.constant 0 : i32
    return %c0_i32, %c0_i32_0 : i32, i32
  }
  func.func @transform_11(%arg0: i32) -> (i32, i32) {
    %c0_i32 = arith.constant 0 : i32
    %c0_i32_0 = arith.constant 0 : i32
    %c0_i32_1 = arith.constant 0 : i32
    return %c0_i32, %c0_i32_0 : i32, i32
  }
  func.func @transform_12(%arg0: i32) -> (i32, i32, i32) {
    %c0_i32 = arith.constant 0 : i32
    %c0_i32_0 = arith.constant 0 : i32
    %c0_i32_1 = arith.constant 0 : i32
    %c0_i32_2 = arith.constant 0 : i32
    return %c0_i32, %c0_i32_0, %c0_i32_1 : i32, i32, i32
  }
  func.func @transform_13(%arg0: i32) -> (i32, i32) {
    %c0_i32 = arith.constant 0 : i32
    %c0_i32_0 = arith.constant 0 : i32
    %c0_i32_1 = arith.constant 0 : i32
    return %c0_i32, %c0_i32_0 : i32, i32
  }
  func.func @transform_14(%arg0: i32) -> (i32, i32) {
    %c0_i32 = arith.constant 0 : i32
    %c0_i32_0 = arith.constant 0 : i32
    %c0_i32_1 = arith.constant 0 : i32
    return %c0_i32, %c0_i32_0 : i32, i32
  }
  func.func @transform_15(%arg0: i32) -> (i32, i32) {
    %c0_i32 = arith.constant 0 : i32
    %c0_i32_0 = arith.constant 0 : i32
    %c0_i32_1 = arith.constant 0 : i32
    return %c0_i32, %c0_i32_0 : i32, i32
  }
  func.func @transform_16(%arg0: i32) -> (i32, i32) {
    %c0_i32 = arith.constant 0 : i32
    %c0_i32_0 = arith.constant 0 : i32
    %c0_i32_1 = arith.constant 0 : i32
    return %c0_i32, %c0_i32_0 : i32, i32
  }
}

</mosaic_0001>

<bundles_post_ra>
// kernel: device_forward.1
= control target key start
LH: loop header
LB: loop body
LE: loop exit
PB: predicated region body
PF: predicated region fallthrough
CT: control target
= control target key end

     0   :  { %s7407_s0 = inlined_call_operand.<no memory space> [shape: s32[1], index: 0, kind: input, shape index: {}]   ;;  %s7408_s1 = inlined_call_operand.<no memory space> [shape: f32[1], index: 1, kind: input, shape index: {}]   ;;  %s7409_s2 = inlined_call_operand.vmem [shape: f32[128,16], index: 2, kind: input, shape index: {}]   ;;  %s7410_s3 = inlined_call_operand.vmem [shape: f32[16,128], index: 3, kind: input, shape index: {}]   ;;  %s7411_s4 = inlined_call_operand.hbm [shape: f32[1,128], index: 4, kind: input, shape index: {}]   ;;  %s7412_s5 = inlined_call_operand.vmem [shape: f32[16,64], index: 5, kind: input, shape index: {}]   ;;  %s7413_s6 = inlined_call_operand.vmem [shape: f32[16,64], index: 6, kind: input, shape index: {}]   ;;  %s7414_s7 = inlined_call_operand.vmem [shape: f32[32,32], index: 7, kind: input, shape index: {}]   ;;  %s7415_s8 = inlined_call_operand.vmem [shape: f32[32,192], index: 8, kind: input, shape index: {}]   ;;  %s7416_s9 = inlined_call_operand.vmem [shape: f32[1,192], index: 9, kind: input, shape index: {}]   ;;  %s7417_s10 = inlined_call_operand.vmem [shape: f32[64,32], index: 10, kind: input, shape index: {}]   ;;  %s7418_s11 = inlined_call_operand.hbm [shape: f32[1,32], index: 11, kind: input, shape index: {}]   ;;  %s7419_s12 = inlined_call_operand.vmem [shape: f32[4,32,32], index: 12, kind: input, shape index: {}]   ;;  %s7420_s13 = inlined_call_operand.hbm [shape: f32[1,32], index: 13, kind: input, shape index: {}]   ;;  %s7421_s14 = inlined_call_operand.hbm [shape: f32[1,32], index: 14, kind: output, shape index: {0}]   ;;  %s7422_s15 = inlined_call_operand.hbm [shape: f32[1,32], index: 15, kind: output, shape index: {1}]   ;;  %s7423_s16 = inlined_call_operand.hbm [shape: f32[1,32], index: 16, kind: output, shape index: {2}]  }
   0x1   :  { %7424 = sst [smem:[#allocation18_spill]] %s7407_s0 }
   0x2   :  { %24 = vsyncpa [#allocation5], 0 }
   0x3   :  { %25 = vsyncpa [#allocation8], 0 }
   0x4   :  { %26 = vsyncpa [#allocation6], 0 }
   0x5   :  { %27 = vsyncpa [#allocation12], 0  ;;  %s6290_s21 = smov [#allocation7]   ;;  %s6291_s23 = smov [#allocation4]  }
   0x6   :  { %s64_s22 = sshll.u32 %s6290_s21, 4  ;;  %s42_s24 = sshll.u32 %s6291_s23, 4  ;;  %s65_s22 = int_to_ptr.vmem [resolvable:$true] %s64_s22  ;;  %s43_s24 = int_to_ptr.vmem [resolvable:$true] %s42_s24 }
   0x7   :  { %s6150_s27 = scalar_lea.hbm %s7418_s11, 16 }
   0x8   :  { %p6151_p0 = scmp.ne.s32.totalorder %s7418_s11, %s6150_s27  ;;  %p6154_p1 = scmp.lt.u32.totalorder %s6150_s27, %s7418_s11 }
   0xa   :  { %p6156_p2 = pnand %p6154_p1, %p6151_p0 }
   0xc   :  { %6159 = shalt.err (!%p6156_p2)
}
   0xd   :  { %s6160_s17 = scalar_lea.vmem %s65_s22, 16  ;;  %s6164_s18 = scalar_lea.vmem %s65_s22, 32 }
   0xe   :  { %p6161_p3 = scmp.ne.s32.totalorder %s65_s22, %s6160_s17  ;;  %p6165_p4 = scmp.lt.s32.totalorder %s65_s22, %s65_s22 }
   0xf   :  { %p6166_p5 = scmp.lt.s32.totalorder %s6164_s18, %s6160_s17 }
  0x11   :  { %p6167_p6 = por %p6166_p5, %p6165_p4 }
  0x13   :  { %p6168_p7 = pnand %p6167_p6, %p6161_p3 }
  0x15   :  { %6171 = shalt.err (!%p6168_p7)
}
  0x16   :  { %67 = dma.hbm_to_vmem [thread:$0]  %s7418_s11, 16, %s65_s22, [#allocation8]  }
  0x17   :  { %s6172_s25 = scalar_lea.hbm %s7411_s4, 16 }
  0x18   :  { %p6173_p8 = scmp.ne.s32.totalorder %s7411_s4, %s6172_s25  ;;  %p6176_p9 = scmp.lt.u32.totalorder %s6172_s25, %s7411_s4 }
  0x1a   :  { %p6178_p10 = pnand %p6176_p9, %p6173_p8 }
  0x1c   :  { %6181 = shalt.err (!%p6178_p10)
}
  0x1d   :  { %s6182_s30 = scalar_lea.vmem %s43_s24, 16  ;;  %s6186_s0 = scalar_lea.vmem %s43_s24, 32 }
  0x1e   :  { %p6183_p11 = scmp.ne.s32.totalorder %s43_s24, %s6182_s30  ;;  %p6187_p12 = scmp.lt.s32.totalorder %s43_s24, %s43_s24 }
  0x1f   :  { %p6188_p13 = scmp.lt.s32.totalorder %s6186_s0, %s6182_s30 }
  0x21   :  { %p6189_p0 = por %p6188_p13, %p6187_p12 }
  0x23   :  { %p6190_p1 = pnand %p6189_p0, %p6183_p11 }
  0x25   :  { %6193 = shalt.err (!%p6190_p1)
}
  0x26   :  { %45 = dma.hbm_to_vmem [thread:$0]  %s7411_s4, 16, %s43_s24, [#allocation5]  }
  0x27   :  { %s6292_s17 = smov [#allocation9]   ;;  %s6194_s21 = scalar_lea.hbm %s7420_s13, 16 }
  0x28   :  { %s76_s18 = sshll.u32 %s6292_s17, 4  ;;  %p6195_p2 = scmp.ne.s32.totalorder %s7420_s13, %s6194_s21  ;;  %s77_s18 = int_to_ptr.vmem [resolvable:$true] %s76_s18 }
  0x29   :  { %p6198_p3 = scmp.lt.u32.totalorder %s6194_s21, %s7420_s13 }
  0x2b   :  { %p6200_p4 = pnand %p6198_p3, %p6195_p2 }
  0x2d   :  { %6203 = shalt.err (!%p6200_p4)
}
  0x2e   :  { %s6204_s28 = scalar_lea.vmem %s77_s18, 16  ;;  %s6208_s4 = scalar_lea.vmem %s77_s18, 32 }
  0x2f   :  { %p6205_p5 = scmp.ne.s32.totalorder %s77_s18, %s6204_s28  ;;  %p6209_p6 = scmp.lt.s32.totalorder %s77_s18, %s77_s18 }
  0x30   :  { %p6210_p7 = scmp.lt.s32.totalorder %s6208_s4, %s6204_s28 }
  0x32   :  { %p6211_p8 = por %p6210_p7, %p6209_p6 }
  0x34   :  { %p6212_p9 = pnand %p6211_p8, %p6205_p5 }
  0x36   :  { %6215 = shalt.err (!%p6212_p9)
}
  0x37   :  { %79 = dma.hbm_to_vmem [thread:$0]  %s7420_s13, 16, %s77_s18, [#allocation8]  }
  0x38   :  { %6282 = dma.done.wait [#allocation5], 16  }
  0x39   :  { %6283 = vsyncadd [#allocation5], 4294967280 }
  0x3a   :  { %6284 = dma.done.wait [#allocation8], 32  }
  0x3b   :  { %6285 = vsyncadd [#allocation8], 4294967264  ;;  %v6293_v0 = vmov 0.0   ;;  %vm114_vm0 = vcmask 130048   ;;  %v105_v1 = vld [vmem:[%s7410_s3] sm:$0xff]  ;;  %v106_v2 = vld [vmem:[%s7410_s3 + $0x8] sm:$0xff] }
  0x3c   :  { %5355 = vmatprep.mubr.f32.mxu1 %v6293_v0  ;;  %v308_v3 = vld [vmem:[%s7412_s5] sm:$0xff]  ;;  %v5671_v4 = vpack.c.bf16 %v106_v2, %v105_v1  ;;  %v309_v5 = vld [vmem:[%s7412_s5 + $0x8] sm:$0xff]  ;;  %v91_v12 = vld [vmem:[%s7409_s2 + $0x10] sm:$0xff]  ;;  %s6295_s11 = smov 96   ;;  %s6296_s22 = smov 16   ;;  %vm6300_vm1 = vmmov 0  }
  0x3d   :  { %v89_v6 = vld [vmem:[%s7409_s2] sm:$0xff]  ;;  %v6442_v7 = vpack.c.bf16 %v309_v5, %v308_v3  ;;  %v311_v9 = vld [vmem:[%s7413_s6 + $0x8] sm:$0xff]  ;;  %v92_v13 = vld [vmem:[%s7409_s2 + $0x18] sm:$0xff]  ;;  %s6297_s17 = smov 32   ;;  %s6298_s19 = smov 80   ;;  %vm2544_vm2 = vcmask 261120  }
  0x3e   :  { %5327 = vmatprep.mubr.msk.f32.mxu0 %vm114_vm0, %v89_v6  ;;  %v310_v8 = vld [vmem:[%s7413_s6] sm:$0xff]  ;;  %5672 = vmatprep.subr.bf16.mxu0 %v5671_v4  ;;  %v90_v11 = vld [vmem:[%s7409_s2 + $0x8] sm:$0xff]  ;;  %v95_v16 = vld [vmem:[%s7409_s2 + $0x30] sm:$0xff]  ;;  %vm2537_vm3 = vcmask 253952   ;;  %s7425_s4 = sld [smem:[#allocation18_spill]]  ;;  %vm2710_vm5 = vcmask 57344  }
  0x3f   :  { %v6451_v10 = vpack.c.bf16 %v311_v9, %v310_v8  ;;  %5676 = vmatprep.subr.bf16.mxu1 %v6442_v7  ;;  %5674 = vmatpush3.bf16.msra.mxu0 %v5671_v4  ;;  %v93_v14 = vld [vmem:[%s7409_s2 + $0x20] sm:$0xff]  ;;  %v94_v15 = vld [vmem:[%s7409_s2 + $0x28] sm:$0xff]  ;;  %v96_v17 = vld [vmem:[%s7409_s2 + $0x38] sm:$0xff]  ;;  %vm2834_vm12 = vcmask 64512   ;;  %s6303_s18 = smov [#allocation10]  }
  0x40   :  { %5678 = vmatpush3.bf16.msra.mxu1 %v6442_v7  ;;  %5708 = vmatprep.subr.bf16.mxu0 %v6442_v7  ;;  %v97_v18 = vld [vmem:[%s7409_s2 + $0x40] sm:$0xff]  ;;  %v98_v19 = vld [vmem:[%s7409_s2 + $0x48] sm:$0xff]  ;;  %v99_v20 = vld [vmem:[%s7409_s2 + $0x50] sm:$0xff]  ;;  %s4973_s20 = sshll.u32 %s6303_s18, 4  ;;  %s4974_s20 = int_to_ptr.vmem [resolvable:$true] %s4973_s20 }
  0x41   :  { %5680 = vmatprep.subr.bf16.mxu1 %v6451_v10  ;;  %v100_v21 = vld [vmem:[%s7409_s2 + $0x58] sm:$0xff]  ;;  %v101_v22 = vld [vmem:[%s7409_s2 + $0x60] sm:$0xff]  ;;  %v102_v23 = vld [vmem:[%s7409_s2 + $0x68] sm:$0xff] }
  0x42   :  { %5328 = vmatmul.mubr.msk.f32.vlgmr.msra.gmra.mrb[0].mxu0 %vm114_vm0, %v90_v11  ;;  %v103_v24 = vld [vmem:[%s7409_s2 + $0x70] sm:$0xff]  ;;  %v104_v25 = vld [vmem:[%s7409_s2 + $0x78] sm:$0xff]  ;;  %v5010_v26 = vld [vmem:[#allocation4] ss:$0 sm:$0xff]  ;;  %s6294_s2 = smov 64  }
  0x43   :  { %5356 = vmatmul.mubr.f32.vlgmr.msra.gmra.mrb[0].mxu1 %v6293_v0  ;;  %5330 = vmatprep.mubr.msk.f32.mxu0 %vm114_vm0, %v91_v12 }
  0x44   :  { %5682 = vmatpush3.bf16.msra.mxu1 %v6451_v10  ;;  %5362 = vmatprep.mubr.f32.mxu1 %v6293_v0 }
  0x45   :  { %5684 = vmatprep.subr.bf16.mxu1 %v6442_v7  ;;  %5710 = vmatpush3.bf16.msra.mxu0 %v6442_v7 }
  0x46   :  { %5331 = vmatmul.mubr.msk.f32.gmra.mrb[2].mxu0 %vm114_vm0, %v92_v13  ;;  %5716 = vmatprep.subr.bf16.mxu0 %v6442_v7 }
  0x47   :  { %5363 = vmatmul.mubr.f32.vlgmr.msra.gmra.mrb[2].mxu1 %v6293_v0  ;;  %5333 = vmatprep.mubr.msk.f32.mxu0 %vm114_vm0, %v93_v14 }
  0x48   :  { %5686 = vmatpush3.bf16.msra.mxu1 %v6442_v7 }
  0x49   :  { %5688 = vmatprep.subr.bf16.mxu1 %v6451_v10 }
  0x4a   :  { %5334 = vmatmul.mubr.msk.f32.gmra.mrb[4].mxu0 %vm114_vm0, %v94_v15 }
  0x4b   :  { %5336 = vmatprep.mubr.msk.f32.mxu0 %vm114_vm0, %v95_v16 }
  0x4e   :  { %5337 = vmatmul.mubr.msk.f32.gmra.mrb[6].mxu0 %vm114_vm0, %v96_v17 }
  0x4f   :  { %5339 = vmatprep.mubr.msk.f32.mxu0 %vm114_vm0, %v97_v18 }
  0x52   :  { %5340 = vmatmul.mubr.msk.f32.gmra.mrb[8].mxu0 %vm114_vm0, %v98_v19 }
  0x53   :  { %5342 = vmatprep.mubr.msk.f32.mxu0 %vm114_vm0, %v99_v20 }
  0x56   :  { %5343 = vmatmul.mubr.msk.f32.gmra.mrb[10].mxu0 %vm114_vm0, %v100_v21 }
  0x57   :  { %5345 = vmatprep.mubr.msk.f32.mxu0 %vm114_vm0, %v101_v22 }
  0x5a   :  { %5346 = vmatmul.mubr.msk.f32.gmra.mrb[12].mxu0 %vm114_vm0, %v102_v23 }
  0x5b   :  { %5348 = vmatprep.mubr.msk.f32.mxu0 %vm114_vm0, %v103_v24 }
  0x5e   :  { %5349 = vmatmul.mubr.msk.f32.gmra.mrb[14].mxu0 %vm114_vm0, %v104_v25 }
 0x115   :  { %v5329_v27 = vpop.f32.mrb[0].mxu0 }
 0x116   :  { %v5357_v28 = vpop.f32.mrb[0].mxu1  ;;  %v229_v29 = vpop.f32.mrb[1].mxu0  ;;  %v6526_v30 = vadd.f32 %v5329_v27, %v5010_v26 }
 0x117   :  { %v6528_v31 = vadd.f32 %v5010_v26, %v229_v29  ;;  %v381_v32 = vpop.f32.mrb[1].mxu1 }
 0x118   :  { %v391_v38 = vadd.f32 %v5357_v28, %v6526_v30 }
 0x119   :  { %v390_v33 = vadd.f32 %v381_v32, %v6528_v31  ;;  %v5332_v34 = vpop.f32.mrb[2].mxu0 }
 0x11a   :  { %v5364_v35 = vpop.f32.mrb[2].mxu1  ;;  %v6531_v36 = vadd.f32 %v5332_v34, %v5010_v26  ;;  %v239_v37 = vpop.f32.mrb[3].mxu0  ;;  %v5028_v5 = vmul.f32 -1.442695, %v391_v38 }
 0x11b   :  { %5870 = vtanh.f32 %v390_v33  ;;  %v458_v39 = vpop.f32.mrb[3].mxu1  ;;  %v6534_v40 = vadd.f32 %v5010_v26, %v239_v37  ;;  %v5027_v4 = vmul.f32 -1.442695, %v390_v33 }
 0x11c   :  { %469 = vrot.lane.b32.xlu0 %v458_v39, %s6294_s2  ;;  %5872 = vtanh.f32 %v391_v38 }
 0x11d   :  { %v5335_v41 = vpop.f32.mrb[4].mxu0  ;;  %5874 = vpow2.f32 %v5027_v4 }
 0x11e   :  { %v6537_v42 = vadd.f32 %v5335_v41, %v5010_v26  ;;  %v249_v43 = vpop.f32.mrb[5].mxu0  ;;  %5876 = vpow2.f32 %v5028_v5 }
 0x11f   :  { %v6539_v44 = vadd.f32 %v5010_v26, %v249_v43 }
 0x120   :  { %471 = vrot.lane.b32.xlu0 %v5364_v35, %s6294_s2 }
 0x121   :  { %v5338_v45 = vpop.f32.mrb[6].mxu0 }
 0x122   :  { %v6542_v46 = vadd.f32 %v5338_v45, %v5010_v26  ;;  %v259_v47 = vpop.f32.mrb[7].mxu0 }
 0x123   :  { %v6544_v48 = vadd.f32 %v5010_v26, %v259_v47 }
 0x125   :  { %v5871_v49 = vpop.eup %5870  ;;  %v5341_v50 = vpop.f32.mrb[8].mxu0 }
 0x126   :  { %495 = vrot.lane.b32.xlu1 %v5871_v49, %s6295_s11  ;;  %v6547_v51 = vadd.f32 %v5341_v50, %v5010_v26  ;;  %v269_v52 = vpop.f32.mrb[9].mxu0  ;;  %v5873_v54 = vpop.eup %5872 }
 0x127   :  { %v6549_v53 = vadd.f32 %v5010_v26, %v269_v52  ;;  %v5875_v6 = vpop.eup %5874 }
 0x128   :  { %v483_v9 = vadd.f32 1.0, %v5875_v6  ;;  %v5877_v12 = vpop.eup %5876 }
 0x129   :  { %v5344_v55 = vpop.f32.mrb[10].mxu0  ;;  %v484_v14 = vadd.f32 1.0, %v5877_v12 }
 0x12a   :  { %497 = vrot.lane.b32.xlu1 %v5873_v54, %s6295_s11  ;;  %v6552_v56 = vadd.f32 %v5344_v55, %v5010_v26  ;;  %v279_v57 = vpop.f32.mrb[11].mxu0 }
 0x12b   :  { %v6554_v58 = vadd.f32 %v5010_v26, %v279_v57 }
 0x12d   :  { %v5347_v59 = vpop.f32.mrb[12].mxu0 }
 0x12e   :  { %v6556_v60 = vadd.f32 %v5347_v59, %v5010_v26  ;;  %v289_v61 = vpop.f32.mrb[13].mxu0 }
 0x12f   :  { %v6558_v62 = vadd.f32 %v5010_v26, %v289_v61 }
 0x131   :  { %v5350_v63 = vpop.f32.mrb[14].mxu0 }
 0x132   :  { %v6560_v1 = vadd.f32 %v5350_v63, %v5010_v26  ;;  %v299_v2 = vpop.f32.mrb[15].mxu0 }
 0x133   :  { %v6562_v3 = vadd.f32 %v5010_v26, %v299_v2 }
 0x18e   :  { %v470_v8 = vpop.permute.xlu0 %469 }
 0x18f   :  { %v475_v11 = vadd.f32 %v470_v8, %v6562_v3 }
 0x191   :  { %5878 = vtanh.f32 %v475_v11  ;;  %v5029_v24 = vmul.f32 -1.442695, %v475_v11 }
 0x192   :  { %v472_v13 = vpop.permute.xlu0 %471  ;;  %5880 = vrcp.f32 %v483_v9 }
 0x193   :  { %v476_v15 = vadd.f32 %v472_v13, %v6560_v1 }
 0x195   :  { %5882 = vtanh.f32 %v476_v15  ;;  %v5030_v25 = vmul.f32 -1.442695, %v476_v15 }
 0x196   :  { %5884 = vrcp.f32 %v484_v14 }
 0x197   :  { %5886 = vpow2.f32 %v5029_v24 }
 0x198   :  { %v496_v16 = vpop.permute.xlu1 %495  ;;  %5888 = vpow2.f32 %v5030_v25 }
 0x19b   :  { %v5879_v17 = vpop.eup %5878 }
 0x19c   :  { %543 = vrot.lane.b32.xlu0 %v5879_v17, %s6295_s11  ;;  %v5881_v18 = vpop.eup %5880  ;;  %v498_v21 = vpop.permute.xlu1 %497 }
 0x19d   :  { %v501_v19 = vmul.f32 %v5881_v18, %v496_v16  ;;  %v491_v35 = vmul.f32 0.0, %v5881_v18 }
 0x19f   :  { %v5883_v20 = vpop.eup %5882 }
 0x1a0   :  { %545 = vrot.lane.b32.xlu1 %v5883_v20, %s6295_s11  ;;  %505 = vrot.lane.b32.xlu0 %v501_v19, %s6296_s22  ;;  %v5885_v22 = vpop.eup %5884 }
 0x1a1   :  { %v502_v23 = vmul.f32 %v5885_v22, %v498_v21  ;;  %v5887_v26 = vpop.eup %5886  ;;  %v492_v45 = vmul.f32 0.0, %v5885_v22 }
 0x1a2   :  { %v531_v27 = vadd.f32 1.0, %v5887_v26  ;;  %v5889_v28 = vpop.eup %5888 }
 0x1a3   :  { %v532_v29 = vadd.f32 1.0, %v5889_v28 }
 0x1a4   :  { %507 = vrot.lane.b32.xlu1 %v502_v23, %s6296_s22  ;;  %5890 = vrcp.f32 %v531_v27 }
 0x1a5   :  { %5892 = vrcp.f32 %v532_v29 }
 0x1ae   :  { %v5891_v32 = vpop.eup %5890 }
 0x1af   :  { %v5893_v37 = vpop.eup %5892  ;;  %v539_v54 = vmul.f32 0.0, %v5891_v32 }
 0x1b0   :  { %v540_v59 = vmul.f32 0.0, %v5893_v37 }
 0x20e   :  { %v544_v33 = vpop.permute.xlu0 %543 }
 0x20f   :  { %v549_v34 = vmul.f32 %v5891_v32, %v544_v33 }
 0x211   :  { %553 = vrot.lane.b32.xlu0 %v549_v34, %s6296_s22 }
 0x212   :  { %v546_v38 = vpop.permute.xlu1 %545  ;;  %v506_v39 = vpop.permute.xlu0 %505 }
 0x213   :  { %v550_v41 = vmul.f32 %v5893_v37, %v546_v38  ;;  %v6571_v43 = vadd.f32 %v506_v39, %v491_v35 }
 0x215   :  { %5894 = vtanh.f32 %v6571_v43  ;;  %555 = vrot.lane.b32.xlu1 %v550_v41, %s6296_s22 }
 0x216   :  { %v508_v47 = vpop.permute.xlu1 %507 }
 0x217   :  { %v6575_v49 = vadd.f32 %v508_v47, %v492_v45 }
 0x219   :  { %5896 = vtanh.f32 %v6575_v49 }
 0x21f   :  { %v5895_v50 = vpop.eup %5894 }
 0x220   :  { %517 = vrot.lane.b32.xlu0 %v5895_v50, %s6297_s17 }
 0x223   :  { %v5897_v52 = vpop.eup %5896 }
 0x224   :  { %519 = vrot.lane.b32.xlu1 %v5897_v52, %s6297_s17 }
 0x283   :  { %v554_v55 = vpop.permute.xlu0 %553 }
 0x284   :  { %v6580_v57 = vadd.f32 %v554_v55, %v539_v54 }
 0x286   :  { %5898 = vtanh.f32 %v6580_v57 }
 0x287   :  { %v556_v61 = vpop.permute.xlu1 %555 }
 0x288   :  { %v6583_v63 = vadd.f32 %v556_v61, %v540_v59 }
 0x28a   :  { %5900 = vtanh.f32 %v6583_v63 }
 0x290   :  { %v5899_v2 = vpop.eup %5898 }
 0x291   :  { %565 = vrot.lane.b32.xlu0 %v5899_v2, %s6297_s17 }
 0x292   :  { %v518_v4 = vpop.permute.xlu0 %517 }
 0x293   :  { %v523_v5 = vmul.f32 %v5881_v18, %v518_v4 }
 0x294   :  { %v5901_v6 = vpop.eup %5900 }
 0x295   :  { %567 = vrot.lane.b32.xlu1 %v5901_v6, %s6297_s17  ;;  %575 = vrot.lane.b32.xlu0 %v523_v5, %s6298_s19 }
 0x296   :  { %v520_v8 = vpop.permute.xlu1 %519 }
 0x297   :  { %v524_v9 = vmul.f32 %v5885_v22, %v520_v8 }
 0x299   :  { %577 = vrot.lane.b32.xlu1 %v524_v9, %s6298_s19 }
 0x303   :  { %v566_v11 = vpop.permute.xlu0 %565 }
 0x304   :  { %v571_v12 = vmul.f32 %v5891_v32, %v566_v11 }
 0x306   :  { %662 = vrot.lane.b32.xlu0 %v571_v12, %s6296_s22 }
 0x307   :  { %v568_v13 = vpop.permute.xlu1 %567  ;;  %v576_v14 = vpop.permute.xlu0 %575 }
 0x308   :  { %v572_v15 = vmul.f32 %v5893_v37, %v568_v13  ;;  %5369 = vmatprep.mubr.msk.f32.mxu1 %vm114_vm0, %v576_v14 }
 0x30a   :  { %664 = vrot.lane.b32.xlu1 %v572_v15, %s6296_s22 }
 0x30b   :  { %v578_v16 = vpop.permute.xlu1 %577 }
 0x30c   :  { %5370 = vmatmul.mubr.msk.f32.vlgmr.msra.gmra.mrb[4].mxu1 %vm114_vm0, %v578_v16 }
 0x30d   :  { %5690 = vmatpush3.bf16.msra.mxu1 %v6451_v10 }
 0x30e   :  { %5692 = vmatprep.subr.bf16.mxu1 %v6442_v7 }
 0x378   :  { %v663_v17 = vpop.permute.xlu0 %662 }
 0x379   :  { %5376 = vmatprep.mubr.msk.f32.mxu1 %vm114_vm0, %v663_v17 }
 0x37c   :  { %v665_v18 = vpop.permute.xlu1 %664 }
 0x37d   :  { %5377 = vmatmul.mubr.msk.f32.vlgmr.msra.gmra.mrb[6].mxu1 %vm114_vm0, %v665_v18 }
 0x37e   :  { %5694 = vmatpush3.bf16.msra.mxu1 %v6442_v7 }
 0x37f   :  { %5696 = vmatprep.subr.bf16.mxu1 %v6451_v10 }
 0x3df   :  { %v5371_v19 = vpop.f32.mrb[4].mxu1 }
 0x3e0   :  { %v649_v20 = vpop.f32.mrb[5].mxu1  ;;  %v659_v21 = vadd.f32 %v5371_v19, %v6531_v36 }
 0x3e1   :  { %v658_v22 = vadd.f32 %v649_v20, %v6534_v40 }
 0x3e2   :  { %5902 = vtanh.f32 %v659_v21  ;;  %v5036_v27 = vmul.f32 -1.442695, %v659_v21 }
 0x3e3   :  { %5904 = vtanh.f32 %v658_v22  ;;  %v5035_v28 = vmul.f32 -1.442695, %v658_v22 }
 0x3e4   :  { %5906 = vpow2.f32 %v5036_v27 }
 0x3e5   :  { %5908 = vpow2.f32 %v5035_v28 }
 0x3ec   :  { %v5903_v25 = vpop.eup %5902 }
 0x3ed   :  { %v5905_v26 = vpop.eup %5904 }
 0x3ee   :  { %v5907_v29 = vpop.eup %5906 }
 0x3ef   :  { %v5909_v32 = vpop.eup %5908  ;;  %v762_v34 = vadd.f32 1.0, %v5907_v29 }
 0x3f0   :  { %v761_v38 = vadd.f32 1.0, %v5909_v32 }
 0x450   :  { %v5378_v23 = vpop.f32.mrb[6].mxu1 }
 0x451   :  { %749 = vrot.lane.b32.xlu1 %v5378_v23, %s6294_s2  ;;  %v736_v24 = vpop.f32.mrb[7].mxu1 }
 0x452   :  { %747 = vrot.lane.b32.xlu0 %v736_v24, %s6294_s2 }
 0x455   :  { %775 = vrot.lane.b32.xlu1 %v5903_v25, %s6295_s11 }
 0x456   :  { %773 = vrot.lane.b32.xlu0 %v5905_v26, %s6295_s11 }
 0x4c3   :  { %v750_v33 = vpop.permute.xlu1 %749 }
 0x4c4   :  { %v754_v35 = vadd.f32 %v750_v33, %v6556_v60  ;;  %v748_v37 = vpop.permute.xlu0 %747 }
 0x4c5   :  { %v753_v39 = vadd.f32 %v748_v37, %v6558_v62 }
 0x4c6   :  { %5910 = vtanh.f32 %v754_v35  ;;  %v5038_v61 = vmul.f32 -1.442695, %v754_v35 }
 0x4c7   :  { %5912 = vtanh.f32 %v753_v39  ;;  %v776_v45 = vpop.permute.xlu1 %775  ;;  %v5037_v2 = vmul.f32 -1.442695, %v753_v39 }
 0x4c8   :  { %5914 = vrcp.f32 %v762_v34  ;;  %v774_v50 = vpop.permute.xlu0 %773 }
 0x4c9   :  { %5916 = vrcp.f32 %v761_v38 }
 0x4ca   :  { %5918 = vpow2.f32 %v5038_v61 }
 0x4cb   :  { %5920 = vpow2.f32 %v5037_v2 }
 0x4d0   :  { %v5911_v41 = vpop.eup %5910 }
 0x4d1   :  { %v5913_v47 = vpop.eup %5912  ;;  %823 = vrot.lane.b32.xlu1 %v5911_v41, %s6295_s11 }
 0x4d2   :  { %v5915_v52 = vpop.eup %5914  ;;  %821 = vrot.lane.b32.xlu0 %v5913_v47, %s6295_s11 }
 0x4d3   :  { %v5917_v54 = vpop.eup %5916  ;;  %v780_v55 = vmul.f32 %v5915_v52, %v776_v45  ;;  %v770_v16 = vmul.f32 %v5915_v52, %v6575_v49 }
 0x4d4   :  { %v779_v59 = vmul.f32 %v5917_v54, %v774_v50  ;;  %v5919_v4 = vpop.eup %5918  ;;  %v769_v18 = vmul.f32 %v5917_v54, %v6571_v43 }
 0x4d5   :  { %785 = vrot.lane.b32.xlu1 %v780_v55, %s6296_s22  ;;  %v5921_v5 = vpop.eup %5920  ;;  %v810_v6 = vadd.f32 1.0, %v5919_v4 }
 0x4d6   :  { %783 = vrot.lane.b32.xlu0 %v779_v59, %s6296_s22  ;;  %v809_v8 = vadd.f32 1.0, %v5921_v5 }
 0x4d7   :  { %5922 = vrcp.f32 %v810_v6 }
 0x4d8   :  { %5924 = vrcp.f32 %v809_v8 }
 0x4e1   :  { %v5923_v9 = vpop.eup %5922 }
 0x4e2   :  { %v5925_v12 = vpop.eup %5924  ;;  %v818_v49 = vmul.f32 %v5923_v9, %v6583_v63 }
 0x4e3   :  { %v817_v43 = vmul.f32 %v5925_v12, %v6580_v57 }
 0x543   :  { %v824_v11 = vpop.permute.xlu1 %823 }
 0x544   :  { %v828_v13 = vmul.f32 %v5923_v9, %v824_v11  ;;  %v822_v14 = vpop.permute.xlu0 %821 }
 0x545   :  { %v827_v15 = vmul.f32 %v5925_v12, %v822_v14 }
 0x546   :  { %833 = vrot.lane.b32.xlu1 %v828_v13, %s6296_s22 }
 0x547   :  { %v786_v17 = vpop.permute.xlu1 %785  ;;  %831 = vrot.lane.b32.xlu0 %v827_v15, %s6296_s22 }
 0x548   :  { %v6616_v19 = vadd.f32 %v786_v17, %v770_v16  ;;  %v784_v20 = vpop.permute.xlu0 %783 }
 0x549   :  { %v6618_v21 = vadd.f32 %v784_v20, %v769_v18 }
 0x54a   :  { %5926 = vtanh.f32 %v6616_v19 }
 0x54b   :  { %5928 = vtanh.f32 %v6618_v21 }
 0x554   :  { %v5927_v22 = vpop.eup %5926 }
 0x555   :  { %v5929_v23 = vpop.eup %5928  ;;  %797 = vrot.lane.b32.xlu1 %v5927_v22, %s6297_s17 }
 0x556   :  { %795 = vrot.lane.b32.xlu0 %v5929_v23, %s6297_s17 }
 0x5b8   :  { %v834_v24 = vpop.permute.xlu1 %833 }
 0x5b9   :  { %v6626_v25 = vadd.f32 %v834_v24, %v818_v49  ;;  %v832_v26 = vpop.permute.xlu0 %831 }
 0x5ba   :  { %v6628_v27 = vadd.f32 %v832_v26, %v817_v43 }
 0x5bb   :  { %5930 = vtanh.f32 %v6626_v25 }
 0x5bc   :  { %5932 = vtanh.f32 %v6628_v27 }
 0x5c5   :  { %v5931_v28 = vpop.eup %5930 }
 0x5c6   :  { %v5933_v29 = vpop.eup %5932  ;;  %845 = vrot.lane.b32.xlu1 %v5931_v28, %s6297_s17 }
 0x5c7   :  { %v798_v32 = vpop.permute.xlu1 %797  ;;  %843 = vrot.lane.b32.xlu0 %v5933_v29, %s6297_s17 }
 0x5c8   :  { %v802_v63 = vmul.f32 %v5915_v52, %v798_v32  ;;  %v796_v33 = vpop.permute.xlu0 %795 }
 0x5c9   :  { %v801_v34 = vmul.f32 %v5917_v54, %v796_v33 }
 0x5ca   :  { %855 = vrot.lane.b32.xlu1 %v802_v63, %s6298_s19 }
 0x5cb   :  { %853 = vrot.lane.b32.xlu0 %v801_v34, %s6298_s19 }
 0x638   :  { %v846_v57 = vpop.permute.xlu1 %845 }
 0x639   :  { %v850_v35 = vmul.f32 %v5923_v9, %v846_v57  ;;  %v844_v37 = vpop.permute.xlu0 %843 }
 0x63a   :  { %v849_v38 = vmul.f32 %v5925_v12, %v844_v37 }
 0x63b   :  { %942 = vrot.lane.b32.xlu1 %v850_v35, %s6296_s22 }
 0x63c   :  { %940 = vrot.lane.b32.xlu0 %v849_v38, %s6296_s22  ;;  %v856_v41 = vpop.permute.xlu1 %855 }
 0x63d   :  { %v854_v39 = vpop.permute.xlu0 %853 }
 0x63e   :  { %5383 = vmatprep.mubr.msk.f32.mxu1 %vm114_vm0, %v854_v39 }
 0x63f   :  { %5384 = vmatmul.mubr.msk.f32.vlgmr.msra.gmra.mrb[8].mxu1 %vm114_vm0, %v856_v41 }
 0x640   :  { %5698 = vmatpush3.bf16.msra.mxu1 %v6451_v10 }
 0x641   :  { %5700 = vmatprep.subr.bf16.mxu1 %v6442_v7 }
 0x6ad   :  { %v943_v47 = vpop.permute.xlu1 %942 }
 0x6ae   :  { %v941_v45 = vpop.permute.xlu0 %940 }
 0x6af   :  { %5390 = vmatprep.mubr.msk.f32.mxu1 %vm114_vm0, %v941_v45 }
 0x6b0   :  { %5391 = vmatmul.mubr.msk.f32.vlgmr.msra.gmra.mrb[10].mxu1 %vm114_vm0, %v943_v47 }
 0x6b1   :  { %5702 = vmatpush3.bf16.msra.mxu1 %v6442_v7 }
 0x6b2   :  { %5704 = vmatprep.subr.bf16.mxu1 %v6451_v10 }
 0x712   :  { %v5385_v50 = vpop.f32.mrb[8].mxu1 }
 0x713   :  { %v927_v52 = vpop.f32.mrb[9].mxu1  ;;  %v937_v54 = vadd.f32 %v5385_v50, %v6537_v42 }
 0x714   :  { %v936_v55 = vadd.f32 %v927_v52, %v6539_v44 }
 0x715   :  { %5934 = vtanh.f32 %v937_v54  ;;  %v5044_v5 = vmul.f32 -1.442695, %v937_v54 }
 0x716   :  { %5936 = vtanh.f32 %v936_v55  ;;  %v5043_v6 = vmul.f32 -1.442695, %v936_v55 }
 0x717   :  { %5938 = vpow2.f32 %v5044_v5 }
 0x718   :  { %5940 = vpow2.f32 %v5043_v6 }
 0x71f   :  { %v5935_v2 = vpop.eup %5934 }
 0x720   :  { %v5937_v4 = vpop.eup %5936 }
 0x721   :  { %v5939_v8 = vpop.eup %5938 }
 0x722   :  { %v5941_v9 = vpop.eup %5940  ;;  %v1040_v12 = vadd.f32 1.0, %v5939_v8 }
 0x723   :  { %v1039_v15 = vadd.f32 1.0, %v5941_v9 }
 0x783   :  { %v5392_v59 = vpop.f32.mrb[10].mxu1 }
 0x784   :  { %1027 = vrot.lane.b32.xlu1 %v5392_v59, %s6294_s2  ;;  %v1014_v61 = vpop.f32.mrb[11].mxu1 }
 0x785   :  { %1025 = vrot.lane.b32.xlu0 %v1014_v61, %s6294_s2 }
 0x788   :  { %1053 = vrot.lane.b32.xlu1 %v5935_v2, %s6295_s11 }
 0x789   :  { %1051 = vrot.lane.b32.xlu0 %v5937_v4, %s6295_s11 }
 0x7f6   :  { %v1028_v11 = vpop.permute.xlu1 %1027 }
 0x7f7   :  { %v1032_v13 = vadd.f32 %v1028_v11, %v6552_v56  ;;  %v1026_v14 = vpop.permute.xlu0 %1025 }
 0x7f8   :  { %v1031_v16 = vadd.f32 %v1026_v14, %v6554_v58 }
 0x7f9   :  { %5942 = vtanh.f32 %v1032_v13  ;;  %v5046_v26 = vmul.f32 -1.442695, %v1032_v13 }
 0x7fa   :  { %5944 = vtanh.f32 %v1031_v16  ;;  %v1054_v18 = vpop.permute.xlu1 %1053  ;;  %v5045_v28 = vmul.f32 -1.442695, %v1031_v16 }
 0x7fb   :  { %5946 = vrcp.f32 %v1040_v12  ;;  %v1052_v22 = vpop.permute.xlu0 %1051 }
 0x7fc   :  { %5948 = vrcp.f32 %v1039_v15 }
 0x7fd   :  { %5950 = vpow2.f32 %v5046_v26 }
 0x7fe   :  { %5952 = vpow2.f32 %v5045_v28 }
 0x803   :  { %v5943_v17 = vpop.eup %5942 }
 0x804   :  { %v5945_v20 = vpop.eup %5944  ;;  %1101 = vrot.lane.b32.xlu1 %v5943_v17, %s6295_s11 }
 0x805   :  { %v5947_v23 = vpop.eup %5946  ;;  %1099 = vrot.lane.b32.xlu0 %v5945_v20, %s6295_s11 }
 0x806   :  { %v5949_v49 = vpop.eup %5948  ;;  %v1058_v24 = vmul.f32 %v5947_v23, %v1054_v18  ;;  %v1048_v41 = vmul.f32 %v5947_v23, %v6616_v19 }
 0x807   :  { %v1057_v43 = vmul.f32 %v5949_v49, %v1052_v22  ;;  %v5951_v29 = vpop.eup %5950  ;;  %v1047_v47 = vmul.f32 %v5949_v49, %v6618_v21 }
 0x808   :  { %1063 = vrot.lane.b32.xlu1 %v1058_v24, %s6296_s22  ;;  %v5953_v32 = vpop.eup %5952  ;;  %v1088_v63 = vadd.f32 1.0, %v5951_v29 }
 0x809   :  { %1061 = vrot.lane.b32.xlu0 %v1057_v43, %s6296_s22  ;;  %v1087_v33 = vadd.f32 1.0, %v5953_v32 }
 0x80a   :  { %5954 = vrcp.f32 %v1088_v63 }
 0x80b   :  { %5956 = vrcp.f32 %v1087_v33 }
 0x814   :  { %v5955_v34 = vpop.eup %5954 }
 0x815   :  { %v5957_v35 = vpop.eup %5956  ;;  %v1096_v19 = vmul.f32 %v5955_v34, %v6626_v25 }
 0x816   :  { %v1095_v21 = vmul.f32 %v5957_v35, %v6628_v27 }
 0x876   :  { %v1102_v57 = vpop.permute.xlu1 %1101 }
 0x877   :  { %v1106_v37 = vmul.f32 %v5955_v34, %v1102_v57  ;;  %v1100_v38 = vpop.permute.xlu0 %1099 }
 0x878   :  { %v1105_v39 = vmul.f32 %v5957_v35, %v1100_v38 }
 0x879   :  { %1111 = vrot.lane.b32.xlu1 %v1106_v37, %s6296_s22 }
 0x87a   :  { %v1064_v45 = vpop.permute.xlu1 %1063  ;;  %1109 = vrot.lane.b32.xlu0 %v1105_v39, %s6296_s22 }
 0x87b   :  { %v6662_v50 = vadd.f32 %v1064_v45, %v1048_v41  ;;  %v1062_v52 = vpop.permute.xlu0 %1061 }
 0x87c   :  { %v6664_v54 = vadd.f32 %v1062_v52, %v1047_v47 }
 0x87d   :  { %5958 = vtanh.f32 %v6662_v50 }
 0x87e   :  { %5960 = vtanh.f32 %v6664_v54 }
 0x887   :  { %v5959_v55 = vpop.eup %5958 }
 0x888   :  { %v5961_v59 = vpop.eup %5960  ;;  %1075 = vrot.lane.b32.xlu1 %v5959_v55, %s6297_s17 }
 0x889   :  { %1073 = vrot.lane.b32.xlu0 %v5961_v59, %s6297_s17 }
 0x8eb   :  { %v1112_v61 = vpop.permute.xlu1 %1111 }
 0x8ec   :  { %v6672_v2 = vadd.f32 %v1112_v61, %v1096_v19  ;;  %v1110_v4 = vpop.permute.xlu0 %1109 }
 0x8ed   :  { %v6674_v5 = vadd.f32 %v1110_v4, %v1095_v21 }
 0x8ee   :  { %5962 = vtanh.f32 %v6672_v2 }
 0x8ef   :  { %5964 = vtanh.f32 %v6674_v5 }
 0x8f8   :  { %v5963_v6 = vpop.eup %5962 }
 0x8f9   :  { %v5965_v8 = vpop.eup %5964  ;;  %1123 = vrot.lane.b32.xlu1 %v5963_v6, %s6297_s17 }
 0x8fa   :  { %v1076_v9 = vpop.permute.xlu1 %1075  ;;  %1121 = vrot.lane.b32.xlu0 %v5965_v8, %s6297_s17 }
 0x8fb   :  { %v1080_v25 = vmul.f32 %v5947_v23, %v1076_v9  ;;  %v1074_v11 = vpop.permute.xlu0 %1073 }
 0x8fc   :  { %v1079_v12 = vmul.f32 %v5949_v49, %v1074_v11 }
 0x8fd   :  { %1133 = vrot.lane.b32.xlu1 %v1080_v25, %s6298_s19 }
 0x8fe   :  { %1131 = vrot.lane.b32.xlu0 %v1079_v12, %s6298_s19 }
 0x96b   :  { %v1124_v27 = vpop.permute.xlu1 %1123 }
 0x96c   :  { %v1128_v13 = vmul.f32 %v5955_v34, %v1124_v27  ;;  %v1122_v14 = vpop.permute.xlu0 %1121 }
 0x96d   :  { %v1127_v15 = vmul.f32 %v5957_v35, %v1122_v14 }
 0x96e   :  { %1220 = vrot.lane.b32.xlu1 %v1128_v13, %s6296_s22 }
 0x96f   :  { %1218 = vrot.lane.b32.xlu0 %v1127_v15, %s6296_s22  ;;  %v1134_v17 = vpop.permute.xlu1 %1133 }
 0x970   :  { %v1132_v16 = vpop.permute.xlu0 %1131 }
 0x971   :  { %5397 = vmatprep.mubr.msk.f32.mxu1 %vm114_vm0, %v1132_v16 }
 0x972   :  { %5398 = vmatmul.mubr.msk.f32.vlgmr.msra.gmra.mrb[12].mxu1 %vm114_vm0, %v1134_v17 }
 0x973   :  { %5706 = vmatpush3.bf16.msra.mxu1 %v6451_v10 }
 0x974   :  { %5712 = vmatprep.subr.bf16.mxu1 %v6451_v10 }
 0x9e0   :  { %v1221_v20 = vpop.permute.xlu1 %1220 }
 0x9e1   :  { %v1219_v18 = vpop.permute.xlu0 %1218 }
 0x9e2   :  { %5404 = vmatprep.mubr.msk.f32.mxu1 %vm114_vm0, %v1219_v18 }
 0x9e3   :  { %5405 = vmatmul.mubr.msk.f32.vlgmr.msra.gmra.mrb[14].mxu1 %vm114_vm0, %v1221_v20 }
 0x9e4   :  { %5714 = vmatpush3.bf16.msra.mxu1 %v6451_v10 }
 0x9e5   :  { %5720 = vmatprep.subr.bf16.mxu1 %v6451_v10 }
 0xa45   :  { %v5399_v22 = vpop.f32.mrb[12].mxu1 }
 0xa46   :  { %v1205_v23 = vpop.f32.mrb[13].mxu1 }
 0xa47   :  { %v1214_v25 = vadd.f32 %v1205_v23, %v6544_v48 }
 0xa49   :  { %v5051_v16 = vmul.f32 -1.442695, %v1214_v25 }
 0xab6   :  { %v5406_v49 = vpop.f32.mrb[14].mxu1 }
 0xab7   :  { %1305 = vrot.lane.b32.xlu1 %v5406_v49, %s6294_s2  ;;  %v1292_v24 = vpop.f32.mrb[15].mxu1 }
 0xab8   :  { %1303 = vrot.lane.b32.xlu0 %v1292_v24, %s6294_s2 }
 0xb29   :  { %v1306_v43 = vpop.permute.xlu1 %1305 }
 0xb2a   :  { %v1310_v26 = vadd.f32 %v1306_v43, %v6547_v51  ;;  %v1304_v28 = vpop.permute.xlu0 %1303 }
 0xb2b   :  { %v1309_v29 = vadd.f32 %v1304_v28, %v6549_v53 }
 0xb2c   :  { %5966 = vtanh.f32 %v1310_v26  ;;  %v5054_v33 = vmul.f32 -1.442695, %v1310_v26 }
 0xb2d   :  { %5968 = vtanh.f32 %v1309_v29  ;;  %v5053_v34 = vmul.f32 -1.442695, %v1309_v29 }
 0xb2e   :  { %5970 = vpow2.f32 %v5054_v33 }
 0xb2f   :  { %5972 = vpow2.f32 %v5053_v34 }
 0xb36   :  { %v5967_v32 = vpop.eup %5966 }
 0xb37   :  { %v5969_v63 = vpop.eup %5968  ;;  %1379 = vrot.lane.b32.xlu1 %v5967_v32, %s6295_s11 }
 0xb38   :  { %1377 = vrot.lane.b32.xlu0 %v5969_v63, %s6295_s11  ;;  %v5971_v57 = vpop.eup %5970 }
 0xb39   :  { %v5973_v35 = vpop.eup %5972  ;;  %v1366_v37 = vadd.f32 1.0, %v5971_v57 }
 0xb3a   :  { %v1365_v38 = vadd.f32 1.0, %v5973_v35 }
 0xb3b   :  { %5974 = vrcp.f32 %v1366_v37 }
 0xb3c   :  { %5976 = vrcp.f32 %v1365_v38 }
 0xb45   :  { %v5975_v39 = vpop.eup %5974 }
 0xb46   :  { %v5977_v45 = vpop.eup %5976  ;;  %v1374_v59 = vmul.f32 %v5975_v39, %v6672_v2  ;;  %v1215_v2 = vadd.f32 %v5399_v22, %v6542_v46 }
 0xb47   :  { %v1373_v61 = vmul.f32 %v5977_v45, %v6674_v5 }
 0xb48   :  { %v5052_v15 = vmul.f32 -1.442695, %v1215_v2 }
 0xba9   :  { %v1380_v41 = vpop.permute.xlu1 %1379 }
 0xbaa   :  { %v1384_v47 = vmul.f32 %v5975_v39, %v1380_v41  ;;  %v1378_v52 = vpop.permute.xlu0 %1377 }
 0xbab   :  { %v1383_v55 = vmul.f32 %v5977_v45, %v1378_v52 }
 0xbac   :  { %1389 = vrot.lane.b32.xlu1 %v1384_v47, %s6296_s22 }
 0xbad   :  { %1387 = vrot.lane.b32.xlu0 %v1383_v55, %s6296_s22 }
 0xc1e   :  { %v1390_v19 = vpop.permute.xlu1 %1389 }
 0xc1f   :  { %v6702_v21 = vadd.f32 %v1390_v19, %v1374_v59  ;;  %v1388_v4 = vpop.permute.xlu0 %1387 }
 0xc20   :  { %v6704_v6 = vadd.f32 %v1388_v4, %v1373_v61 }
 0xc21   :  { %5978 = vtanh.f32 %v6702_v21 }
 0xc22   :  { %5980 = vtanh.f32 %v6704_v6 }
 0xc23   :  { %5982 = vtanh.f32 %v1215_v2 }
 0xc24   :  { %5984 = vtanh.f32 %v1214_v25 }
 0xc25   :  { %5986 = vpow2.f32 %v5052_v15 }
 0xc26   :  { %5988 = vpow2.f32 %v5051_v16 }
 0xc2b   :  { %v5979_v8 = vpop.eup %5978 }
 0xc2c   :  { %v5981_v9 = vpop.eup %5980  ;;  %1401 = vrot.lane.b32.xlu1 %v5979_v8, %s6297_s17 }
 0xc2d   :  { %1399 = vrot.lane.b32.xlu0 %v5981_v9, %s6297_s17  ;;  %v5983_v13 = vpop.eup %5982 }
 0xc2e   :  { %v5985_v14 = vpop.eup %5984 }
 0xc2f   :  { %v5987_v17 = vpop.eup %5986 }
 0xc30   :  { %v5989_v18 = vpop.eup %5988  ;;  %v1318_v20 = vadd.f32 1.0, %v5987_v17 }
 0xc31   :  { %v1317_v22 = vadd.f32 1.0, %v5989_v18 }
 0xc32   :  { %5990 = vrcp.f32 %v1318_v20 }
 0xc33   :  { %5992 = vrcp.f32 %v1317_v22 }
 0xc3c   :  { %v5991_v24 = vpop.eup %5990 }
 0xc3d   :  { %v5993_v26 = vpop.eup %5992  ;;  %v1326_v63 = vmul.f32 %v5991_v24, %v6662_v50 }
 0xc3e   :  { %v1325_v34 = vmul.f32 %v5993_v26, %v6664_v54 }
 0xc9e   :  { %v1402_v5 = vpop.permute.xlu1 %1401 }
 0xc9f   :  { %v1406_v11 = vmul.f32 %v5975_v39, %v1402_v5  ;;  %v1400_v12 = vpop.permute.xlu0 %1399 }
 0xca0   :  { %v1405_v27 = vmul.f32 %v5977_v45, %v1400_v12 }
 0xca1   :  { %1498 = vrot.lane.b32.xlu1 %v1406_v11, %s6296_s22 }
 0xca2   :  { %1496 = vrot.lane.b32.xlu0 %v1405_v27, %s6296_s22 }
 0xca5   :  { %1331 = vrot.lane.b32.xlu1 %v5983_v13, %s6295_s11 }
 0xca6   :  { %1329 = vrot.lane.b32.xlu0 %v5985_v14, %s6295_s11 }
 0xd13   :  { %v1499_v23 = vpop.permute.xlu1 %1498 }
 0xd14   :  { %v1497_v49 = vpop.permute.xlu0 %1496 }
 0xd15   :  { %5418 = vmatprep.mubr.msk.f32.mxu1 %vm114_vm0, %v1497_v49 }
 0xd16   :  { %5419 = vmatmul.mubr.msk.f32.vlgmr.msra.gmra.mrb[16].mxu1 %vm114_vm0, %v1499_v23 }
 0xd17   :  { %v1332_v43 = vpop.permute.xlu1 %1331  ;;  %5722 = vmatpush3.bf16.msra.mxu1 %v6451_v10 }
 0xd18   :  { %v1336_v28 = vmul.f32 %v5991_v24, %v1332_v43  ;;  %v1330_v29 = vpop.permute.xlu0 %1329  ;;  %5728 = vmatprep.subr.bf16.mxu1 %v6451_v10 }
 0xd19   :  { %v1335_v32 = vmul.f32 %v5993_v26, %v1330_v29 }
 0xd1a   :  { %1341 = vrot.lane.b32.xlu1 %v1336_v28, %s6296_s22 }
 0xd1b   :  { %1339 = vrot.lane.b32.xlu0 %v1335_v32, %s6296_s22 }
 0xd8c   :  { %v1342_v33 = vpop.permute.xlu1 %1341 }
 0xd8d   :  { %v6724_v57 = vadd.f32 %v1342_v33, %v1326_v63  ;;  %v1340_v35 = vpop.permute.xlu0 %1339 }
 0xd8e   :  { %v6726_v37 = vadd.f32 %v1340_v35, %v1325_v34 }
 0xd8f   :  { %5994 = vtanh.f32 %v6724_v57 }
 0xd90   :  { %5996 = vtanh.f32 %v6726_v37 }
 0xd99   :  { %v5995_v38 = vpop.eup %5994 }
 0xd9a   :  { %v5997_v39 = vpop.eup %5996  ;;  %1353 = vrot.lane.b32.xlu1 %v5995_v38, %s6297_s17 }
 0xd9b   :  { %1351 = vrot.lane.b32.xlu0 %v5997_v39, %s6297_s17 }
 0xde9   :  { %v5420_v41 = vpop.f32.mrb[16].mxu1 }
 0xdea   :  { %v1570_v50 = vpop.f32.mrb[17].mxu1 }
 0xe0c   :  { %v1354_v45 = vpop.permute.xlu1 %1353 }
 0xe0d   :  { %v1358_v47 = vmul.f32 %v5991_v24, %v1354_v45  ;;  %v1352_v54 = vpop.permute.xlu0 %1351 }
 0xe0e   :  { %v1357_v52 = vmul.f32 %v5993_v26, %v1352_v54 }
 0xe0f   :  { %1411 = vrot.lane.b32.xlu1 %v1358_v47, %s6298_s19 }
 0xe10   :  { %1409 = vrot.lane.b32.xlu0 %v1357_v52, %s6298_s19 }
 0xe13   :  { %1583 = vrot.lane.b32.xlu1 %v5420_v41, %s6294_s2 }
 0xe14   :  { %1581 = vrot.lane.b32.xlu0 %v1570_v50, %s6294_s2 }
 0xe81   :  { %v1412_v55 = vpop.permute.xlu1 %1411 }
 0xe82   :  { %v1410_v59 = vpop.permute.xlu0 %1409 }
 0xe83   :  { %5411 = vmatprep.mubr.msk.f32.mxu0 %vm114_vm0, %v1410_v59 }
 0xe84   :  { %5412 = vmatmul.mubr.msk.f32.vlgmr.msra.gmra.mrb[16].mxu0 %vm114_vm0, %v1412_v55 }
 0xe85   :  { %v1584_v19 = vpop.permute.xlu1 %1583  ;;  %5718 = vmatpush3.bf16.msra.mxu0 %v6442_v7 }
 0xe86   :  { %v1588_v61 = vadd.f32 %v1584_v19, %v6542_v46  ;;  %v1582_v4 = vpop.permute.xlu0 %1581  ;;  %5724 = vmatprep.subr.bf16.mxu0 %v6442_v7 }
 0xe87   :  { %v1587_v8 = vadd.f32 %v1582_v4, %v6544_v48 }
 0xe88   :  { %5998 = vtanh.f32 %v1588_v61  ;;  %v5062_v25 = vmul.f32 -1.442695, %v1588_v61 }
 0xe89   :  { %6000 = vtanh.f32 %v1587_v8  ;;  %v5061_v5 = vmul.f32 -1.442695, %v1587_v8 }
 0xe8a   :  { %6002 = vpow2.f32 %v5062_v25 }
 0xe8b   :  { %6004 = vpow2.f32 %v5061_v5 }
 0xe92   :  { %v5999_v9 = vpop.eup %5998 }
 0xe93   :  { %v6001_v2 = vpop.eup %6000  ;;  %1657 = vrot.lane.b32.xlu1 %v5999_v9, %s6295_s11 }
 0xe94   :  { %1655 = vrot.lane.b32.xlu0 %v6001_v2, %s6295_s11  ;;  %v6003_v11 = vpop.eup %6002 }
 0xe95   :  { %v6005_v12 = vpop.eup %6004  ;;  %v1644_v46 = vadd.f32 1.0, %v6003_v11 }
 0xe96   :  { %v1643_v27 = vadd.f32 1.0, %v6005_v12 }
 0xe97   :  { %6006 = vrcp.f32 %v1644_v46 }
 0xe98   :  { %6008 = vrcp.f32 %v1643_v27 }
 0xea1   :  { %v6007_v13 = vpop.eup %6006 }
 0xea2   :  { %v6009_v14 = vpop.eup %6008  ;;  %v1652_v22 = vmul.f32 %v6007_v13, %v6702_v21 }
 0xea3   :  { %v1651_v49 = vmul.f32 %v6009_v14, %v6704_v6 }
 0xf05   :  { %v1658_v48 = vpop.permute.xlu1 %1657 }
 0xf06   :  { %v1662_v15 = vmul.f32 %v6007_v13, %v1658_v48  ;;  %v1656_v16 = vpop.permute.xlu0 %1655 }
 0xf07   :  { %v1661_v17 = vmul.f32 %v6009_v14, %v1656_v16 }
 0xf08   :  { %1667 = vrot.lane.b32.xlu1 %v1662_v15, %s6296_s22 }
 0xf09   :  { %1665 = vrot.lane.b32.xlu0 %v1661_v17, %s6296_s22 }
 0xf57   :  { %v5413_v18 = vpop.f32.mrb[16].mxu0 }
 0xf58   :  { %v1483_v20 = vpop.f32.mrb[17].mxu0  ;;  %v1493_v28 = vadd.f32 %v5413_v18, %v6547_v51 }
 0xf59   :  { %v1492_v29 = vadd.f32 %v1483_v20, %v6549_v53 }
 0xf5a   :  { %v5060_v51 = vmul.f32 -1.442695, %v1493_v28 }
 0xf5b   :  { %v5059_v33 = vmul.f32 -1.442695, %v1492_v29 }
 0xf7a   :  { %v1668_v23 = vpop.permute.xlu1 %1667 }
 0xf7b   :  { %v6748_v24 = vadd.f32 %v1668_v23, %v1652_v22  ;;  %v1666_v43 = vpop.permute.xlu0 %1665 }
 0xf7c   :  { %v6750_v26 = vadd.f32 %v1666_v43, %v1651_v49 }
 0xf7d   :  { %6010 = vtanh.f32 %v6748_v24 }
 0xf7e   :  { %6012 = vtanh.f32 %v6750_v26 }
 0xf7f   :  { %6014 = vtanh.f32 %v1493_v28 }
 0xf80   :  { %6016 = vtanh.f32 %v1492_v29 }
 0xf81   :  { %6018 = vpow2.f32 %v5060_v51 }
 0xf82   :  { %6020 = vpow2.f32 %v5059_v33 }
 0xf87   :  { %v6011_v32 = vpop.eup %6010 }
 0xf88   :  { %v6013_v21 = vpop.eup %6012  ;;  %1679 = vrot.lane.b32.xlu1 %v6011_v32, %s6297_s17 }
 0xf89   :  { %1677 = vrot.lane.b32.xlu0 %v6013_v21, %s6297_s17  ;;  %v6015_v6 = vpop.eup %6014 }
 0xf8a   :  { %v6017_v63 = vpop.eup %6016 }
 0xf8b   :  { %v6019_v53 = vpop.eup %6018 }
 0xf8c   :  { %1609 = vrot.lane.b32.xlu1 %v6015_v6, %s6295_s11  ;;  %v6021_v34 = vpop.eup %6020  ;;  %v1596_v35 = vadd.f32 1.0, %v6019_v53 }
 0xf8d   :  { %1607 = vrot.lane.b32.xlu0 %v6017_v63, %s6295_s11  ;;  %v1595_v38 = vadd.f32 1.0, %v6021_v34 }
 0xf8e   :  { %6022 = vrcp.f32 %v1596_v35 }
 0xf8f   :  { %6024 = vrcp.f32 %v1595_v38 }
 0xf98   :  { %v6023_v47 = vpop.eup %6022 }
 0xf99   :  { %v6025_v52 = vpop.eup %6024  ;;  %v1604_v8 = vmul.f32 %v6023_v47, %v6724_v57 }
 0xf9a   :  { %v1603_v2 = vmul.f32 %v6025_v52, %v6726_v37 }
 0xffa   :  { %v1680_v39 = vpop.permute.xlu1 %1679 }
 0xffb   :  { %v1684_v41 = vmul.f32 %v6007_v13, %v1680_v39  ;;  %v1678_v50 = vpop.permute.xlu0 %1677 }
 0xffc   :  { %v1683_v45 = vmul.f32 %v6009_v14, %v1678_v50 }
 0xffd   :  { %1776 = vrot.lane.b32.xlu1 %v1684_v41, %s6296_s22 }
 0xffe   :  { %v1610_v54 = vpop.permute.xlu1 %1609  ;;  %1774 = vrot.lane.b32.xlu0 %v1683_v45, %s6296_s22 }
 0xfff   :  { %v1614_v55 = vmul.f32 %v6023_v47, %v1610_v54  ;;  %v1608_v59 = vpop.permute.xlu0 %1607 }
0x1000   :  { %v1613_v19 = vmul.f32 %v6025_v52, %v1608_v59 }
0x1001   :  { %1619 = vrot.lane.b32.xlu1 %v1614_v55, %s6296_s22 }
0x1002   :  { %1617 = vrot.lane.b32.xlu0 %v1613_v19, %s6296_s22 }
0x106f   :  { %v1777_v61 = vpop.permute.xlu1 %1776 }
0x1070   :  { %v1775_v4 = vpop.permute.xlu0 %1774 }
0x1071   :  { %5432 = vmatprep.mubr.msk.f32.mxu1 %vm114_vm0, %v1775_v4 }
0x1072   :  { %5433 = vmatmul.mubr.msk.f32.vlgmr.msra.gmra.mrb[18].mxu1 %vm114_vm0, %v1777_v61 }
0x1073   :  { %v1620_v9 = vpop.permute.xlu1 %1619  ;;  %5730 = vmatpush3.bf16.msra.mxu1 %v6451_v10 }
0x1074   :  { %v6769_v25 = vadd.f32 %v1620_v9, %v1604_v8  ;;  %v1618_v5 = vpop.permute.xlu0 %1617  ;;  %5736 = vmatprep.subr.bf16.mxu1 %v6451_v10 }
0x1075   :  { %v6772_v11 = vadd.f32 %v1618_v5, %v1603_v2 }
0x1076   :  { %6026 = vtanh.f32 %v6769_v25 }
0x1077   :  { %6028 = vtanh.f32 %v6772_v11 }
0x1080   :  { %v6027_v12 = vpop.eup %6026 }
0x1081   :  { %v6029_v46 = vpop.eup %6028  ;;  %1631 = vrot.lane.b32.xlu1 %v6027_v12, %s6297_s17 }
0x1082   :  { %1629 = vrot.lane.b32.xlu0 %v6029_v46, %s6297_s17 }
0x10f3   :  { %v1632_v57 = vpop.permute.xlu1 %1631 }
0x10f4   :  { %v1636_v37 = vmul.f32 %v6023_v47, %v1632_v57  ;;  %v1630_v27 = vpop.permute.xlu0 %1629 }
0x10f5   :  { %v1635_v13 = vmul.f32 %v6025_v52, %v1630_v27 }
0x10f6   :  { %1689 = vrot.lane.b32.xlu1 %v1636_v37, %s6298_s19 }
0x10f7   :  { %1687 = vrot.lane.b32.xlu0 %v1635_v13, %s6298_s19 }
0x1145   :  { %v5434_v48 = vpop.f32.mrb[18].mxu1 }
0x1146   :  { %1861 = vrot.lane.b32.xlu1 %v5434_v48, %s6294_s2  ;;  %v1848_v14 = vpop.f32.mrb[19].mxu1 }
0x1147   :  { %1859 = vrot.lane.b32.xlu0 %v1848_v14, %s6294_s2 }
0x1168   :  { %v1690_v16 = vpop.permute.xlu1 %1689 }
0x1169   :  { %v1688_v15 = vpop.permute.xlu0 %1687 }
0x116a   :  { %5425 = vmatprep.mubr.msk.f32.mxu0 %vm114_vm0, %v1688_v15 }
0x116b   :  { %5426 = vmatmul.mubr.msk.f32.vlgmr.msra.gmra.mrb[18].mxu0 %vm114_vm0, %v1690_v16 }
0x116c   :  { %5726 = vmatpush3.bf16.msra.mxu0 %v6442_v7 }
0x116d   :  { %5732 = vmatprep.subr.bf16.mxu0 %v6442_v7 }
0x11b8   :  { %v1862_v17 = vpop.permute.xlu1 %1861 }
0x11b9   :  { %v1866_v18 = vadd.f32 %v1862_v17, %v6537_v42  ;;  %v1860_v20 = vpop.permute.xlu0 %1859 }
0x11ba   :  { %v1865_v22 = vadd.f32 %v1860_v20, %v6539_v44 }
0x11bb   :  { %6030 = vtanh.f32 %v1866_v18  ;;  %v5070_v43 = vmul.f32 -1.442695, %v1866_v18 }
0x11bc   :  { %6032 = vtanh.f32 %v1865_v22  ;;  %v5069_v28 = vmul.f32 -1.442695, %v1865_v22 }
0x11bd   :  { %6034 = vpow2.f32 %v5070_v43 }
0x11be   :  { %6036 = vpow2.f32 %v5069_v28 }
0x11c5   :  { %v6031_v23 = vpop.eup %6030 }
0x11c6   :  { %v6033_v49 = vpop.eup %6032  ;;  %1935 = vrot.lane.b32.xlu1 %v6031_v23, %s6295_s11 }
0x11c7   :  { %1933 = vrot.lane.b32.xlu0 %v6033_v49, %s6295_s11  ;;  %v6035_v29 = vpop.eup %6034 }
0x11c8   :  { %v6037_v32 = vpop.eup %6036  ;;  %v1922_v21 = vadd.f32 1.0, %v6035_v29 }
0x11c9   :  { %v1921_v6 = vadd.f32 1.0, %v6037_v32 }
0x11ca   :  { %6038 = vrcp.f32 %v1922_v21 }
0x11cb   :  { %6040 = vrcp.f32 %v1921_v6 }
0x11d4   :  { %v6039_v42 = vpop.eup %6038 }
0x11d5   :  { %v6041_v63 = vpop.eup %6040  ;;  %v1930_v54 = vmul.f32 %v6039_v42, %v6748_v24 }
0x1238   :  { %v1936_v44 = vpop.permute.xlu1 %1935 }
0x1239   :  { %v1940_v51 = vmul.f32 %v6039_v42, %v1936_v44  ;;  %v1934_v33 = vpop.permute.xlu0 %1933 }
0x123a   :  { %v1939_v53 = vmul.f32 %v6041_v63, %v1934_v33 }
0x123b   :  { %1945 = vrot.lane.b32.xlu1 %v1940_v51, %s6296_s22 }
0x123c   :  { %1943 = vrot.lane.b32.xlu0 %v1939_v53, %s6296_s22 }
0x123e   :  { %v5427_v34 = vpop.f32.mrb[18].mxu0 }
0x123f   :  { %v1771_v35 = vadd.f32 %v5427_v34, %v6552_v56  ;;  %v1761_v38 = vpop.f32.mrb[19].mxu0  ;;  %v1929_v56 = vmul.f32 %v6041_v63, %v6750_v26 }
0x1240   :  { %v1770_v39 = vadd.f32 %v1761_v38, %v6554_v58 }
0x1241   :  { %6042 = vtanh.f32 %v1771_v35  ;;  %v5068_v45 = vmul.f32 -1.442695, %v1771_v35 }
0x1242   :  { %6044 = vtanh.f32 %v1770_v39  ;;  %v5067_v47 = vmul.f32 -1.442695, %v1770_v39 }
0x1243   :  { %6046 = vpow2.f32 %v5068_v45 }
0x1244   :  { %6048 = vpow2.f32 %v5067_v47 }
0x124b   :  { %v6043_v41 = vpop.eup %6042 }
0x124c   :  { %v6045_v50 = vpop.eup %6044  ;;  %1887 = vrot.lane.b32.xlu1 %v6043_v41, %s6295_s11 }
0x124d   :  { %1885 = vrot.lane.b32.xlu0 %v6045_v50, %s6295_s11  ;;  %v6047_v52 = vpop.eup %6046 }
0x124e   :  { %v6049_v59 = vpop.eup %6048  ;;  %v1874_v4 = vadd.f32 1.0, %v6047_v52 }
0x124f   :  { %v1873_v8 = vadd.f32 1.0, %v6049_v59 }
0x12ad   :  { %v1946_v55 = vpop.permute.xlu1 %1945 }
0x12ae   :  { %v6798_v58 = vadd.f32 %v1946_v55, %v1930_v54  ;;  %v1944_v19 = vpop.permute.xlu0 %1943 }
0x12af   :  { %v6800_v61 = vadd.f32 %v1944_v19, %v1929_v56 }
0x12b0   :  { %6050 = vtanh.f32 %v6798_v58 }
0x12b1   :  { %6052 = vtanh.f32 %v6800_v61 }
0x12b2   :  { %6054 = vrcp.f32 %v1874_v4 }
0x12b3   :  { %6056 = vrcp.f32 %v1873_v8 }
0x12ba   :  { %v6051_v9 = vpop.eup %6050 }
0x12bb   :  { %v6053_v24 = vpop.eup %6052  ;;  %1957 = vrot.lane.b32.xlu1 %v6051_v9, %s6297_s17 }
0x12bc   :  { %1955 = vrot.lane.b32.xlu0 %v6053_v24, %s6297_s17  ;;  %v6055_v26 = vpop.eup %6054 }
0x12bd   :  { %v6057_v5 = vpop.eup %6056  ;;  %v1882_v14 = vmul.f32 %v6055_v26, %v6769_v25 }
0x12be   :  { %v1888_v2 = vpop.permute.xlu1 %1887  ;;  %v1881_v16 = vmul.f32 %v6057_v5, %v6772_v11 }
0x12bf   :  { %v1892_v12 = vmul.f32 %v6055_v26, %v1888_v2  ;;  %v1886_v46 = vpop.permute.xlu0 %1885 }
0x12c0   :  { %v1891_v57 = vmul.f32 %v6057_v5, %v1886_v46 }
0x12c1   :  { %1897 = vrot.lane.b32.xlu1 %v1892_v12, %s6296_s22 }
0x12c2   :  { %1895 = vrot.lane.b32.xlu0 %v1891_v57, %s6296_s22 }
0x132d   :  { %v1958_v37 = vpop.permute.xlu1 %1957 }
0x132e   :  { %v1962_v27 = vmul.f32 %v6039_v42, %v1958_v37  ;;  %v1956_v13 = vpop.permute.xlu0 %1955 }
0x132f   :  { %v1961_v48 = vmul.f32 %v6041_v63, %v1956_v13 }
0x1330   :  { %2054 = vrot.lane.b32.xlu1 %v1962_v27, %s6296_s22 }
0x1331   :  { %2052 = vrot.lane.b32.xlu0 %v1961_v48, %s6296_s22 }
0x1333   :  { %v1898_v15 = vpop.permute.xlu1 %1897 }
0x1334   :  { %v6812_v17 = vadd.f32 %v1898_v15, %v1882_v14  ;;  %v1896_v18 = vpop.permute.xlu0 %1895 }
0x1335   :  { %v6814_v20 = vadd.f32 %v1896_v18, %v1881_v16 }
0x1336   :  { %6058 = vtanh.f32 %v6812_v17 }
0x1337   :  { %6060 = vtanh.f32 %v6814_v20 }
0x1340   :  { %v6059_v22 = vpop.eup %6058 }
0x1341   :  { %v6061_v23 = vpop.eup %6060  ;;  %1909 = vrot.lane.b32.xlu1 %v6059_v22, %s6297_s17 }
0x1342   :  { %1907 = vrot.lane.b32.xlu0 %v6061_v23, %s6297_s17 }
0x13a2   :  { %v2055_v25 = vpop.permute.xlu1 %2054 }
0x13a3   :  { %v2053_v49 = vpop.permute.xlu0 %2052 }
0x13a4   :  { %5446 = vmatprep.mubr.msk.f32.mxu1 %vm114_vm0, %v2053_v49 }
0x13a5   :  { %5447 = vmatmul.mubr.msk.f32.vlgmr.msra.gmra.mrb[20].mxu1 %vm114_vm0, %v2055_v25 }
0x13a6   :  { %5738 = vmatpush3.bf16.msra.mxu1 %v6451_v10 }
0x13a7   :  { %5474 = vmatprep.subr.mxu1 %v6293_v0 }
0x13b3   :  { %v1910_v11 = vpop.permute.xlu1 %1909 }
0x13b4   :  { %v1914_v43 = vmul.f32 %v6055_v26, %v1910_v11  ;;  %v1908_v28 = vpop.permute.xlu0 %1907 }
0x13b5   :  { %v1913_v29 = vmul.f32 %v6057_v5, %v1908_v28 }
0x13b6   :  { %1967 = vrot.lane.b32.xlu1 %v1914_v43, %s6298_s19 }
0x13b7   :  { %1965 = vrot.lane.b32.xlu0 %v1913_v29, %s6298_s19 }
0x1428   :  { %v1968_v21 = vpop.permute.xlu1 %1967 }
0x1429   :  { %v1966_v32 = vpop.permute.xlu0 %1965 }
0x142a   :  { %5439 = vmatprep.mubr.msk.f32.mxu0 %vm114_vm0, %v1966_v32 }
0x142b   :  { %5440 = vmatmul.mubr.msk.f32.vlgmr.msra.gmra.mrb[20].mxu0 %vm114_vm0, %v1968_v21 }
0x142c   :  { %5734 = vmatpush3.bf16.msra.mxu0 %v6442_v7 }
0x1478   :  { %v5448_v6 = vpop.f32.mrb[20].mxu1 }
0x1479   :  { %2139 = vrot.lane.b32.xlu1 %v5448_v6, %s6294_s2  ;;  %v2126_v10 = vpop.f32.mrb[21].mxu1 }
0x147a   :  { %2137 = vrot.lane.b32.xlu0 %v2126_v10, %s6294_s2 }
0x14eb   :  { %v2140_v42 = vpop.permute.xlu1 %2139 }
0x14ec   :  { %v2144_v44 = vadd.f32 %v2140_v42, %v6531_v36  ;;  %v2138_v63 = vpop.permute.xlu0 %2137 }
0x14ed   :  { %v2143_v51 = vadd.f32 %v2138_v63, %v6534_v40 }
0x14ee   :  { %6062 = vtanh.f32 %v2144_v44  ;;  %v5078_v40 = vmul.f32 -1.442695, %v2144_v44 }
0x14ef   :  { %6064 = vtanh.f32 %v2143_v51  ;;  %v5077_v41 = vmul.f32 -1.442695, %v2143_v51 }
0x14f8   :  { %v6063_v33 = vpop.eup %6062 }
0x14f9   :  { %v6065_v53 = vpop.eup %6064  ;;  %2213 = vrot.lane.b32.xlu1 %v6063_v33, %s6295_s11 }
0x14fa   :  { %2211 = vrot.lane.b32.xlu0 %v6065_v53, %s6295_s11 }
0x14fe   :  { %v5441_v7 = vpop.f32.mrb[20].mxu0 }
0x14ff   :  { %v2049_v34 = vadd.f32 %v5441_v7, %v6556_v60  ;;  %v2039_v35 = vpop.f32.mrb[21].mxu0 }
0x1500   :  { %v2048_v38 = vadd.f32 %v2039_v35, %v6558_v62 }
0x1501   :  { %6066 = vtanh.f32 %v2049_v34  ;;  %v5076_v60 = vmul.f32 -1.442695, %v2049_v34 }
0x1502   :  { %6068 = vtanh.f32 %v2048_v38  ;;  %v5075_v52 = vmul.f32 -1.442695, %v2048_v38 }
0x1503   :  { %6070 = vpow2.f32 %v5078_v40 }
0x1504   :  { %6072 = vpow2.f32 %v5077_v41 }
0x150b   :  { %v6067_v36 = vpop.eup %6066 }
0x150c   :  { %v6069_v39 = vpop.eup %6068  ;;  %2165 = vrot.lane.b32.xlu1 %v6067_v36, %s6295_s11 }
0x150d   :  { %2163 = vrot.lane.b32.xlu0 %v6069_v39, %s6295_s11  ;;  %v6071_v50 = vpop.eup %6070 }
0x150e   :  { %v6073_v45 = vpop.eup %6072  ;;  %v2200_v47 = vadd.f32 1.0, %v6071_v50 }
0x150f   :  { %v2199_v54 = vadd.f32 1.0, %v6073_v45 }
0x1510   :  { %6074 = vrcp.f32 %v2200_v47 }
0x1511   :  { %6076 = vrcp.f32 %v2199_v54 }
0x1512   :  { %6078 = vpow2.f32 %v5076_v60 }
0x1513   :  { %6080 = vpow2.f32 %v5075_v52 }
0x151a   :  { %v6075_v62 = vpop.eup %6074 }
0x151b   :  { %v6077_v56 = vpop.eup %6076  ;;  %v2208_v27 = vmul.f32 %v6075_v62, %v6798_v58 }
0x151c   :  { %v6079_v4 = vpop.eup %6078  ;;  %v2207_v48 = vmul.f32 %v6077_v56, %v6800_v61 }
0x151d   :  { %v6081_v9 = vpop.eup %6080  ;;  %v2152_v24 = vadd.f32 1.0, %v6079_v4 }
0x151e   :  { %v2151_v26 = vadd.f32 1.0, %v6081_v9 }
0x151f   :  { %6082 = vrcp.f32 %v2152_v24 }
0x1520   :  { %6084 = vrcp.f32 %v2151_v26 }
0x1529   :  { %v6083_v2 = vpop.eup %6082 }
0x152a   :  { %v6085_v12 = vpop.eup %6084  ;;  %v2160_v58 = vmul.f32 %v6083_v2, %v6812_v17 }
0x152b   :  { %v2159_v61 = vmul.f32 %v6085_v12, %v6814_v20 }
0x156b   :  { %v2214_v55 = vpop.permute.xlu1 %2213 }
0x156c   :  { %v2218_v59 = vmul.f32 %v6075_v62, %v2214_v55  ;;  %v2212_v19 = vpop.permute.xlu0 %2211 }
0x156d   :  { %v2217_v8 = vmul.f32 %v6077_v56, %v2212_v19 }
0x156e   :  { %2223 = vrot.lane.b32.xlu1 %v2218_v59, %s6296_s22 }
0x156f   :  { %2221 = vrot.lane.b32.xlu0 %v2217_v8, %s6296_s22 }
0x157e   :  { %v2166_v5 = vpop.permute.xlu1 %2165 }
0x157f   :  { %v2170_v46 = vmul.f32 %v6083_v2, %v2166_v5  ;;  %v2164_v57 = vpop.permute.xlu0 %2163 }
0x1580   :  { %v2169_v37 = vmul.f32 %v6085_v12, %v2164_v57  ;;  %v2541_v57 = vld [vmem:[%s7414_s7 + $0x8] sm:$0xff] }
0x1581   :  { %2175 = vrot.lane.b32.xlu1 %v2170_v46, %s6296_s22  ;;  %v2540_v46 = vld [vmem:[%s7414_s7] sm:$0xff] }
0x1582   :  { %2173 = vrot.lane.b32.xlu0 %v2169_v37, %s6296_s22  ;;  %v2542_v37 = vld [vmem:[%s7414_s7 + $0x10] sm:$0xff] }
0x15e0   :  { %v2224_v13 = vpop.permute.xlu1 %2223 }
0x15e1   :  { %v6845_v14 = vadd.f32 %v2224_v13, %v2208_v27  ;;  %v2222_v15 = vpop.permute.xlu0 %2221  ;;  %v6299_v27 = vmov 0.0|0.0   ;;  %v5740_v13 = vpack.c.bf16 %v2541_v57, %v2540_v46 }
0x15e2   :  { %v6847_v16 = vadd.f32 %v2222_v15, %v2207_v48  ;;  %5739 = vmatprep.subr.bf16.mxu0 %v6299_v27 }
0x15e3   :  { %6086 = vtanh.f32 %v6845_v14 }
0x15e4   :  { %6088 = vtanh.f32 %v6847_v16 }
0x15ed   :  { %v6087_v18 = vpop.eup %6086 }
0x15ee   :  { %v6089_v22 = vpop.eup %6088  ;;  %2235 = vrot.lane.b32.xlu1 %v6087_v18, %s6297_s17 }
0x15ef   :  { %2233 = vrot.lane.b32.xlu0 %v6089_v22, %s6297_s17 }
0x15f3   :  { %v2176_v23 = vpop.permute.xlu1 %2175 }
0x15f4   :  { %v2180_v49 = vadd.f32 %v2176_v23, %v2160_v58  ;;  %v2174_v25 = vpop.permute.xlu0 %2173 }
0x15f5   :  { %v6855_v11 = vadd.f32 %v2174_v25, %v2159_v61 }
0x15f6   :  { %6090 = vtanh.f32 %v2180_v49 }
0x15f7   :  { %6092 = vtanh.f32 %v6855_v11 }
0x1600   :  { %v6091_v43 = vpop.eup %6090 }
0x1601   :  { %v6093_v28 = vpop.eup %6092  ;;  %2187 = vrot.lane.b32.xlu1 %v6091_v43, %s6297_s17 }
0x1602   :  { %2185 = vrot.lane.b32.xlu0 %v6093_v28, %s6297_s17 }
0x1660   :  { %v2236_v29 = vpop.permute.xlu1 %2235 }
0x1661   :  { %v2240_v32 = vmul.f32 %v6075_v62, %v2236_v29  ;;  %v2234_v21 = vpop.permute.xlu0 %2233 }
0x1662   :  { %v2239_v17 = vmul.f32 %v6077_v56, %v2234_v21 }
0x1663   :  { %2332 = vrot.lane.b32.xlu1 %v2240_v32, %s6296_s22 }
0x1664   :  { %2330 = vrot.lane.b32.xlu0 %v2239_v17, %s6296_s22 }
0x1673   :  { %v2188_v20 = vpop.permute.xlu1 %2187 }
0x1674   :  { %v2192_v6 = vmul.f32 %v6083_v2, %v2188_v20  ;;  %v2186_v10 = vpop.permute.xlu0 %2185 }
0x1675   :  { %v2191_v42 = vmul.f32 %v6085_v12, %v2186_v10 }
0x1676   :  { %2245 = vrot.lane.b32.xlu1 %v2192_v6, %s6298_s19 }
0x1677   :  { %2243 = vrot.lane.b32.xlu0 %v2191_v42, %s6298_s19 }
0x16d5   :  { %v2333_v63 = vpop.permute.xlu1 %2332 }
0x16d6   :  { %v2331_v44 = vpop.permute.xlu0 %2330 }
0x16d7   :  { %5460 = vmatprep.mubr.msk.f32.mxu1 %vm114_vm0, %v2331_v44 }
0x16d8   :  { %5461 = vmatmul.mubr.msk.f32.vlgmr.msra.gmra.mrb[22].mxu1 %vm114_vm0, %v2333_v63 }
0x16d9   :  { %5476 = vmatprep.mubr.msk.f32.mxu1 %vm6300_vm1, %v6293_v0 }
0x16e8   :  { %v2246_v33 = vpop.permute.xlu1 %2245 }
0x16e9   :  { %v2244_v51 = vpop.permute.xlu0 %2243 }
0x16ea   :  { %5453 = vmatprep.mubr.msk.f32.mxu0 %vm114_vm0, %v2244_v51 }
0x16eb   :  { %5454 = vmatmul.mubr.msk.f32.vlgmr.msra.gmra.mrb[22].mxu0 %vm114_vm0, %v2246_v33 }
0x16ec   :  { %5741 = vmatpush3.bf16.msra.mxu0 %v5740_v13  ;;  %5471 = vmatprep.mubr.msk.f32.mxu0 %vm6300_vm1, %v6293_v0 }
0x16ed   :  { %5742 = vmatprep.subr.bf16.mxu0 %v6299_v27 }
0x17ab   :  { %v5462_v53 = vpop.f32.mrb[22].mxu1 }
0x17ac   :  { %2417 = vrot.lane.b32.xlu0 %v5462_v53, %s6294_s2  ;;  %v2404_v7 = vpop.f32.mrb[23].mxu1 }
0x17be   :  { %v5455_v34 = vpop.f32.mrb[22].mxu0 }
0x17bf   :  { %v2327_v35 = vadd.f32 %v5455_v34, %v6560_v1  ;;  %v2317_v38 = vpop.f32.mrb[23].mxu0 }
0x17c0   :  { %v2326_v12 = vadd.f32 %v2317_v38, %v6562_v3  ;;  %v2543_v3 = vld [vmem:[%s7414_s7 + $0x18] sm:$0xff] }
0x17c1   :  { %6094 = vtanh.f32 %v2327_v35  ;;  %v5084_v40 = vmul.f32 -1.442695, %v2327_v35  ;;  %v5743_v48 = vpack.c.bf16 %v2543_v3, %v2542_v37 }
0x17c2   :  { %v5083_v23 = vmul.f32 -1.442695, %v2326_v12 }
0x17c3   :  { %5744 = vmatpush3.bf16.msra.mxu0 %v5743_v48 }
0x17c4   :  { %5484 = vmatprep.subr.mxu0 %v6293_v0 }
0x17cb   :  { %v6095_v36 = vpop.eup %6094 }
0x17cc   :  { %2443 = vrot.lane.b32.xlu1 %v6095_v36, %s6295_s11 }
0x181e   :  { %v2418_v39 = vpop.permute.xlu0 %2417 }
0x181f   :  { %v2422_v41 = vadd.f32 %v2418_v39, %v6526_v30 }
0x1821   :  { %6096 = vtanh.f32 %v2422_v41  ;;  %v5086_v52 = vmul.f32 -1.442695, %v2422_v41 }
0x1822   :  { %6098 = vpow2.f32 %v5084_v40 }
0x182b   :  { %v6097_v50 = vpop.eup %6096 }
0x182c   :  { %2491 = vrot.lane.b32.xlu0 %v6097_v50, %s6295_s11  ;;  %v6099_v45 = vpop.eup %6098 }
0x182d   :  { %v2430_v47 = vadd.f32 1.0, %v6099_v45 }
0x182f   :  { %6100 = vrcp.f32 %v2430_v47 }
0x1830   :  { %6102 = vpow2.f32 %v5086_v52 }
0x1839   :  { %v6101_v54 = vpop.eup %6100 }
0x183a   :  { %v6103_v62 = vpop.eup %6102  ;;  %v2438_v19 = vmul.f32 %v6101_v54, %v2180_v49 }
0x183b   :  { %v2478_v55 = vadd.f32 1.0, %v6103_v62 }
0x183d   :  { %6104 = vrcp.f32 %v2478_v55 }
0x183e   :  { %v2444_v60 = vpop.permute.xlu1 %2443 }
0x183f   :  { %v2448_v1 = vmul.f32 %v6101_v54, %v2444_v60 }
0x1841   :  { %2453 = vrot.lane.b32.xlu1 %v2448_v1, %s6296_s22  ;;  %v2619_v1 = vstv %s7408_s1 }
0x1847   :  { %v6105_v56 = vpop.eup %6104 }
0x1848   :  { %v2486_v24 = vmul.f32 %v6105_v56, %v6845_v14 }
0x189e   :  { %v2492_v30 = vpop.permute.xlu0 %2491 }
0x189f   :  { %v2496_v59 = vmul.f32 %v6105_v56, %v2492_v30 }
0x18a1   :  { %2501 = vrot.lane.b32.xlu0 %v2496_v59, %s6296_s22 }
0x18b3   :  { %v2454_v4 = vpop.permute.xlu1 %2453 }
0x18b4   :  { %v2458_v8 = vadd.f32 %v2454_v4, %v2438_v19  ;;  %v2702_v19 = vlaneseq }
0x18b6   :  { %6106 = vtanh.f32 %v2458_v8  ;;  %v6931_v4 = vand.u32 127, %v2702_v19  ;;  %v2705_v8 = vstv %s7425_s4 }
0x18b8   :  { %vm6937_vm4 = vcmp.lt.s32.totalorder %v6931_v4, %v2705_v8  ;;  %v6960_v13 = vcvt.s32.f32 %v6931_v4 }
0x18c0   :  { %v6107_v9 = vpop.eup %6106 }
0x18c1   :  { %2465 = vrot.lane.b32.xlu1 %v6107_v9, %s6297_s17 }
0x18c5   :  { %2415 = vrot.lane.b32.xlu1 %v2404_v7, %s6294_s2 }
0x1913   :  { %v2502_v26 = vpop.permute.xlu0 %2501 }
0x1914   :  { %v2506_v2 = vadd.f32 %v2502_v26, %v2486_v24 }
0x1916   :  { %6108 = vtanh.f32 %v2506_v2  ;;  %v5091_v2 = vsel %vm6937_vm4, 1.0, %v6293_v0 }
0x1917   :  { %6110 = vtanh.f32 %v2326_v12 }
0x1920   :  { %v6109_v5 = vpop.eup %6108 }
0x1921   :  { %2513 = vrot.lane.b32.xlu0 %v6109_v5, %s6297_s17  ;;  %v6111_v18 = vpop.eup %6110 }
0x1933   :  { %v2466_v14 = vpop.permute.xlu1 %2465 }
0x1934   :  { %v2470_v15 = vmul.f32 %v6101_v54, %v2466_v14 }
0x1936   :  { %2523 = vrot.lane.b32.xlu0 %v2470_v15, %s6298_s19 }
0x1937   :  { %v2416_v22 = vpop.permute.xlu1 %2415 }
0x1938   :  { %v2421_v58 = vadd.f32 %v2416_v22, %v6528_v31 }
0x193a   :  { %2441 = vrot.lane.b32.xlu0 %v6111_v18, %s6295_s11  ;;  %6112 = vtanh.f32 %v2421_v58  ;;  %v5085_v31 = vmul.f32 -1.442695, %v2421_v58 }
0x193b   :  { %6114 = vpow2.f32 %v5083_v23 }
0x1944   :  { %v6113_v25 = vpop.eup %6112 }
0x1945   :  { %v6115_v43 = vpop.eup %6114 }
0x1946   :  { %v2429_v28 = vadd.f32 1.0, %v6115_v43 }
0x1948   :  { %6116 = vrcp.f32 %v2429_v28 }
0x1949   :  { %6118 = vpow2.f32 %v5085_v31 }
0x1952   :  { %v6117_v32 = vpop.eup %6116 }
0x1953   :  { %v6119_v20 = vpop.eup %6118  ;;  %v2437_v33 = vmul.f32 %v6117_v32, %v6855_v11 }
0x1954   :  { %v2477_v6 = vadd.f32 1.0, %v6119_v20 }
0x1956   :  { %6120 = vrcp.f32 %v2477_v6 }
0x1960   :  { %v6121_v44 = vpop.eup %6120 }
0x1961   :  { %v2485_v35 = vmul.f32 %v6121_v44, %v6847_v16 }
0x1993   :  { %v2514_v61 = vpop.permute.xlu0 %2513 }
0x1994   :  { %v2518_v49 = vmul.f32 %v6105_v56, %v2514_v61 }
0x1996   :  { %2531 = vrot.lane.b32.xlu1 %v2518_v49, %s6297_s17 }
0x199a   :  { %2489 = vrot.lane.b32.xlu1 %v6113_v25, %s6295_s11 }
0x19a8   :  { %v2524_v29 = vpop.permute.xlu0 %2523 }
0x19ac   :  { %v2442_v21 = vpop.permute.xlu0 %2441 }
0x19ad   :  { %v2447_v17 = vmul.f32 %v6117_v32, %v2442_v21 }
0x19af   :  { %2451 = vrot.lane.b32.xlu0 %v2447_v17, %s6296_s22 }
0x1a08   :  { %v2532_v10 = vpop.permute.xlu1 %2531 }
0x1a09   :  { %v2536_v42 = vsel %vm114_vm0, %v2524_v29, %v2532_v10 }
0x1a0a   :  { %5472 = vmatmul.mubr.msk.f32.vlgmr.msra.gmra.mrb[24].mxu0 %vm2544_vm2, %v2536_v42  ;;  %2538 = vst.msk [vmem:[#allocation10] sm:$0x1] %vm2537_vm3, %v2536_v42 }
0x1a0b   :  { %5486 = vmatprep.mubr.msk.f32.mxu0 %vm6300_vm1, %v6293_v0 }
0x1a0c   :  { %v2490_v63 = vpop.permute.xlu1 %2489 }
0x1a0d   :  { %v2495_v51 = vmul.f32 %v6121_v44, %v2490_v63  ;;  %v6301_v63 = vmov 1.0  }
0x1a0f   :  { %2499 = vrot.lane.b32.xlu1 %v2495_v51, %s6296_s22 }
0x1a21   :  { %v2452_v53 = vpop.permute.xlu0 %2451 }
0x1a22   :  { %v2457_v7 = vadd.f32 %v2452_v53, %v2437_v33 }
0x1a24   :  { %6122 = vtanh.f32 %v2457_v7 }
0x1a2e   :  { %v6123_v34 = vpop.eup %6122 }
0x1a2f   :  { %2463 = vrot.lane.b32.xlu0 %v6123_v34, %s6297_s17 }
0x1a81   :  { %v2500_v38 = vpop.permute.xlu1 %2499 }
0x1a82   :  { %v2505_v36 = vadd.f32 %v2500_v38, %v2485_v35 }
0x1a84   :  { %6124 = vtanh.f32 %v2505_v36 }
0x1a8e   :  { %v6125_v39 = vpop.eup %6124 }
0x1a8f   :  { %2511 = vrot.lane.b32.xlu1 %v6125_v39, %s6297_s17 }
0x1aa1   :  { %v2464_v40 = vpop.permute.xlu0 %2463 }
0x1aa2   :  { %v2469_v41 = vmul.f32 %v6117_v32, %v2464_v40 }
0x1aa4   :  { %2521 = vrot.lane.b32.xlu0 %v2469_v41, %s6298_s19  ;;  %s6302_s19 = smov [#allocation11]  }
0x1aa5   :  { %s4983_s13 = sshll.u32 %s6302_s19, 4  ;;  %s4984_s13 = int_to_ptr.vmem [resolvable:$true] %s4983_s13 }
0x1aa6   :  { %s6216_s21 = scalar_lea.vmem %s4984_s13, 16  ;;  %s6220_s23 = scalar_lea.vmem %s4984_s13, 32 }
0x1aa7   :  { %p6217_p0 = scmp.ne.s32.totalorder %s4984_s13, %s6216_s21  ;;  %p6221_p1 = scmp.lt.s32.totalorder %s4984_s13, %s4984_s13 }
0x1aa8   :  { %p6222_p2 = scmp.lt.s32.totalorder %s6220_s23, %s6216_s21 }
0x1aaa   :  { %p6223_p3 = por %p6222_p2, %p6221_p1 }
0x1aac   :  { %p6224_p4 = pnand %p6223_p3, %p6217_p0 }
0x1add   :  { %v2614_v50 = vpop.f32.mrb[24].mxu0 }
0x1ade   :  { %v5473_v11 = vpop.f32.mrb[25].mxu0 }
0x1b01   :  { %v2512_v45 = vpop.permute.xlu1 %2511 }
0x1b02   :  { %v2517_v47 = vmul.f32 %v6121_v44, %v2512_v45  ;;  %v6970_v44 = vshrl.u32 %v2702_v19, 7  ;;  %v2804_v45 = vld [vmem:[%s7415_s8 + $0x8] sm:$0xff] }
0x1b04   :  { %2529 = vrot.lane.b32.xlu1 %v2517_v47, %s6297_s17  ;;  %vm2799_vm10 = vcmp.lt.s32.totalorder %v6970_v44, %v6931_v4  ;;  %v2806_v47 = vld [vmem:[%s7415_s8 + $0x18] sm:$0xff] }
0x1b16   :  { %v2522_v54 = vpop.permute.xlu0 %2521 }
0x1b76   :  { %v2530_v60 = vpop.permute.xlu1 %2529 }
0x1b77   :  { %v6918_v16 = vsel %vm114_vm0, %v2522_v54, %v2530_v60  ;;  %v2803_v54 = vld [vmem:[%s7415_s8] sm:$0xff]  ;;  %v6996_v60 = vpack.c.bf16 %v2806_v47, %v2804_v45 }
0x1b78   :  { %5475 = vmatpush3.xpose.msk.msra.mxu1 %vm2544_vm2, %v6918_v16  ;;  %5485 = vmatpush3.msra.mxu0 %v6918_v16 }
0x1b79   :  { %5479 = vmatprep.subr.mxu1 %v6293_v0  ;;  %5489 = vmatprep.subr.mxu0 %v6293_v0 }
0x1b7b   :  { %5477 = vmatmul.mubr.msk.f32.vlgmr.msra.gmra.mrb[24].mxu1 %vm2544_vm2, %v2614_v50 }
0x1b7c   :  { %5481 = vmatprep.mubr.msk.f32.mxu1 %vm6300_vm1, %v6293_v0  ;;  %5480 = vmatpush3.msk.msra.mxu1 %vm2799_vm10, %v6301_v63 }
0x1b7d   :  { %5746 = vmatprep.subr.bf16.mxu1 %v6996_v60 }
0x1c4e   :  { %v2692_v52 = vpop.f32.mrb[24].mxu1 }
0x1c4f   :  { %v2693_v62 = vadd.f32 %v2692_v52, %v2619_v1  ;;  %v5478_v55 = vpop.f32.mrb[25].mxu1  ;;  %v2805_v1 = vld [vmem:[%s7415_s8 + $0x10] sm:$0xff]  ;;  %v2808_v52 = vld [vmem:[%s7415_s8 + $0x28] sm:$0xff] }
0x1c50   :  { %v7007_v55 = vpack.c.bf16 %v2805_v1, %v2803_v54 }
0x1c51   :  { %v5090_v56 = vmul.f32 -1.442695, %v2693_v62  ;;  %v2810_v62 = vld [vmem:[%s7415_s8 + $0x38] sm:$0xff] }
0x1c53   :  { %6126 = vpow2.f32 %v5090_v56  ;;  %v7009_v56 = vpack.c.bf16 %v2810_v62, %v2808_v52 }
0x1c5d   :  { %v6127_v30 = vpop.eup %6126 }
0x1c5e   :  { %v2699_v59 = vadd.f32 1.0, %v6127_v30  ;;  %v2807_v30 = vld [vmem:[%s7415_s8 + $0x20] sm:$0xff] }
0x1c60   :  { %6128 = vrcp.f32 %v2699_v59  ;;  %v2809_v59 = vld [vmem:[%s7415_s8 + $0x30] sm:$0xff] }
0x1c61   :  { %v7019_v19 = vpack.c.bf16 %v2809_v59, %v2807_v30 }
0x1c6a   :  { %v6941_v24 = vpop.eup %6128 }
0x1c6b   :  { %v2709_v26 = vsel %vm6937_vm4, %v6941_v24, -1e+30  ;;  %vm2723_vm6 = vcmp.ge.f32.partialorder %v6941_v24, 0.5 }
0x1c6c   :  { %v2711_v5 = vsel %vm2710_vm5, %v2709_v26, -inf  ;;  %vm2724_vm7 = vmand %vm2723_vm6, %vm6937_vm4 }
0x1c6d   :  { %2712 = vmax.xlane.f32.xlu0 %v2711_v5  ;;  %v2725_v12 = vsel %vm2724_vm7, 1.0, %v6293_v0  ;;  %v7026_v5 = vsub.s32 0, %v6970_v44 }
0x1c6e   :  { %v2727_v46 = vsel %vm2710_vm5, %v2725_v12, 0.0  ;;  %v6955_v57 = vsub.f32 %v5091_v2, %v2725_v12  ;;  %v2802_v2 = vcvt.s32.f32 %v6970_v44 }
0x1c6f   :  { %2728 = vadd.xlane.f32.xlu1 %v2727_v46 }
0x1c70   :  { %v2737_v37 = vsel %vm2710_vm5, %v6955_v57, 0.0 }
0x1c71   :  { %2738 = vadd.xlane.f32.xlu0 %v2737_v37 }
0x1cfa   :  { %v2713_v3 = vpop.xlane.xlu0 %2712 }
0x1cfb   :  { %v2714_v48 = vsub.f32 %v6941_v24, %v2713_v3  ;;  %vm2747_vm8 = vcmp.ge.f32.partialorder %v2709_v26, %v2713_v3 }
0x1cfc   :  { %vm2748_vm9 = vmand %vm2747_vm8, %vm6937_vm4  ;;  %v2729_v14 = vpop.xlane.xlu1 %2728 }
0x1cfd   :  { %v2715_v15 = vmul.f32 1.442695, %v2714_v48  ;;  %v2730_v18 = vrot.slane %v2729_v14, 4  ;;  %v2749_v22 = vsel %vm2748_vm9, %v6960_v13, 8.0 }
0x1cfe   :  { %v2739_v58 = vpop.xlane.xlu0 %2738  ;;  %v2750_v23 = vsel %vm2710_vm5, %v2749_v22, inf }
0x1cff   :  { %6130 = vpow2.f32 %v2715_v15  ;;  %v2731_v61 = vadd.f32 %v2730_v18, %v2729_v14  ;;  %v2740_v49 = vrot.slane %v2739_v58, 4  ;;  %2751 = vmin.xlane.f32.xlu0 %v2750_v23 }
0x1d01   :  { %v2732_v25 = vrot.slane %v2731_v61, 2  ;;  %v2741_v43 = vadd.f32 %v2740_v49, %v2739_v58  ;;  %v3004_v49 = vsub.s32 1, %v6970_v44 }
0x1d03   :  { %v2742_v28 = vrot.slane %v2741_v43, 2  ;;  %v2733_v29 = vadd.f32 %v2732_v25, %v2731_v61  ;;  %v2811_v61 = vld [vmem:[%s7416_s9] sm:$0x3] }
0x1d04   :  { %v7047_v25 = vrot.slane %v2811_v61, %v7026_v5 }
0x1d05   :  { %v2734_v32 = vrot.slane %v2733_v29, 1  ;;  %v2743_v21 = vadd.f32 %v2742_v28, %v2741_v43  ;;  %v7049_v43 = vrot.slane %v2811_v61, %v3004_v49 }
0x1d07   :  { %v2735_v17 = vadd.f32 %v2734_v32, %v2733_v29  ;;  %v2744_v31 = vrot.slane %v2743_v21, 1 }
0x1d09   :  { %v6131_v20 = vpop.eup %6130  ;;  %5833 = vpush %v2735_v17  ;;  %v2745_v6 = vadd.f32 %v2744_v31, %v2743_v21  ;;  %v2760_v17 = vsel %vm6937_vm4, %v6941_v24, 1e+30 }
0x1d0a   :  { %v2717_v10 = vsel %vm6937_vm4, %v6131_v20, 0.0  ;;  %v2761_v31 = vsel %vm2710_vm5, %v2760_v17, inf }
0x1d0b   :  { %5835 = vpush %v2745_v6  ;;  %v2718_v42 = vsel %vm2710_vm5, %v2717_v10, 0.0 }
0x1d0c   :  { %2719 = vadd.xlane.f32.xlu1 %v2718_v42 }
0x1d3a   :  { %s5834_s1 = spop %5833 }
0x1d3b   :  { %p2787_p10 = scmp.gt.f32.partialorder %s5834_s1, 0.5 }
0x1d3c   :  { %s6978_s6 = spop %5835 }
0x1d3d   :  { %s2788_s24 = scalar_select %p2787_p10, 1, 0 }
0x1d3e   :  { %p2792_p11 = scmp.gt.f32.partialorder %s6978_s6, 0.5 }
0x1d3f   :  { %v2789_v40 = vstv %s2788_s24 }
0x1d40   :  { %vm2790_vm13 = vcmp.eq.s32.totalorder %v2789_v40, 1  ;;  %s2793_s9 = scalar_select %p2792_p11, 1, 0 }
0x1d8c   :  { %v2752_v51 = vpop.xlane.xlu0 %2751 }
0x1d8d   :  { %v2753_v33 = vrot.slane %v2752_v51, 4 }
0x1d8f   :  { %v2754_v53 = vmin.f32 %v2752_v51, %v2753_v33 }
0x1d91   :  { %v2755_v7 = vrot.slane %v2754_v53, 2 }
0x1d93   :  { %v2756_v34 = vmin.f32 %v2754_v53, %v2755_v7 }
0x1d95   :  { %v2757_v35 = vrot.slane %v2756_v34, 1 }
0x1d97   :  { %v2758_v38 = vmin.f32 %v2756_v34, %v2757_v35 }
0x1d99   :  { %5837 = vpush %v2758_v38  ;;  %v2720_v8 = vpop.xlane.xlu1 %2719 }
0x1d9a   :  { %6132 = vrcp.f32 %v2720_v8  ;;  %v2794_v8 = vstv %s2793_s9 }
0x1d9b   :  { %vm2795_vm6 = vcmp.eq.s32.totalorder %v2794_v8, 1 }
0x1da4   :  { %v6133_v26 = vpop.eup %6132 }
0x1dca   :  { %s5838_s29 = spop %5837 }
0x1dcb   :  { %v2777_v36 = vstv %s5838_s29 }
0x1dcc   :  { %v2778_v39 = vsub.f32 %v6960_v13, %v2777_v36 }
0x1dce   :  { %v2779_v41 = vand.u32 2147483647, %v2778_v39 }
0x1dd0   :  { %vm2780_vm11 = vcmp.lt.f32.partialorder %v2779_v41, 0.5 }
0x1dd1   :  { %v2781_v50 = vsel %vm2780_vm11, 1.0, %v6293_v0 }
0x1dd2   :  { %v6982_v11 = vsel %vm2790_vm13, %v2725_v12, %v2781_v50  ;;  %v7028_v12 = vmul.f32 %v6133_v26, %v2717_v10 }
0x1dd3   :  { %5482 = vmatmul.mubr.msk.f32.vlgmr.msra.gmra.mrb[26].mxu1 %vm2834_vm12, %v6982_v11  ;;  %v2822_v33 = vsel %vm2710_vm5, %v6982_v11, 0.0 }
0x1dd4   :  { %3075 = vmatprep.mubr.f32.mxu1 %v6293_v0  ;;  %5748 = vmatpush1.bf16.msra.mxu1 %v7007_v55  ;;  %v2915_v48 = vmul.f32 %v6982_v11, %v7028_v12 }
0x1dd5   :  { %5750 = vmatprep.subr.bf16.mxu1 %v7009_v56 }
0x1dd6   :  { %v2919_v18 = vrot.slane %v2915_v48, %v7026_v5 }
0x1dd8   :  { %5752 = vmatpush1.bf16.msra.mxu1 %v7019_v19 }
0x1dd9   :  { %5499 = vmatprep.subr.mxu1 %v6293_v0 }
0x1ea6   :  { %v2904_v46 = vpop.f32.mrb[26].mxu1 }
0x1ea7   :  { %v2911_v37 = vrot.slane %v2904_v46, %v7026_v5  ;;  %v5483_v3 = vpop.f32.mrb[27].mxu1 }
0x1ea9   :  { %v2912_v14 = vsub.f32 %v2802_v2, %v2911_v37 }
0x1eab   :  { %v2913_v15 = vand.u32 2147483647, %v2912_v14 }
0x1ead   :  { %vm2914_vm14 = vcmp.lt.f32.partialorder %v2913_v15, 0.5  ;;  %v5114_v15 = vld [vmem:[%s7419_s12 + $0x58] sm:$0xff] }
0x1eae   :  { %v2920_v22 = vsel %vm2914_vm14, %v2919_v18, 0.0 }
0x1eaf   :  { %5487 = vmatmul.mubr.msk.f32.vlgmr.msra.gmra.mrb[26].mxu0 %vm2834_vm12, %v2920_v22 }
0x1eb0   :  { %5491 = vmatprep.mubr.msk.f32.mxu0 %vm6300_vm1, %v6293_v0 }
0x1f82   :  { %v2990_v58 = vpop.f32.mrb[26].mxu0 }
0x1f83   :  { %v5488_v23 = vpop.f32.mrb[27].mxu0  ;;  %5096 = vmatmul.mubr.msk.f32.vlgmr.msra.gmra.mrb[28].mxu1 %vm2544_vm2, %v2990_v58 }
0x1f84   :  { %5501 = vmatprep.mubr.msk.f32.mxu1 %vm6300_vm1, %v6293_v0 }
0x2056   :  { %v3077_v28 = vpop.f32.mrb[28].mxu1 }
0x2057   :  { %v3078_v29 = vadd.f32 %v3077_v28, %v7047_v25  ;;  %v3079_v32 = vpop.f32.mrb[29].mxu1 }
0x2058   :  { %v3080_v21 = vadd.f32 %v3079_v32, %v7049_v43 }
0x2059   :  { %3258 = vrot.lane.b32.xlu1 %v3078_v29, %s6297_s17  ;;  %3083 = vrot.lane.b32.xlu0 %v3078_v29, %s6295_s11 }
0x205a   :  { %5500 = vmatpush3.xpose.msk.msra.mxu1 %vm2544_vm2, %v3080_v21 }
0x205b   :  { %5753 = vmatprep.subr.bf16.mxu1 %v6299_v27 }
0x207d   :  { %2762 = vmin.xlane.f32.xlu1 %v2761_v31 }
0x208e   :  { %3182 = vrot.lane.b32.xlu1 %v3078_v29, %s6294_s2 }
0x20cb   :  { %v3259_v20 = vpop.permute.xlu1 %3258  ;;  %v3084_v6 = vpop.permute.xlu0 %3083 }
0x20cc   :  { %5490 = vmatpush3.xpose.msk.msra.mxu0 %vm2544_vm2, %v3084_v6  ;;  %5502 = vmatmul.mubr.msk.f32.vlgmr.msra.gmra.mrb[30].mxu1 %vm2544_vm2, %v3259_v20 }
0x20cd   :  { %5494 = vmatprep.subr.mxu0 %v6293_v0  ;;  %5517 = vmatprep.mubr.msk.f32.mxu1 %vm6300_vm1, %v6293_v0 }
0x20cf   :  { %5492 = vmatmul.mubr.msk.f32.vlgmr.msra.gmra.mrb[28].mxu0 %vm2544_vm2, %v3078_v29 }
0x20d0   :  { %5496 = vmatprep.mubr.msk.f32.mxu0 %vm6300_vm1, %v6293_v0 }
0x210a   :  { %v2763_v24 = vpop.xlane.xlu1 %2762 }
0x210b   :  { %vm2764_vm15 = vcmp.le.f32.partialorder %v2760_v17, %v2763_v24 }
0x210c   :  { %vm2765_vm0 = vmand %vm2764_vm15, %vm6937_vm4 }
0x210d   :  { %v2766_v10 = vsel %vm2765_vm0, %v6960_v13, 8.0 }
0x210e   :  { %v3183_v42 = vpop.permute.xlu1 %3182  ;;  %v2767_v51 = vsel %vm2710_vm5, %v2766_v10, inf }
0x210f   :  { %2768 = vmin.xlane.f32.xlu0 %v2767_v51  ;;  %5495 = vmatpush3.msra.mxu0 %v3183_v42 }
0x2110   :  { %5504 = vmatprep.subr.mxu0 %v6293_v0 }
0x2113   :  { %2823 = vadd.xlane.f32.xlu0 %v2822_v33 }
0x2129   :  { %3358 = vrot.lane.b32.xlu0 %v3080_v21, %s6295_s11 }
0x219c   :  { %v2769_v53 = vpop.xlane.xlu0 %2768 }
0x219d   :  { %v2770_v7 = vrot.slane %v2769_v53, 4 }
0x219f   :  { %v2771_v34 = vmin.f32 %v2769_v53, %v2770_v7  ;;  %v3331_v9 = vpop.f32.mrb[30].mxu1 }
0x21a0   :  { %v5503_v35 = vpop.f32.mrb[31].mxu1  ;;  %v2824_v38 = vpop.xlane.xlu0 %2823 }
0x21a1   :  { %v2772_v36 = vrot.slane %v2771_v34, 2  ;;  %v2825_v39 = vrot.slane %v2824_v38, 4 }
0x21a2   :  { %v3155_v40 = vpop.f32.mrb[28].mxu0 }
0x21a3   :  { %v2826_v41 = vadd.f32 %v2825_v39, %v2824_v38  ;;  %v5493_v50 = vpop.f32.mrb[29].mxu0  ;;  %v2773_v45 = vmin.f32 %v2771_v34, %v2772_v36  ;;  %v3159_v48 = vmul.f32 0.17677669, %v3155_v40 }
0x21a5   :  { %v2827_v47 = vrot.slane %v2826_v41, 2  ;;  %v2774_v54 = vrot.slane %v2773_v45, 1 }
0x21a7   :  { %v2775_v1 = vmin.f32 %v2773_v45, %v2774_v54  ;;  %v2828_v11 = vadd.f32 %v2827_v47, %v2826_v41 }
0x21a9   :  { %5839 = vpush %v2775_v1  ;;  %v2829_v52 = vrot.slane %v2828_v11, 1 }
0x21ab   :  { %v2830_v62 = vadd.f32 %v2829_v52, %v2828_v11 }
0x21ad   :  { %5841 = vpush %v2830_v62 }
0x21da   :  { %s5840_s1 = spop %5839 }
0x21db   :  { %v2782_v30 = vstv %s5840_s1 }
0x21dc   :  { %v2783_v59 = vsub.f32 %v6960_v13, %v2782_v30  ;;  %v3335_v13 = vmul.f32 0.17677669, %v3331_v9 }
0x21de   :  { %v2784_v26 = vand.u32 2147483647, %v2783_v59  ;;  %s5842_s24 = spop %5841 }
0x21df   :  { %s2832_s29 = sadd.f32 0.5, %s5842_s24 }
0x21e0   :  { %vm2785_vm4 = vcmp.lt.f32.partialorder %v2784_v26, 0.5 }
0x21e1   :  { %v2786_v46 = vsel %vm2785_vm4, 1.0, %v6293_v0  ;;  %p5843_p12 = scmp.lt.s32.totalorder %s2832_s29, 0  ;;  %s5844_s30 = sceil.f32 %s2832_s29 }
0x21e2   :  { %s5845_s0 = sfloor.f32 %s2832_s29  ;;  %v7082_v37 = vsel %vm2795_vm6, %v6955_v57, %v2786_v46 }
0x21e3   :  { %s7433_s30 = smov (!%p5843_p12, %s5844_s30), %s5845_s0  ;;  %v3904_v3 = vsel %vm2710_vm5, %v7082_v37, 0.0 }
0x21e4   :  { %3905 = vadd.xlane.f32.xlu0 %v3904_v3  ;;  %s5847_s6 = scvt.f32.s32 %s7433_s30  ;;  %v3359_v3 = vpop.permute.xlu0 %3358 }
0x21e6   :  { %v2994_v14 = vstv %s5847_s6 }
0x21e7   :  { %vm7087_vm7 = vcmp.lt.s32.totalorder %v6970_v44, %v2994_v14  ;;  %vm2996_vm5 = vcmp.lt.s32.totalorder %v6931_v4, %v2994_v14  ;;  %v2813_v14 = vld [vmem:[%s7417_s10 + $0x8] sm:$0xff] }
0x21e8   :  { %v3160_v18 = vsel %vm7087_vm7, %v3159_v48, -1e+30  ;;  %v3336_v57 = vsel %vm7087_vm7, %v3335_v13, -1e+30  ;;  %v2812_v48 = vld [vmem:[%s7417_s10] sm:$0xff] }
0x21e9   :  { %v3161_v22 = vsel %vm2834_vm12, %v3160_v18, -inf  ;;  %v3337_v58 = vsel %vm2834_vm12, %v3336_v57, -inf }
0x21ea   :  { %v3162_v23 = vrot.slane %v3161_v22, 4  ;;  %v3338_v61 = vrot.slane %v3337_v58, 4 }
0x21ec   :  { %v3163_v49 = vmax.f32 %v3161_v22, %v3162_v23  ;;  %v3339_v28 = vmax.f32 %v3337_v58, %v3338_v61  ;;  %v2817_v22 = vld [vmem:[%s7417_s10 + $0x28] sm:$0xff]  ;;  %v2814_v58 = vld [vmem:[%s7417_s10 + $0x10] sm:$0xff]  ;;  %v2815_v23 = vld [vmem:[%s7417_s10 + $0x18] sm:$0xff] }
0x21ee   :  { %v3164_v29 = vrot.slane %v3163_v49, 2  ;;  %v3340_v32 = vrot.slane %v3339_v28, 2 }
0x21f0   :  { %v3165_v21 = vmax.f32 %v3163_v49, %v3164_v29  ;;  %v3341_v17 = vmax.f32 %v3339_v28, %v3340_v32  ;;  %v7134_v49 = vpack.c.bf16 %v2815_v23, %v2814_v58  ;;  %v3593_v23 = vld [vmem:[%s7419_s12 + $0x18] sm:$0xff] }
0x21f2   :  { %v3166_v31 = vrot.slane %v3165_v21, 1  ;;  %v3342_v20 = vrot.slane %v3341_v17, 1 }
0x21f4   :  { %v3167_v6 = vmax.f32 %v3165_v21, %v3166_v31  ;;  %v3343_v24 = vmax.f32 %v3341_v17, %v3342_v20  ;;  %v2818_v21 = vld [vmem:[%s7417_s10 + $0x30] sm:$0xff]  ;;  %v2819_v17 = vld [vmem:[%s7417_s10 + $0x38] sm:$0xff] }
0x21f5   :  { %v7147_v20 = vpack.c.bf16 %v2819_v17, %v2818_v21 }
0x21f6   :  { %v3168_v10 = vsub.f32 %v3160_v18, %v3167_v6  ;;  %v3344_v42 = vsub.f32 %v3336_v57, %v3343_v24  ;;  %v2816_v18 = vld [vmem:[%s7417_s10 + $0x20] sm:$0xff]  ;;  %v7120_v57 = vpack.c.bf16 %v2813_v14, %v2812_v48 }
0x21f7   :  { %v7131_v61 = vpack.c.bf16 %v2817_v22, %v2816_v18  ;;  %v3592_v18 = vld [vmem:[%s7419_s12 + $0x10] sm:$0xff] }
0x21f8   :  { %v3169_v51 = vmul.f32 1.442695, %v3168_v10  ;;  %v3345_v33 = vmul.f32 1.442695, %v3344_v42 }
0x21f9   :  { %5755 = vmatpush3.bf16.msra.mxu1 %v7131_v61 }
0x21fa   :  { %6134 = vpow2.f32 %v3169_v51  ;;  %5756 = vmatprep.subr.bf16.mxu1 %v6299_v27 }
0x21fb   :  { %6136 = vpow2.f32 %v3345_v33 }
0x21fd   :  { %5758 = vmatpush3.bf16.msra.mxu1 %v7147_v20 }
0x21fe   :  { %5765 = vmatprep.subr.bf16.mxu1 %v6299_v27 }
0x2204   :  { %v6135_v53 = vpop.eup %6134 }
0x2205   :  { %v6137_v7 = vpop.eup %6136  ;;  %v3171_v34 = vsel %vm7087_vm7, %v6135_v53, 0.0 }
0x2206   :  { %v3172_v9 = vsel %vm2834_vm12, %v3171_v34, 0.0  ;;  %v3347_v35 = vsel %vm7087_vm7, %v6137_v7, 0.0  ;;  %v5106_v7 = vld [vmem:[%s7419_s12 + $0x20] sm:$0xff] }
0x2207   :  { %v3173_v38 = vrot.slane %v3172_v9, 4  ;;  %v3348_v36 = vsel %vm2834_vm12, %v3347_v35, 0.0 }
0x2208   :  { %v3349_v39 = vrot.slane %v3348_v36, 4 }
0x2209   :  { %v3174_v40 = vadd.f32 %v3173_v38, %v3172_v9  ;;  %v5115_v9 = vld [vmem:[%s7419_s12 + $0x60] sm:$0xff]  ;;  %v5116_v38 = vld [vmem:[%s7419_s12 + $0x68] sm:$0xff] }
0x220a   :  { %v3350_v41 = vadd.f32 %v3349_v39, %v3348_v36  ;;  %v7171_v36 = vpack.c.bf16 %v5116_v38, %v5115_v9  ;;  %v5108_v39 = vld [vmem:[%s7419_s12 + $0x30] sm:$0xff] }
0x220b   :  { %v3175_v50 = vrot.slane %v3174_v40, 2 }
0x220c   :  { %v3351_v45 = vrot.slane %v3350_v41, 2 }
0x220d   :  { %v3176_v47 = vadd.f32 %v3175_v50, %v3174_v40  ;;  %v5109_v40 = vld [vmem:[%s7419_s12 + $0x38] sm:$0xff] }
0x220e   :  { %v3352_v54 = vadd.f32 %v3351_v45, %v3350_v41  ;;  %v5117_v41 = vld [vmem:[%s7419_s12 + $0x70] sm:$0xff]  ;;  %v7186_v50 = vpack.c.bf16 %v5109_v40, %v5108_v39  ;;  %v5118_v45 = vld [vmem:[%s7419_s12 + $0x78] sm:$0xff] }
0x220f   :  { %v3177_v1 = vrot.slane %v3176_v47, 1 }
0x2210   :  { %v3353_v11 = vrot.slane %v3352_v54, 1 }
0x2211   :  { %v3178_v52 = vadd.f32 %v3177_v1, %v3176_v47  ;;  %v7191_v47 = vpack.c.bf16 %v5118_v45, %v5117_v41 }
0x2212   :  { %v3354_v62 = vadd.f32 %v3353_v11, %v3352_v54  ;;  %v7197_v11 = vld [vmem:[#allocation7] ss:$0 sm:$0xff] }
0x2213   :  { %6138 = vrcp.f32 %v3178_v52 }
0x2214   :  { %6140 = vrcp.f32 %v3354_v62 }
0x221d   :  { %v6139_v30 = vpop.eup %6138 }
0x221e   :  { %v6141_v59 = vpop.eup %6140  ;;  %v3180_v8 = vmul.f32 %v6139_v30, %v3171_v34  ;;  %v5107_v34 = vld [vmem:[%s7419_s12 + $0x28] sm:$0xff] }
0x221f   :  { %v3356_v46 = vmul.f32 %v6141_v59, %v3347_v35  ;;  %v7166_v35 = vpack.c.bf16 %v5107_v34, %v5106_v7  ;;  %v3590_v59 = vld [vmem:[%s7419_s12] sm:$0xff]  ;;  %v3996_v34 = vmul.f32 %v7082_v37, %v7028_v12 }
0x2220   :  { %v3181_v26 = vsel %vm2996_vm5, %v3180_v8, 0.0  ;;  %v3591_v8 = vld [vmem:[%s7419_s12 + $0x8] sm:$0xff] }
0x2221   :  { %5497 = vmatmul.mubr.msk.f32.vlgmr.msra.gmra.mrb[30].mxu0 %vm2834_vm12, %v3181_v26  ;;  %v3357_v13 = vsel %vm2996_vm5, %v3356_v46, 0.0  ;;  %v5111_v26 = vld [vmem:[%s7419_s12 + $0x40] sm:$0xff]  ;;  %v5112_v46 = vld [vmem:[%s7419_s12 + $0x48] sm:$0xff]  ;;  %v7214_v48 = vpack.c.bf16 %v3591_v8, %v3590_v59  ;;  %v4000_v39 = vrot.slane %v3996_v34, %v7026_v5 }
0x2222   :  { %5505 = vmatpush3.msra.mxu0 %v3359_v3  ;;  %5506 = vmatprep.mubr.msk.f32.mxu0 %vm6300_vm1, %v6293_v0  ;;  %v7216_v14 = vpack.c.bf16 %v5112_v46, %v5111_v26 }
0x2223   :  { %5759 = vmatprep.subr.bf16.mxu0 %v6299_v27 }
0x2225   :  { %5507 = vmatmul.mubr.msk.f32.vlgmr.msra.gmra.mrb[32].mxu0 %vm2834_vm12, %v3357_v13 }
0x2226   :  { %5528 = vmatprep.mubr.msk.f32.mxu0 %vm6300_vm1, %v6293_v0  ;;  %5761 = vmatpush3.bf16.msra.mxu0 %v7120_v57 }
0x2227   :  { %5762 = vmatprep.subr.bf16.mxu0 %v6299_v27 }
0x222a   :  { %5764 = vmatpush3.bf16.msra.mxu0 %v7134_v49 }
0x222b   :  { %5771 = vmatprep.subr.bf16.mxu0 %v6299_v27 }
0x2271   :  { %v3906_v28 = vpop.xlane.xlu0 %3905 }
0x2272   :  { %v3907_v29 = vrot.slane %v3906_v28, 4 }
0x2274   :  { %v3908_v32 = vadd.f32 %v3907_v29, %v3906_v28  ;;  %v5113_v28 = vld [vmem:[%s7419_s12 + $0x50] sm:$0xff]  ;;  %v7234_v29 = vpack.c.bf16 %v3593_v23, %v3592_v18 }
0x2276   :  { %v3909_v31 = vrot.slane %v3908_v32, 2 }
0x2278   :  { %v3910_v6 = vadd.f32 %v3909_v31, %v3908_v32  ;;  %v7236_v32 = vpack.c.bf16 %v5114_v15, %v5113_v28 }
0x227a   :  { %v3911_v24 = vrot.slane %v3910_v6, 1 }
0x227c   :  { %v3912_v10 = vadd.f32 %v3911_v24, %v3910_v6 }
0x227e   :  { %5848 = vpush %v3912_v10 }
0x22af   :  { %s5849_s12 = spop %5848 }
0x22f4   :  { %v3254_v42 = vpop.f32.mrb[30].mxu0 }
0x22f5   :  { %v5498_v51 = vpop.f32.mrb[31].mxu0  ;;  %5529 = vmatmul.mubr.msk.f32.vlgmr.msra.gmra.mrb[34].mxu0 %vm2544_vm2, %v3254_v42 }
0x22f6   :  { %5550 = vmatprep.mubr.msk.f32.mxu0 %vm6300_vm1, %v6293_v0  ;;  %5773 = vmatpush3.bf16.msra.mxu0 %v7171_v36 }
0x22f7   :  { %5774 = vmatprep.subr.bf16.mxu0 %v6299_v27 }
0x22f8   :  { %v3430_v33 = vpop.f32.mrb[32].mxu0 }
0x22f9   :  { %v5508_v53 = vpop.f32.mrb[33].mxu0  ;;  %5518 = vmatmul.mubr.msk.f32.vlgmr.msra.gmra.mrb[32].mxu1 %vm2544_vm2, %v3430_v33  ;;  %v7268_v33 = vld [vmem:[#allocation9] sm:$0x1] }
0x22fa   :  { %5539 = vmatprep.mubr.msk.f32.mxu1 %vm6300_vm1, %v6293_v0  ;;  %5767 = vmatpush3.bf16.msra.mxu1 %v7166_v35 }
0x22fb   :  { %5768 = vmatprep.subr.bf16.mxu1 %v6299_v27  ;;  %5776 = vmatpush3.bf16.msra.mxu0 %v7191_v47 }
0x22fc   :  { %5783 = vmatprep.subr.bf16.mxu0 %v6299_v27 }
0x22fe   :  { %5770 = vmatpush3.bf16.msra.mxu1 %v7186_v50 }
0x22ff   :  { %5777 = vmatprep.subr.bf16.mxu1 %v6299_v27 }
0x23c8   :  { %v3576_v54 = vpop.f32.mrb[34].mxu0 }
0x23c9   :  { %v5530_v1 = vpop.f32.mrb[35].mxu0 }
0x23cc   :  { %v3503_v52 = vpop.f32.mrb[32].mxu1 }
0x23cd   :  { %v3577_v62 = vadd.f32 %v3576_v54, %v3503_v52  ;;  %v5519_v30 = vpop.f32.mrb[33].mxu1 }
0x23cf   :  { %v3586_v3 = vadd.f32 %v7197_v11, %v3577_v62 }
0x23d1   :  { %v3589_v13 = vsel %vm7087_vm7, %v3586_v3, 0.0 }
0x23d2   :  { %v3600_v22 = vrot.slane %v3589_v13, 1  ;;  %v3683_v58 = vrot.slane %v3589_v13, 3  ;;  %v3828_v21 = vrot.slane %v3589_v13, 2 }
0x23d4   :  { %5540 = vmatmul.mubr.msk.f32.vlgmr.msra.gmra.mrb[34].mxu1 %vm2544_vm2, %v3600_v22  ;;  %5551 = vmatmul.mubr.msk.f32.vlgmr.msra.gmra.mrb[36].mxu0 %vm2544_vm2, %v3683_v58 }
0x23d5   :  { %5779 = vmatpush3.bf16.msra.mxu1 %v7214_v48  ;;  %5785 = vmatpush3.bf16.msra.mxu0 %v7216_v14 }
0x23d6   :  { %5780 = vmatprep.subr.bf16.mxu1 %v6299_v27  ;;  %5786 = vmatprep.subr.bf16.mxu0 %v6299_v27 }
0x23d7   :  { %5561 = vmatprep.mubr.msk.f32.mxu1 %vm6300_vm1, %v6293_v0  ;;  %5572 = vmatprep.mubr.msk.f32.mxu0 %vm6300_vm1, %v6293_v0 }
0x23d9   :  { %5782 = vmatpush3.bf16.msra.mxu1 %v7234_v29  ;;  %5788 = vmatpush3.bf16.msra.mxu0 %v7236_v32 }
0x23da   :  { %5575 = vmatprep.subr.mxu1 %v6293_v0  ;;  %5580 = vmatprep.subr.mxu0 %v6293_v0 }
0x23dc   :  { %5562 = vmatmul.mubr.msk.f32.vlgmr.msra.gmra.mrb[36].mxu1 %vm2544_vm2, %v3589_v13  ;;  %5573 = vmatmul.mubr.msk.f32.vlgmr.msra.gmra.mrb[38].mxu0 %vm2544_vm2, %v3828_v21 }
0x23dd   :  { %5576 = vmatpush3.msk.msra.mxu1 %vm2799_vm10, %v6301_v63  ;;  %5581 = vmatpush3.msra.mxu0 %v6918_v16 }
0x23de   :  { %5577 = vmatprep.mubr.msk.f32.mxu1 %vm6300_vm1, %v6293_v0  ;;  %5582 = vmatprep.mubr.msk.f32.mxu0 %vm6300_vm1, %v6293_v0 }
0x23df   :  { %5790 = vmatprep.subr.bf16.mxu1 %v6996_v60  ;;  %5585 = vmatprep.subr.mxu0 %v6293_v0 }
0x23e0   :  { %5578 = vmatmul.mubr.msk.f32.vlgmr.msra.gmra.mrb[38].mxu1 %vm2834_vm12, %v7082_v37 }
0x23e1   :  { %5792 = vmatpush1.bf16.msra.mxu1 %v7007_v55  ;;  %4145 = vmatprep.mubr.f32.mxu1 %v6293_v0 }
0x23e2   :  { %5794 = vmatprep.subr.bf16.mxu1 %v7009_v56 }
0x23e5   :  { %5796 = vmatpush1.bf16.msra.mxu1 %v7019_v19 }
0x23e6   :  { %5595 = vmatprep.subr.mxu1 %v6293_v0 }
0x24a7   :  { %v3669_v16 = vpop.f32.mrb[34].mxu1  ;;  %v3752_v63 = vpop.f32.mrb[36].mxu0 }
0x24a8   :  { %v5541_v17 = vpop.f32.mrb[35].mxu1  ;;  %v5552_v31 = vpop.f32.mrb[37].mxu0 }
0x24af   :  { %v3824_v60 = vpop.f32.mrb[36].mxu1  ;;  %v3897_v6 = vpop.f32.mrb[38].mxu0 }
0x24b0   :  { %v3825_v24 = vadd.f32 %v3824_v60, %v3669_v16  ;;  %v3898_v10 = vadd.f32 %v3897_v6, %v3752_v63  ;;  %v5563_v42 = vpop.f32.mrb[37].mxu1  ;;  %v5574_v51 = vpop.f32.mrb[39].mxu0 }
0x24b2   :  { %v3901_v55 = vadd.f32 %v3898_v10, %v3825_v24 }
0x24b3   :  { %v3985_v53 = vpop.f32.mrb[38].mxu1 }
0x24b4   :  { %v3902_v56 = vadd.f32 %v3901_v55, %v7268_v33  ;;  %v3992_v19 = vrot.slane %v3985_v53, %v7026_v5  ;;  %v5579_v7 = vpop.f32.mrb[39].mxu1 }
0x24b6   :  { %v3993_v9 = vsub.f32 %v2802_v2, %v3992_v19  ;;  %3903 = vst.msk [vmem:[#allocation11] sm:$0x1] %vm2537_vm3, %v3902_v56 }
0x24b8   :  { %v3994_v38 = vand.u32 2147483647, %v3993_v9 }
0x24ba   :  { %vm3995_vm8 = vcmp.lt.f32.partialorder %v3994_v38, 0.5 }
0x24bb   :  { %v4001_v40 = vsel %vm3995_vm8, %v4000_v39, 0.0 }
0x24bc   :  { %5583 = vmatmul.mubr.msk.f32.vlgmr.msra.gmra.mrb[40].mxu0 %vm2834_vm12, %v4001_v40 }
0x24bd   :  { %5587 = vmatprep.mubr.msk.f32.mxu0 %vm6300_vm1, %v6293_v0 }
0x258f   :  { %v4071_v41 = vpop.f32.mrb[40].mxu0 }
0x2590   :  { %v5584_v45 = vpop.f32.mrb[41].mxu0  ;;  %5125 = vmatmul.mubr.msk.f32.vlgmr.msra.gmra.mrb[40].mxu1 %vm2544_vm2, %v4071_v41 }
0x2591   :  { %5597 = vmatprep.mubr.msk.f32.mxu1 %vm6300_vm1, %v6293_v0 }
0x2663   :  { %v4147_v2 = vpop.f32.mrb[40].mxu1 }
0x2664   :  { %v4148_v12 = vadd.f32 %v4147_v2, %v7047_v25  ;;  %v4149_v37 = vpop.f32.mrb[41].mxu1 }
0x2665   :  { %v4150_v5 = vadd.f32 %v4149_v37, %v7049_v43 }
0x2666   :  { %4153 = vrot.lane.b32.xlu1 %v4148_v12, %s6295_s11 }
0x2667   :  { %5596 = vmatpush3.xpose.msk.msra.mxu1 %vm2544_vm2, %v4150_v5 }
0x2668   :  { %5797 = vmatprep.subr.bf16.mxu1 %v6299_v27 }
0x266a   :  { %4329 = vrot.lane.b32.xlu1 %v4148_v12, %s6297_s17 }
0x266e   :  { %4253 = vrot.lane.b32.xlu1 %v4148_v12, %s6294_s2  ;;  %s3914_s2 = sadd.f32 0.5, %s5849_s12 }
0x2670   :  { %p5850_p13 = scmp.lt.s32.totalorder %s3914_s2, 0  ;;  %s5852_s17 = sfloor.f32 %s3914_s2 }
0x2672   :  { %4430 = vrot.lane.b32.xlu1 %v4150_v5, %s6295_s11  ;;  %s5851_s11 = sceil.f32 %s3914_s2 }
0x2673   :  { %s7435_s11 = smov (!%p5850_p13, %s5851_s11), %s5852_s17 }
0x2674   :  { %s5854_s22 = scvt.f32.s32 %s7435_s11 }
0x2676   :  { %v7305_v1 = vstv %s5854_s22 }
0x2677   :  { %vm7309_vm9 = vcmp.lt.s32.totalorder %v6970_v44, %v7305_v1  ;;  %vm4077_vm10 = vcmp.lt.s32.totalorder %v6931_v4, %v7305_v1 }
0x26d8   :  { %v4154_v54 = vpop.permute.xlu1 %4153 }
0x26d9   :  { %5586 = vmatpush3.xpose.msk.msra.mxu0 %vm2544_vm2, %v4154_v54 }
0x26da   :  { %5590 = vmatprep.subr.mxu0 %v6293_v0 }
0x26dc   :  { %5588 = vmatmul.mubr.msk.f32.vlgmr.msra.gmra.mrb[42].mxu0 %vm2544_vm2, %v4148_v12  ;;  %v4330_v25 = vpop.permute.xlu1 %4329 }
0x26dd   :  { %5598 = vmatmul.mubr.msk.f32.vlgmr.msra.gmra.mrb[42].mxu1 %vm2544_vm2, %v4330_v25  ;;  %5592 = vmatprep.mubr.msk.f32.mxu0 %vm6300_vm1, %v6293_v0 }
0x26de   :  { %5799 = vmatpush3.bf16.msra.mxu1 %v7131_v61  ;;  %5613 = vmatprep.mubr.msk.f32.mxu1 %vm6300_vm1, %v6293_v0 }
0x26df   :  { %5800 = vmatprep.subr.bf16.mxu1 %v6299_v27 }
0x26e0   :  { %v4254_v43 = vpop.permute.xlu1 %4253 }
0x26e1   :  { %5591 = vmatpush3.msra.mxu0 %v4254_v43 }
0x26e2   :  { %5600 = vmatprep.subr.mxu0 %v6293_v0  ;;  %5802 = vmatpush3.bf16.msra.mxu1 %v7147_v20 }
0x26e3   :  { %5809 = vmatprep.subr.bf16.mxu1 %v6299_v27 }
0x27af   :  { %v4225_v61 = vpop.f32.mrb[42].mxu0 }
0x27b0   :  { %v4229_v52 = vsub.f32 1.0, %v4225_v61  ;;  %v5589_v62 = vpop.f32.mrb[43].mxu0  ;;  %v4402_v30 = vpop.f32.mrb[42].mxu1 }
0x27b1   :  { %v4406_v59 = vsub.f32 1.0, %v4402_v30  ;;  %v5599_v8 = vpop.f32.mrb[43].mxu1 }
0x27b2   :  { %v4230_v26 = vmul.f32 0.17677669, %v4229_v52 }
0x27b3   :  { %v4407_v46 = vmul.f32 0.17677669, %v4406_v59  ;;  %v4431_v59 = vpop.permute.xlu1 %4430 }
0x27b4   :  { %v4231_v3 = vsel %vm7309_vm9, %v4230_v26, -1e+30 }
0x27b5   :  { %v4232_v13 = vsel %vm2834_vm12, %v4231_v3, -inf  ;;  %v4408_v18 = vsel %vm7309_vm9, %v4407_v46, -1e+30 }
0x27b6   :  { %v4233_v22 = vrot.slane %v4232_v13, 4  ;;  %v4409_v58 = vsel %vm2834_vm12, %v4408_v18, -inf }
0x27b7   :  { %v4410_v23 = vrot.slane %v4409_v58, 4 }
0x27b8   :  { %v4234_v28 = vmax.f32 %v4232_v13, %v4233_v22 }
0x27b9   :  { %v4411_v15 = vmax.f32 %v4409_v58, %v4410_v23 }
0x27ba   :  { %v4235_v21 = vrot.slane %v4234_v28, 2 }
0x27bb   :  { %v4412_v44 = vrot.slane %v4411_v15, 2 }
0x27bc   :  { %v4236_v16 = vmax.f32 %v4234_v28, %v4235_v21 }
0x27bd   :  { %v4413_v63 = vmax.f32 %v4411_v15, %v4412_v44 }
0x27be   :  { %v4237_v17 = vrot.slane %v4236_v16, 1 }
0x27bf   :  { %v4414_v31 = vrot.slane %v4413_v63, 1 }
0x27c0   :  { %v4238_v60 = vmax.f32 %v4236_v16, %v4237_v17 }
0x27c1   :  { %v4415_v6 = vmax.f32 %v4413_v63, %v4414_v31 }
0x27c2   :  { %v4239_v24 = vsub.f32 %v4231_v3, %v4238_v60 }
0x27c3   :  { %v4416_v10 = vsub.f32 %v4408_v18, %v4415_v6 }
0x27c4   :  { %v4240_v42 = vmul.f32 1.442695, %v4239_v24 }
0x27c5   :  { %v4417_v51 = vmul.f32 1.442695, %v4416_v10 }
0x27c6   :  { %6142 = vpow2.f32 %v4240_v42 }
0x27c7   :  { %6144 = vpow2.f32 %v4417_v51 }
0x27d0   :  { %v6143_v55 = vpop.eup %6142 }
0x27d1   :  { %v6145_v53 = vpop.eup %6144  ;;  %v4242_v56 = vsel %vm7309_vm9, %v6143_v55, 0.0 }
0x27d2   :  { %v4243_v19 = vsel %vm2834_vm12, %v4242_v56, 0.0  ;;  %v4419_v7 = vsel %vm7309_vm9, %v6145_v53, 0.0 }
0x27d3   :  { %v4244_v34 = vrot.slane %v4243_v19, 4  ;;  %v4420_v9 = vsel %vm2834_vm12, %v4419_v7, 0.0 }
0x27d4   :  { %v4421_v38 = vrot.slane %v4420_v9, 4 }
0x27d5   :  { %v4245_v39 = vadd.f32 %v4244_v34, %v4243_v19 }
0x27d6   :  { %v4422_v40 = vadd.f32 %v4421_v38, %v4420_v9 }
0x27d7   :  { %v4246_v41 = vrot.slane %v4245_v39, 2 }
0x27d8   :  { %v4423_v45 = vrot.slane %v4422_v40, 2 }
0x27d9   :  { %v4247_v2 = vadd.f32 %v4246_v41, %v4245_v39 }
0x27da   :  { %v4424_v12 = vadd.f32 %v4423_v45, %v4422_v40 }
0x27db   :  { %v4248_v37 = vrot.slane %v4247_v2, 1 }
0x27dc   :  { %v4425_v5 = vrot.slane %v4424_v12, 1 }
0x27dd   :  { %v4249_v54 = vadd.f32 %v4248_v37, %v4247_v2 }
0x27de   :  { %v4426_v25 = vadd.f32 %v4425_v5, %v4424_v12 }
0x27df   :  { %6146 = vrcp.f32 %v4249_v54 }
0x27e0   :  { %6148 = vrcp.f32 %v4426_v25 }
0x27e9   :  { %v6147_v43 = vpop.eup %6146 }
0x27ea   :  { %v6149_v61 = vpop.eup %6148  ;;  %v4251_v52 = vmul.f32 %v6147_v43, %v4242_v56 }
0x27eb   :  { %v4428_v30 = vmul.f32 %v6149_v61, %v4419_v7 }
0x27ec   :  { %v4252_v62 = vsel %vm4077_vm10, %v4251_v52, 0.0 }
0x27ed   :  { %5593 = vmatmul.mubr.msk.f32.vlgmr.msra.gmra.mrb[44].mxu0 %vm2834_vm12, %v4252_v62  ;;  %v4429_v8 = vsel %vm4077_vm10, %v4428_v30, 0.0 }
0x27ee   :  { %5601 = vmatpush3.msra.mxu0 %v4431_v59  ;;  %5602 = vmatprep.mubr.msk.f32.mxu0 %vm6300_vm1, %v6293_v0 }
0x27ef   :  { %5803 = vmatprep.subr.bf16.mxu0 %v6299_v27 }
0x27f1   :  { %5603 = vmatmul.mubr.msk.f32.vlgmr.msra.gmra.mrb[46].mxu0 %vm2834_vm12, %v4429_v8 }
0x27f2   :  { %5805 = vmatpush3.bf16.msra.mxu0 %v7120_v57  ;;  %5624 = vmatprep.mubr.msk.f32.mxu0 %vm6300_vm1, %v6293_v0 }
0x27f3   :  { %5806 = vmatprep.subr.bf16.mxu0 %v6299_v27 }
0x27f6   :  { %5808 = vmatpush3.bf16.msra.mxu0 %v7134_v49 }
0x27f7   :  { %5815 = vmatprep.subr.bf16.mxu0 %v6299_v27 }
0x28c0   :  { %v4325_v4 = vpop.f32.mrb[44].mxu0 }
0x28c1   :  { %v5594_v1 = vpop.f32.mrb[45].mxu0  ;;  %5625 = vmatmul.mubr.msk.f32.vlgmr.msra.gmra.mrb[48].mxu0 %vm2544_vm2, %v4325_v4 }
0x28c2   :  { %5817 = vmatpush3.bf16.msra.mxu0 %v7171_v36  ;;  %5646 = vmatprep.mubr.msk.f32.mxu0 %vm6300_vm1, %v6293_v0 }
0x28c3   :  { %5818 = vmatprep.subr.bf16.mxu0 %v6299_v27 }
0x28c4   :  { %v4502_v57 = vpop.f32.mrb[46].mxu0 }
0x28c5   :  { %v5604_v26 = vpop.f32.mrb[47].mxu0  ;;  %5614 = vmatmul.mubr.msk.f32.vlgmr.msra.gmra.mrb[44].mxu1 %vm2544_vm2, %v4502_v57 }
0x28c6   :  { %5811 = vmatpush3.bf16.msra.mxu1 %v7166_v35  ;;  %5820 = vmatpush3.bf16.msra.mxu0 %v7191_v47 }
0x28c7   :  { %5812 = vmatprep.subr.bf16.mxu1 %v6299_v27  ;;  %5635 = vmatprep.mubr.msk.f32.mxu1 %vm6300_vm1, %v6293_v0 }
0x28c8   :  { %5827 = vmatprep.subr.bf16.mxu0 %v6299_v27 }
0x28ca   :  { %5814 = vmatpush3.bf16.msra.mxu1 %v7186_v50 }
0x28cb   :  { %5821 = vmatprep.subr.bf16.mxu1 %v6299_v27 }
0x2994   :  { %v4648_v49 = vpop.f32.mrb[48].mxu0 }
0x2995   :  { %v5626_v36 = vpop.f32.mrb[49].mxu0 }
0x2998   :  { %v4575_v46 = vpop.f32.mrb[44].mxu1 }
0x2999   :  { %v4649_v3 = vadd.f32 %v4648_v49, %v4575_v46  ;;  %v5615_v13 = vpop.f32.mrb[45].mxu1 }
0x299b   :  { %v4652_v35 = vadd.f32 %v7197_v11, %v4649_v3 }
0x299d   :  { %v4655_v47 = vsel %vm7309_vm9, %v4652_v35, 0.0 }
0x299e   :  { %v4665_v18 = vrot.slane %v4655_v47, 1  ;;  %v4746_v22 = vrot.slane %v4655_v47, 3  ;;  %v4891_v50 = vrot.slane %v4655_v47, 2 }
0x29a0   :  { %5636 = vmatmul.mubr.msk.f32.vlgmr.msra.gmra.mrb[46].mxu1 %vm2544_vm2, %v4665_v18  ;;  %5647 = vmatmul.mubr.msk.f32.vlgmr.msra.gmra.mrb[50].mxu0 %vm2544_vm2, %v4746_v22 }
0x29a1   :  { %5823 = vmatpush3.bf16.msra.mxu1 %v7214_v48  ;;  %5829 = vmatpush3.bf16.msra.mxu0 %v7216_v14 }
0x29a2   :  { %5824 = vmatprep.subr.bf16.mxu1 %v6299_v27  ;;  %5830 = vmatprep.subr.bf16.mxu0 %v6299_v27 }
0x29a3   :  { %5657 = vmatprep.mubr.msk.f32.mxu1 %vm6300_vm1, %v6293_v0  ;;  %5668 = vmatprep.mubr.msk.f32.mxu0 %vm6300_vm1, %v6293_v0 }
0x29a5   :  { %5826 = vmatpush3.bf16.msra.mxu1 %v7234_v29  ;;  %5832 = vmatpush3.bf16.msra.mxu0 %v7236_v32 }
0x29a8   :  { %5658 = vmatmul.mubr.msk.f32.vlgmr.msra.gmra.mrb[48].mxu1 %vm2544_vm2, %v4655_v47  ;;  %5669 = vmatmul.mubr.msk.f32.vlgmr.msra.gmra.mrb[52].mxu0 %vm2544_vm2, %v4891_v50 }
0x29a9   :  { %6227 = shalt.err (!%p6224_p4)
}
0x29aa   :  { %s6228_s26 = scalar_lea.hbm %s7422_s15, 16 }
0x29ab   :  { %p6229_p5 = scmp.ne.s32.totalorder %s7422_s15, %s6228_s26  ;;  %p6232_p6 = scmp.lt.u32.totalorder %s6228_s26, %s7422_s15 }
0x29ad   :  { %p6234_p7 = pnand %p6232_p6, %p6229_p5 }
0x29af   :  { %6237 = shalt.err (!%p6234_p7)
}
0x29b0   :  { %4986 = dma.vmem_to_hbm [thread:$0]  %s4984_s13, 16, %s7422_s15, [#allocation12]  }
0x29b1   :  { %s6238_s10 = scalar_lea.vmem %s4974_s20, 16  ;;  %s6242_s9 = scalar_lea.vmem %s4974_s20, 32 }
0x29b2   :  { %p6239_p8 = scmp.ne.s32.totalorder %s4974_s20, %s6238_s10  ;;  %p6243_p9 = scmp.lt.s32.totalorder %s4974_s20, %s4974_s20 }
0x29b3   :  { %p6244_p10 = scmp.lt.s32.totalorder %s6242_s9, %s6238_s10 }
0x29b5   :  { %p6245_p11 = por %p6244_p10, %p6243_p9 }
0x29b7   :  { %p6246_p12 = pnand %p6245_p11, %p6239_p8 }
0x29b9   :  { %6249 = shalt.err (!%p6246_p12)
}
0x29ba   :  { %s6250_s29 = scalar_lea.hbm %s7421_s14, 16 }
0x29bb   :  { %p6251_p13 = scmp.ne.s32.totalorder %s7421_s14, %s6250_s29  ;;  %p6254_p0 = scmp.lt.u32.totalorder %s6250_s29, %s7421_s14 }
0x29bd   :  { %p6256_p1 = pnand %p6254_p0, %p6251_p13 }
0x29bf   :  { %6259 = shalt.err (!%p6256_p1)
}
0x29c0   :  { %4976 = dma.vmem_to_hbm [thread:$0]  %s4974_s20, 16, %s7421_s14, [#allocation6]  }
0x29c1   :  { %s6304_s11 = smov [#allocation13]  }
0x29c2   :  { %s4993_s17 = sshll.u32 %s6304_s11, 4  ;;  %s4994_s17 = int_to_ptr.vmem [resolvable:$true] %s4993_s17 }
0x29c3   :  { %s6260_s22 = scalar_lea.vmem %s4994_s17, 16  ;;  %s6264_s14 = scalar_lea.vmem %s4994_s17, 32 }
0x29c4   :  { %p6261_p2 = scmp.ne.s32.totalorder %s4994_s17, %s6260_s22  ;;  %p6265_p3 = scmp.lt.s32.totalorder %s4994_s17, %s4994_s17 }
0x29c5   :  { %p6266_p4 = scmp.lt.s32.totalorder %s6264_s14, %s6260_s22 }
0x29c7   :  { %p6267_p5 = por %p6266_p4, %p6265_p3 }
0x29c9   :  { %p6268_p6 = pnand %p6267_p5, %p6261_p2 }
0x2a73   :  { %v4734_v0 = vpop.f32.mrb[46].mxu1  ;;  %v4815_v27 = vpop.f32.mrb[50].mxu0 }
0x2a74   :  { %v5637_v11 = vpop.f32.mrb[47].mxu1  ;;  %v5648_v48 = vpop.f32.mrb[51].mxu0 }
0x2a7b   :  { %v4887_v14 = vpop.f32.mrb[48].mxu1  ;;  %v4960_v29 = vpop.f32.mrb[52].mxu0 }
0x2a7c   :  { %v4888_v32 = vadd.f32 %v4887_v14, %v4734_v0  ;;  %v4961_v20 = vadd.f32 %v4960_v29, %v4815_v27  ;;  %v5659_v58 = vpop.f32.mrb[49].mxu1  ;;  %v5670_v23 = vpop.f32.mrb[53].mxu0 }
0x2a7e   :  { %v4964_v28 = vadd.f32 %v4961_v20, %v4888_v32 }
0x2a80   :  { %v4965_v15 = vadd.f32 %v4964_v28, %v7268_v33 }
0x2a82   :  { %4966 = vst.msk [vmem:[#allocation13] sm:$0x1] %vm2537_vm3, %v4965_v15 }
0x2a83   :  { %6271 = shalt.err (!%p6268_p6)
}
0x2a84   :  { %s6272_s18 = scalar_lea.hbm %s7423_s16, 16 }
0x2a85   :  { %p6273_p7 = scmp.ne.s32.totalorder %s7423_s16, %s6272_s18  ;;  %p6276_p8 = scmp.lt.u32.totalorder %s6272_s18, %s7423_s16 }
0x2a87   :  { %p6278_p9 = pnand %p6276_p8, %p6273_p7 }
0x2a89   :  { %6281 = shalt.err (!%p6278_p9)
}
0x2a8a   :  { %4996 = dma.vmem_to_hbm [thread:$0]  %s4994_s17, 16, %s7423_s16, [#allocation12]  }
0x2a8b   :  { %6286 = dma.done.wait [#allocation6], 16  }
0x2a8c   :  { %6287 = vsyncadd [#allocation6], 4294967280 }
0x2a8d   :  { %6288 = dma.done.wait [#allocation12], 32  }
0x2a8e   :  { %6289 = vsyncadd [#allocation12], 4294967264 }
0x2a8f   :  { %5006 = vsyncpa [#allocation5], 1 }
0x2a90   :  { %5007 = vsyncpa [#allocation8], 1 }
0x2a91   :  { %5008 = vsyncpa [#allocation6], 1 }
0x2a92   :  { %5009 = vsyncpa [#allocation12], 1 }

</bundles_post_ra>
